<compile_context>
chip_gen: v5e
topology: v5e:2x2
jax: 0.10.0
libtpu: 0.0.40
codegen_flags: <defaults>
</compile_context>

<pallas_src>
import functools

import jax
import jax.numpy as jnp
from jax.experimental import pallas as pl
from jax.experimental.pallas import tpu as pltpu


def _readout_kernel(xp_ref, lb_ref, wp_ref, o_ref):
    # xp_ref: (1, TILE_N, C) bf16 | lb_ref: (B, C) f32 | wp_ref: (C, C) bf16
    # o_ref : (1, TILE_N, C)
    b = pl.program_id(0)

    # project_patch: Linear(C -> C); bf16 x bf16 on the MXU, f32 accumulation.
    patch = jnp.dot(xp_ref[0], wp_ref[...],
                    preferred_element_type=jnp.float32)        # (TILE_N, C) f32

    # + (project_learn(x_learn) + bias), precomputed per batch as a (1, C) row.
    feat = patch + lb_ref[pl.ds(b, 1), :]                      # broadcast over rows

    # exact GELU: 0.5 * x * (1 + erf(x / sqrt(2)))  (PyTorch nn.GELU default), f32.
    # (On v5e, if profiling shows the VALU slot binding, a tanh-approx GELU routes
    #  to the otherwise-idle EUP slot — left exact here for numerical parity.)
    inv_sqrt2 = 0.7071067811865476
    gelu = 0.5 * feat * (1.0 + jax.lax.erf(feat * inv_sqrt2))

    o_ref[0] = gelu.astype(o_ref.dtype)


def _pick_tile_n(n, c, b, in_itemsize, out_itemsize, w_itemsize,
                 vmem_budget_bytes=48 << 20):
    """Largest multiple-of-8 row tile whose double-buffered in/out tiles plus the
    single-buffered weight + learn rows fit the VMEM budget (v7x-safe)."""
    if n <= 8:
        return n
    fixed = c * c * w_itemsize + b * c * 4             # W_patch (1x) + learn_b block
    per_row = 2 * c * (in_itemsize + out_itemsize)     # 2-deep pipeline: in + out tile
    max_rows = max((vmem_budget_bytes - fixed) // per_row, 8)
    tile = int(min(n, max_rows))
    if b == 1:
        # keep at least 2 grid steps total so both v7x TensorCores get work
        tile = min(tile, -(-n // 2))
    tile = max((tile // 8) * 8, 8)
    return tile


@functools.partial(jax.jit, static_argnames=())
def readout_forward(x_patch, x_learn, w_patch, b_patch, w_learn):
    """x_patch: (B, N, C)  x_learn: (B, 1, L)
       w_patch: (C, C) [in, out]   b_patch: (C,)   w_learn: (L, C) [in, out]"""
    B, N, C = x_patch.shape
    out_dtype = x_patch.dtype

    # Hoisted prologue: learn_b[b, :] = x_learn[b, 0, :] @ W_learn + b_patch.
    # This is B*L*C flops total (negligible); keep it exact in f32.
    learn_b = (
        jnp.einsum("bl,lc->bc", x_learn[:, 0, :], w_learn,
                   precision=jax.lax.Precision.HIGHEST)
        + b_patch[None, :]
    ).astype(jnp.float32)                                       # (B, C)

    # bf16 ingress for the two big HBM streams (activations + weight).
    xp_bf16 = x_patch.astype(jnp.bfloat16)
    wp_bf16 = w_patch.astype(jnp.bfloat16)

    in_itemsize = jnp.dtype(jnp.bfloat16).itemsize
    w_itemsize = jnp.dtype(jnp.bfloat16).itemsize
    out_itemsize = jnp.dtype(out_dtype).itemsize

    tile_n = _pick_tile_n(N, C, B, in_itemsize, out_itemsize, w_itemsize)
    grid = (B, pl.cdiv(N, tile_n))

    # Exact VMEM need: 2x in-tile + 2x out-tile + 1x weight + learn block, plus
    # headroom for Mosaic internal scratch; capped below v7x's 64 MiB physical VMEM.
    need = (2 * tile_n * C * in_itemsize
            + 2 * tile_n * C * out_itemsize
            + C * C * w_itemsize
            + B * C * 4)
    vmem_limit = int(min(max(need + (4 << 20), 16 << 20), 56 << 20))

    return pl.pallas_call(
        _readout_kernel,
        out_shape=jax.ShapeDtypeStruct((B, N, C), out_dtype),
        grid_spec=pltpu.PrefetchScalarGridSpec(
            num_scalar_prefetch=0,
            grid=grid,
            in_specs=[
                # x_patch tile (bf16, double-buffered by default)
                pl.BlockSpec((1, tile_n, C), lambda b, t: (b, t, 0)),
                # learn + bias rows: whole (B, C) array, resident, single-buffered
                pl.BlockSpec((B, C), lambda b, t: (0, 0),
                             pipeline_mode=pl.Buffered(1)),
                # W_patch: constant across the grid, single-buffered
                pl.BlockSpec((C, C), lambda b, t: (0, 0),
                             pipeline_mode=pl.Buffered(1)),
            ],
            out_specs=pl.BlockSpec((1, tile_n, C), lambda b, t: (b, t, 0)),
        ),
        compiler_params=pltpu.CompilerParams(
            dimension_semantics=("parallel", "parallel"),
            vmem_limit_bytes=vmem_limit,
        ),
    )(xp_bf16, learn_b, wp_bf16)


def readout_reference(x_patch, x_learn, w_patch, b_patch, w_learn):
    hp = jax.lax.Precision.HIGHEST
    patch = jnp.einsum("bnc,cd->bnd", x_patch, w_patch, precision=hp) + b_patch
    learn = jnp.einsum("bnl,lc->bnc", x_learn, w_learn, precision=hp)   # (B, 1, C)
    feat = patch + learn
    return 0.5 * feat * (1.0 + jax.lax.erf(feat * 0.7071067811865476))


if __name__ == "__main__":
    # Small but lane-dense shapes consistent with the module (C multiple of 128
    # so output stores are unmasked vst; B=2 with one N-tile per batch gives one
    # grid step per v7x TensorCore).
    B, N, C = 2, 512, 128
    num_register_tokens = 4
    L = (1 + num_register_tokens) * C   # 640

    key = jax.random.PRNGKey(0)
    k1, k2, k3, k4, k5 = jax.random.split(key, 5)

    # Inputs: x = (patch_tokens, learn_tokens)
    x_patch = jax.random.normal(k1, (B, N, C), dtype=jnp.float32)
    x_learn = jax.random.normal(k2, (B, 1, L), dtype=jnp.float32)

    # Deterministic synthetic parameters (stored as (in, out) for x @ W).
    w_patch = jax.random.normal(k3, (C, C), dtype=jnp.float32) * (1.0 / jnp.sqrt(C))
    b_patch = jax.random.normal(k4, (C,), dtype=jnp.float32) * 0.01
    w_learn = jax.random.normal(k5, (L, C), dtype=jnp.float32) * (1.0 / jnp.sqrt(L))

    out = readout_forward(x_patch, x_learn, w_patch, b_patch, w_learn)
    out = jax.block_until_ready(out)

    ref = readout_reference(x_patch, x_learn, w_patch, b_patch, w_learn)
    assert out.shape == (B, N, C)
    # Tolerance acknowledges the accepted bf16 (f32-accumulated) matmul precision.
    assert jnp.allclose(out, ref, atol=5e-2, rtol=5e-2), "mismatch vs reference"

    print("KERNEL_OK")
</pallas_src>

<mosaic_0001>
module attributes {stable_mosaic.version = 11 : i64} {
  func.func @_readout_kernel(%arg0: i32, %arg1: i32, %arg2: memref<1x512x128xbf16, #tpu.memory_space<vmem>>, %arg3: memref<2x128xf32, #tpu.memory_space<vmem>>, %arg4: memref<128x128xbf16, #tpu.memory_space<vmem>>, %arg5: memref<1x512x128xf32, #tpu.memory_space<vmem>>) attributes {dimension_semantics = [#tpu.dimension_semantics<parallel>, #tpu.dimension_semantics<parallel>], iteration_bounds = array<i64: 2, 1>, scalar_prefetch = 0 : i64, scratch_operands = 0 : i64, tpu.core_type = #tpu.core_type<tc>, window_params = [{transform_indices = @transform_0, window_bounds = array<i64: 1, 512, 128>}, {pipeline_mode = #tpu.pipeline_mode<synchronous>, transform_indices = @transform_1, window_bounds = array<i64: 2, 128>}, {pipeline_mode = #tpu.pipeline_mode<synchronous>, transform_indices = @transform_2, window_bounds = array<i64: 128, 128>}, {transform_indices = @transform_3, window_bounds = array<i64: 1, 512, 128>}]} {
    %c0 = arith.constant 0 : index
    %c0_0 = arith.constant 0 : index
    %c0_1 = arith.constant 0 : index
    %0 = vector.load %arg2[%c0, %c0_0, %c0_1] : memref<1x512x128xbf16, #tpu.memory_space<vmem>>, vector<1x512x128xbf16>
    %1 = vector.shape_cast %0 : vector<1x512x128xbf16> to vector<512x128xbf16>
    %c0_2 = arith.constant 0 : index
    %c0_3 = arith.constant 0 : index
    %2 = vector.load %arg4[%c0_2, %c0_3] : memref<128x128xbf16, #tpu.memory_space<vmem>>, vector<128x128xbf16>
    %cst = arith.constant dense<0.000000e+00> : vector<512x128xf32>
    %3 = tpu.matmul %1, %2, %cst {dimension_numbers = #tpu.dot_dimension_numbers<[1], [0], [0], [1], [0, 0, 1, 1], [], []>} : vector<512x128xbf16>, vector<128x128xbf16>, vector<512x128xf32> -> vector<512x128xf32>
    %4 = arith.index_cast %arg0 : i32 to index
    %c0_4 = arith.constant 0 : index
    %5 = vector.load %arg3[%4, %c0_4] : memref<2x128xf32, #tpu.memory_space<vmem>>, vector<1x128xf32>
    %6 = vector.broadcast %5 : vector<1x128xf32> to vector<512x128xf32>
    %7 = arith.addf %3, %6 : vector<512x128xf32>
    %cst_5 = arith.constant 5.000000e-01 : f32
    %8 = vector.broadcast %cst_5 : f32 to vector<512x128xf32>
    %9 = arith.mulf %8, %7 : vector<512x128xf32>
    %cst_6 = arith.constant 0.707106769 : f32
    %10 = vector.broadcast %cst_6 : f32 to vector<512x128xf32>
    %11 = arith.mulf %7, %10 : vector<512x128xf32>
    %12 = math.erf %11 : vector<512x128xf32>
    %cst_7 = arith.constant 1.000000e+00 : f32
    %13 = vector.broadcast %cst_7 : f32 to vector<512x128xf32>
    %14 = arith.addf %13, %12 : vector<512x128xf32>
    %15 = arith.mulf %9, %14 : vector<512x128xf32>
    %c0_8 = arith.constant 0 : index
    %c0_9 = arith.constant 0 : index
    %c0_10 = arith.constant 0 : index
    %16 = vector.load %arg5[%c0_8, %c0_9, %c0_10] : memref<1x512x128xf32, #tpu.memory_space<vmem>>, vector<1x512x128xf32>
    %17 = vector.shape_cast %16 : vector<1x512x128xf32> to vector<512x128xf32>
    %18 = vector.shape_cast %15 : vector<512x128xf32> to vector<1x512x128xf32>
    tpu.vector_store %arg5[%c0_8, %c0_9, %c0_10], %18 {strides = array<i32>} : memref<1x512x128xf32, #tpu.memory_space<vmem>>, vector<1x512x128xf32>,
    return
  }
  func.func @transform_0(%arg0: i32, %arg1: i32) -> (i32, i32, i32) {
    %c0_i32 = arith.constant 0 : i32
    %c0_i32_0 = arith.constant 0 : i32
    return %arg0, %arg1, %c0_i32 : i32, i32, i32
  }
  func.func @transform_1(%arg0: i32, %arg1: i32) -> (i32, i32) {
    %c0_i32 = arith.constant 0 : i32
    %c0_i32_0 = arith.constant 0 : i32
    %c0_i32_1 = arith.constant 0 : i32
    return %c0_i32, %c0_i32_0 : i32, i32
  }
  func.func @transform_2(%arg0: i32, %arg1: i32) -> (i32, i32) {
    %c0_i32 = arith.constant 0 : i32
    %c0_i32_0 = arith.constant 0 : i32
    %c0_i32_1 = arith.constant 0 : i32
    return %c0_i32, %c0_i32_0 : i32, i32
  }
  func.func @transform_3(%arg0: i32, %arg1: i32) -> (i32, i32, i32) {
    %c0_i32 = arith.constant 0 : i32
    %c0_i32_0 = arith.constant 0 : i32
    return %arg0, %arg1, %c0_i32 : i32, i32, i32
  }
}

</mosaic_0001>

<bundles_post_ra>
// kernel: readout_forward.1
= control target key start
LH: loop header
LB: loop body
LE: loop exit
PB: predicated region body
PF: predicated region fallthrough
CT: control target
= control target key end

     0   :  { %8 = vsyncpa [#allocation3], 0  ;;  %s6804_s0 = inlined_call_operand.vmem [shape: bf16[2,512,128], index: 0, kind: input, shape index: {}]   ;;  %s6805_s1 = inlined_call_operand.vmem [shape: f32[2,128], index: 1, kind: input, shape index: {}]   ;;  %s6806_s2 = inlined_call_operand.vmem [shape: bf16[128,128], index: 2, kind: input, shape index: {}]   ;;  %s6807_s3 = inlined_call_operand.hbm [shape: f32[2,512,128], index: 3, kind: output, shape index: {}]  }
   0x1   :  { %10 = vsyncpa [#allocation3 + $0x1], 0  ;;  %s4266_s12 = smov 0   ;;  %s4268_s13 = smov 0  }
   0x2   :  { %s4270_s14 = smov 0   ;;  %s4272_s15 = smov 0  }
   0x3   :  { %s4274_s16 = smov 0   ;;  %s4276_s17 = smov 0  }
   0x4 LB: > { %s3670_s18 = sadd.s32 4294967295, %s4242_s17   ;;  %s3671_s19 = sadd.s32 4294967294, %s4242_s17   ;;  %s4242_s17 = sphi %s4276_s17, %s16_s17   ;;  %s4238_s16 = sphi %s4274_s16, %s6896_s16   ;;  %s4234_s15 = sphi %s4272_s15, %s6895_s15   ;;  %s4230_s14 = sphi %s4270_s14, %s6894_s14   ;;  %s4226_s13 = sphi %s4268_s13, %s6893_s13   ;;  %s4222_s12 = sphi %s4266_s12, %s6892_s12  }
   0x5   : > { %s28_s20 = sadd.s32 1, %s4238_s16  ;;  %s107_s21 = sadd.s32 1, %s4230_s14 }
   0x6   : > { %p30_p0 = scmp.ge.s32.totalorder %s28_s20, 2  ;;  %p117_p1 = scmp.ne.s32.totalorder %s4230_s14, %s4226_s13 }
   0x7   : > { %p118_p2 = scmp.eq.s32.totalorder %s3670_s18, 1  ;;  %p123_p3 = scmp.ne.s32.totalorder %s4226_s13, %s4222_s12 }
   0x8   : > { %s6898_s20 = smov (%p30_p0, %s28_s20), 0  ;;  %p124_p5 = scmp.eq.s32.totalorder %s3671_s19, 1 }
   0x9   : > { %p4306_p4 = por %p118_p2, %p117_p1  ;;  %s102_s23 = ssub.s32 %s4238_s16, %s6898_s20 }
   0xa   : > { %p3674_p6 = scmp.ge.s32.totalorder %s4242_s17, 1  ;;  %p105_p7 = scmp.eq.s32.totalorder %s102_s23, 0 }
   0xb   : > { %p4313_p8 = por %p124_p5, %p123_p3  ;;  %p161_p9 = scmp.lt.s32.totalorder %s4242_s17, 3 }
   0xc   : > { %s4319_s25 = scalar_select %p105_p7, %s4230_s14, %s107_s21  }
   0xd   : > { %p162_p10 = pnand %p3674_p6, %p161_p9 }
   0xe   : > { %p190_p11 = scmp.lt.s32.totalorder (!%p162_p10), %s4234_s15, 1  ;;  %s4344_s19 = scalar_lea.vmem (!%p162_p10), %s6805_s1, %s4234_s15 }
   0xf   : > { %165 = sbr.rel (%p162_p10) target bundleno = 898 (0x382), region = 32  ;;  %s186_s6 = sand.u32 (!%p162_p10), 1, %s4226_s13  }
  0x10   : > { %s3675_s7 = sshll.u32 (!%p162_p10), %s186_s6, 9  ;;  %s3948_s9 = sshll.u32 (!%p162_p10), %s4234_s15, 9 }
  0x11   : > { %s4577_s8 = scalar_lea.vmem (!%p162_p10), [#allocation2], %s3675_s7  ;;  %s3586_s18 = scalar_lea.hbm (!%p162_p10), %s6807_s3, %s3948_s9 }
  0x12   : > { %s4184_s29 = scalar_lea.hbm (!%p162_p10), %s6807_s3, 1024 }
  0x14   : > { %v3947_v0 = vld [vmem:[%s6806_s2 + $0x38] sm:$0xff]  ;;  %v3946_v1 = vld [vmem:[%s6806_s2 + $0x30] sm:$0xff]  ;;  %v3945_v2 = vld [vmem:[%s6806_s2 + $0x28] sm:$0xff]  ;;  %s191_s21 = scalar_select %p190_p11, %s4234_s15, 1 }
  0x15   : > { %523 = vmatpush.bf16.msra.mxu0 %v3947_v0  ;;  %3949 = vmatpush.bf16.msra.mxu1 %v3947_v0  ;;  %v3944_v3 = vld [vmem:[%s6806_s2 + $0x20] sm:$0xff]  ;;  %v3943_v4 = vld [vmem:[%s6806_s2 + $0x18] sm:$0xff]  ;;  %v3942_v5 = vld [vmem:[%s6806_s2 + $0x10] sm:$0xff]  ;;  %s3573_s15 = scalar_lea.sflag [#allocation3], %s186_s6 }
  0x16   : > { %3950 = vmatpush.bf16.msra.mxu2 %v3947_v0  ;;  %3951 = vmatpush.bf16.msra.mxu3 %v3947_v0  ;;  %v3941_v6 = vld [vmem:[%s6806_s2 + $0x8] sm:$0xff]  ;;  %s3907_s27 = sshll.u32 %s191_s21, 8  ;;  %v3940_v7 = vld [vmem:[%s6806_s2] sm:$0xff]  ;;  %s3589_s21 = sshll.u32 %s3586_s18, 4  ;;  %s3590_s21 = int_to_ptr.hbm [resolvable:$true] %s3589_s21 }
  0x17   : > { %s4356_s5 = scalar_lea.vmem %s6804_s0, %s3907_s27  ;;  %v4391_v40 = vld [vmem:[%s4344_s19] ss:$0 sm:$0xff]  ;;  %s4178_s23 = sshra.s32 %s3590_s21, 4  ;;  %s4179_s23 = int_to_ptr.hbm [resolvable:$true] %s4178_s23 }
  0x18   : > { %v3908_v8 = vld [vmem:[%s4356_s5] sm:$0xff]  ;;  %v3909_v12 = vld [vmem:[%s4356_s5 + $0x8] sm:$0xff]  ;;  %v3910_v16 = vld [vmem:[%s4356_s5 + $0x10] sm:$0xff]  ;;  %s4180_s26 = scalar_lea.hbm %s4179_s23, 512  ;;  %p4185_p1 = scmp.lt.s32.totalorder %s4179_s23, %s6807_s3 }
  0x19   : > { %524 = vmatpush.bf16.msra.mxu0 %v3946_v1  ;;  %3952 = vmatpush.bf16.msra.mxu1 %v3946_v1  ;;  %v3916_v9 = vld [vmem:[%s4356_s5 + $0x40] sm:$0xff]  ;;  %v3917_v13 = vld [vmem:[%s4356_s5 + $0x48] sm:$0xff]  ;;  %v3918_v17 = vld [vmem:[%s4356_s5 + $0x50] sm:$0xff]  ;;  %p4181_p12 = scmp.ne.s32.totalorder %s4179_s23, %s4180_s26  ;;  %p4186_p2 = scmp.lt.s32.totalorder %s4184_s29, %s4180_s26 }
  0x1a   : > { %3953 = vmatpush.bf16.msra.mxu2 %v3946_v1  ;;  %3954 = vmatpush.bf16.msra.mxu3 %v3946_v1  ;;  %v3924_v10 = vld [vmem:[%s4356_s5 + $0x80] sm:$0xff]  ;;  %v3925_v14 = vld [vmem:[%s4356_s5 + $0x88] sm:$0xff]  ;;  %v3926_v18 = vld [vmem:[%s4356_s5 + $0x90] sm:$0xff] }
  0x1b   : > { %v3932_v11 = vld [vmem:[%s4356_s5 + $0xc0] sm:$0xff]  ;;  %v3933_v15 = vld [vmem:[%s4356_s5 + $0xc8] sm:$0xff]  ;;  %v3934_v19 = vld [vmem:[%s4356_s5 + $0xd0] sm:$0xff]  ;;  %p4182_p13 = pnand %p4181_p12, %p4306_p4  ;;  %p4187_p3 = por %p4186_p2, %p4185_p1 }
  0x1c   : > { %v3911_v20 = vld [vmem:[%s4356_s5 + $0x18] sm:$0xff]  ;;  %v3912_v24 = vld [vmem:[%s4356_s5 + $0x20] sm:$0xff]  ;;  %v3913_v28 = vld [vmem:[%s4356_s5 + $0x28] sm:$0xff] }
  0x1d   : > { %525 = vmatpush.bf16.msra.mxu0 %v3945_v2  ;;  %3955 = vmatpush.bf16.msra.mxu1 %v3945_v2  ;;  %v3919_v21 = vld [vmem:[%s4356_s5 + $0x58] sm:$0xff]  ;;  %v3920_v25 = vld [vmem:[%s4356_s5 + $0x60] sm:$0xff]  ;;  %v3921_v29 = vld [vmem:[%s4356_s5 + $0x68] sm:$0xff]  ;;  %p4183_p0 = pneg %p4182_p13 }
  0x1e   : > { %3956 = vmatpush.bf16.msra.mxu2 %v3945_v2  ;;  %3957 = vmatpush.bf16.msra.mxu3 %v3945_v2  ;;  %v3927_v22 = vld [vmem:[%s4356_s5 + $0x98] sm:$0xff]  ;;  %v3928_v26 = vld [vmem:[%s4356_s5 + $0xa0] sm:$0xff]  ;;  %v3929_v30 = vld [vmem:[%s4356_s5 + $0xa8] sm:$0xff] }
  0x1f   : > { %v3935_v23 = vld [vmem:[%s4356_s5 + $0xd8] sm:$0xff]  ;;  %v3936_v27 = vld [vmem:[%s4356_s5 + $0xe0] sm:$0xff]  ;;  %v3937_v31 = vld [vmem:[%s4356_s5 + $0xe8] sm:$0xff]  ;;  %p4188_p5 = pnand %p4187_p3, %p4183_p0 }
  0x20   : > { %v3914_v32 = vld [vmem:[%s4356_s5 + $0x30] sm:$0xff]  ;;  %v3915_v36 = vld [vmem:[%s4356_s5 + $0x38] sm:$0xff] }
  0x21   : > { %526 = vmatpush.bf16.msra.mxu0 %v3944_v3  ;;  %3958 = vmatpush.bf16.msra.mxu1 %v3944_v3  ;;  %v3922_v33 = vld [vmem:[%s4356_s5 + $0x70] sm:$0xff]  ;;  %v3923_v37 = vld [vmem:[%s4356_s5 + $0x78] sm:$0xff] }
  0x22   : > { %3959 = vmatpush.bf16.msra.mxu2 %v3944_v3  ;;  %3960 = vmatpush.bf16.msra.mxu3 %v3944_v3  ;;  %v3930_v34 = vld [vmem:[%s4356_s5 + $0xb0] sm:$0xff]  ;;  %v3931_v38 = vld [vmem:[%s4356_s5 + $0xb8] sm:$0xff] }
  0x23   : > { %v3938_v35 = vld [vmem:[%s4356_s5 + $0xf0] sm:$0xff]  ;;  %v3939_v39 = vld [vmem:[%s4356_s5 + $0xf8] sm:$0xff] }
  0x25   : > { %527 = vmatpush.bf16.msra.mxu0 %v3943_v4  ;;  %3961 = vmatpush.bf16.msra.mxu1 %v3943_v4 }
  0x26   : > { %3962 = vmatpush.bf16.msra.mxu2 %v3943_v4  ;;  %3963 = vmatpush.bf16.msra.mxu3 %v3943_v4 }
  0x29   : > { %528 = vmatpush.bf16.msra.mxu0 %v3942_v5  ;;  %3964 = vmatpush.bf16.msra.mxu1 %v3942_v5 }
  0x2a   : > { %3965 = vmatpush.bf16.msra.mxu2 %v3942_v5  ;;  %3966 = vmatpush.bf16.msra.mxu3 %v3942_v5 }
  0x2d   : > { %529 = vmatpush.bf16.msra.mxu0 %v3941_v6  ;;  %3967 = vmatpush.bf16.msra.mxu1 %v3941_v6 }
  0x2e   : > { %3968 = vmatpush.bf16.msra.mxu2 %v3941_v6  ;;  %3969 = vmatpush.bf16.msra.mxu3 %v3941_v6 }
  0x31   : > { %530 = vmatpush.bf16.msra.mxu0 %v3940_v7  ;;  %3970 = vmatpush.bf16.msra.mxu1 %v3940_v7 }
  0x32   : > { %3971 = vmatpush.bf16.msra.mxu2 %v3940_v7  ;;  %3972 = vmatpush.bf16.msra.mxu3 %v3940_v7 }
  0x34   : > { %531 = vmatmul.bf16.vlgmr.msra.gmra.mxu0 %v3908_v8  ;;  %571 = vmatmul.bf16.vlgmr.msra.gmra.mxu1 %v3916_v9 }
  0x35   : > { %611 = vmatmul.bf16.vlgmr.msra.gmra.mxu2 %v3924_v10  ;;  %651 = vmatmul.bf16.vlgmr.msra.gmra.mxu3 %v3932_v11 }
  0x44   : > { %536 = vmatmul.bf16.gmra.mxu0 %v3909_v12  ;;  %576 = vmatmul.bf16.gmra.mxu1 %v3917_v13 }
  0x45   : > { %616 = vmatmul.bf16.gmra.mxu2 %v3925_v14  ;;  %656 = vmatmul.bf16.gmra.mxu3 %v3933_v15 }
  0x54   : > { %541 = vmatmul.bf16.gmra.mxu0 %v3910_v16  ;;  %581 = vmatmul.bf16.gmra.mxu1 %v3918_v17 }
  0x55   : > { %621 = vmatmul.bf16.gmra.mxu2 %v3926_v18  ;;  %661 = vmatmul.bf16.gmra.mxu3 %v3934_v19 }
  0x64   : > { %546 = vmatmul.bf16.gmra.mxu0 %v3911_v20  ;;  %586 = vmatmul.bf16.gmra.mxu1 %v3919_v21 }
  0x65   : > { %626 = vmatmul.bf16.gmra.mxu2 %v3927_v22  ;;  %666 = vmatmul.bf16.gmra.mxu3 %v3935_v23 }
  0x74   : > { %551 = vmatmul.bf16.gmra.mxu0 %v3912_v24  ;;  %591 = vmatmul.bf16.gmra.mxu1 %v3920_v25 }
  0x75   : > { %631 = vmatmul.bf16.gmra.mxu2 %v3928_v26  ;;  %671 = vmatmul.bf16.gmra.mxu3 %v3936_v27 }
  0x84   : > { %556 = vmatmul.bf16.gmra.mxu0 %v3913_v28  ;;  %596 = vmatmul.bf16.gmra.mxu1 %v3921_v29 }
  0x85   : > { %636 = vmatmul.bf16.gmra.mxu2 %v3929_v30  ;;  %676 = vmatmul.bf16.gmra.mxu3 %v3937_v31 }
  0x94   : > { %561 = vmatmul.bf16.gmra.mxu0 %v3914_v32  ;;  %601 = vmatmul.bf16.gmra.mxu1 %v3922_v33 }
  0x95   : > { %641 = vmatmul.bf16.gmra.mxu2 %v3930_v34  ;;  %681 = vmatmul.bf16.gmra.mxu3 %v3938_v35 }
  0xa4   : > { %566 = vmatmul.bf16.gmra.mxu0 %v3915_v36  ;;  %606 = vmatmul.bf16.gmra.mxu1 %v3923_v37 }
  0xa5   : > { %646 = vmatmul.bf16.gmra.mxu2 %v3931_v38  ;;  %686 = vmatmul.bf16.gmra.mxu3 %v3939_v39 }
  0xb1   : > { %v532_v41 = vpop.f32.mrf.mxu0  ;;  %v572_v42 = vpop.f32.mrf.mxu1 }
  0xb2   : > { %v533_v43 = vadd.f32 %v4391_v40, %v532_v41  ;;  %v4395_v44 = vadd.f32 %v4391_v40, %v572_v42 }
  0xb4   : > { %v4397_v45 = vmul.f32 0.70710677, %v533_v43  ;;  %v4400_v46 = vmul.f32 0.70710677, %v4395_v44  ;;  %v4428_v3 = vmul.f32 0.5, %v533_v43 }
  0xb6   : > { %v820_v47 = vmul.f32 %v4397_v45, %v4397_v45  ;;  %v1460_v48 = vmul.f32 %v4400_v46, %v4400_v46 }
  0xb8   : > { %v4406_v49 = vmin.f32 %v820_v47, 16.0  ;;  %v4408_v50 = vmin.f32 %v1460_v48, 16.0  ;;  %v612_v51 = vpop.f32.mrf.mxu2  ;;  %v652_v52 = vpop.f32.mrf.mxu3 }
  0xb9   : > { %v4411_v53 = vadd.f32 %v4391_v40, %v612_v51  ;;  %v4414_v54 = vadd.f32 %v4391_v40, %v652_v52  ;;  %v534_v63 = vpop.f32.mrf.mxu0 }
  0xba   : > { %v822_v55 = vmul.f32 2.1237322e-06, %v4406_v49  ;;  %v833_v56 = vmul.f32 3.8918573e-05, %v4406_v49  ;;  %v1462_v57 = vmul.f32 2.1237322e-06, %v4408_v50  ;;  %v535_v10 = vadd.f32 %v4391_v40, %v534_v63 }
  0xbb   : > { %v1473_v58 = vmul.f32 3.8918573e-05, %v4408_v50  ;;  %v4421_v59 = vmul.f32 0.70710677, %v4411_v53  ;;  %v4426_v2 = vmul.f32 0.70710677, %v4414_v54 }
  0xbc   : > { %v823_v60 = vadd.f32 0.00028619796, %v822_v55  ;;  %v834_v61 = vadd.f32 0.001143296, %v833_v56  ;;  %v1463_v62 = vadd.f32 0.00028619796, %v1462_v57  ;;  %v574_v55 = vpop.f32.mrf.mxu1 }
  0xbd   : > { %v1474_v0 = vadd.f32 0.001143296, %v1473_v58  ;;  %v2100_v1 = vmul.f32 %v4421_v59, %v4421_v59  ;;  %v2740_v9 = vmul.f32 %v4426_v2, %v4426_v2  ;;  %v4447_v24 = vmul.f32 0.70710677, %v535_v10 }
  0xbe   : > { %v824_v4 = vmul.f32 %v823_v60, %v4406_v49  ;;  %v835_v5 = vmul.f32 %v834_v61, %v4406_v49  ;;  %v1464_v6 = vmul.f32 %v1463_v62, %v4408_v50 }
  0xbf   : > { %v1475_v7 = vmul.f32 %v1474_v0, %v4408_v50  ;;  %v4434_v8 = vmin.f32 %v2100_v1, 16.0  ;;  %v4444_v20 = vmin.f32 %v2740_v9, 16.0 }
  0xc0   : > { %v825_v11 = vadd.f32 0.0036580483, %v824_v4  ;;  %v836_v12 = vadd.f32 0.014752088, %v835_v5  ;;  %v1465_v13 = vadd.f32 0.0036580483, %v1464_v6  ;;  %v860_v5 = vmul.f32 %v4447_v24, %v4447_v24 }
  0xc1   : > { %v1476_v14 = vadd.f32 0.014752088, %v1475_v7  ;;  %v2102_v15 = vmul.f32 2.1237322e-06, %v4434_v8  ;;  %v2113_v16 = vmul.f32 3.8918573e-05, %v4434_v8  ;;  %v575_v6 = vadd.f32 %v4391_v40, %v574_v55 }
  0xc2   : > { %v826_v17 = vmul.f32 %v825_v11, %v4406_v49  ;;  %v837_v18 = vmul.f32 %v836_v12, %v4406_v49  ;;  %v1466_v19 = vmul.f32 %v1465_v13, %v4408_v50  ;;  %v2742_v31 = vmul.f32 2.1237322e-06, %v4444_v20  ;;  %v614_v13 = vpop.f32.mrf.mxu2 }
  0xc3   : > { %v1477_v21 = vmul.f32 %v1476_v14, %v4408_v50  ;;  %v2103_v22 = vadd.f32 0.00028619796, %v2102_v15  ;;  %v2114_v23 = vadd.f32 0.001143296, %v2113_v16  ;;  %v2753_v35 = vmul.f32 3.8918573e-05, %v4444_v20 }
  0xc4   : > { %v827_v25 = vadd.f32 0.05243302, %v826_v17  ;;  %v838_v26 = vadd.f32 0.112945676, %v837_v18  ;;  %v1467_v27 = vadd.f32 0.05243302, %v1466_v19 }
  0xc5   : > { %v1478_v28 = vadd.f32 0.112945676, %v1477_v21  ;;  %v2104_v29 = vmul.f32 %v2103_v22, %v4434_v8  ;;  %v2115_v30 = vmul.f32 %v2114_v23, %v4434_v8  ;;  %v2743_v39 = vadd.f32 0.00028619796, %v2742_v31 }
  0xc6   : > { %v828_v32 = vmul.f32 %v827_v25, %v4406_v49  ;;  %v839_v33 = vmul.f32 %v838_v26, %v4406_v49  ;;  %v1468_v34 = vmul.f32 %v1467_v27, %v4408_v50  ;;  %v2754_v60 = vadd.f32 0.001143296, %v2753_v35 }
  0xc7   : > { %v1479_v36 = vmul.f32 %v1478_v28, %v4408_v50  ;;  %v2105_v37 = vadd.f32 0.0036580483, %v2104_v29  ;;  %v2116_v38 = vadd.f32 0.014752088, %v2115_v30  ;;  %v2744_v52 = vmul.f32 %v2743_v39, %v4444_v20 }
  0xc8   : > { %v829_v41 = vadd.f32 0.18741608, %v828_v32  ;;  %v840_v42 = vadd.f32 0.4994258, %v839_v33  ;;  %v1469_v43 = vadd.f32 0.18741608, %v1468_v34  ;;  %v4495_v25 = vadd.f32 %v4391_v40, %v614_v13 }
  0xc9   : > { %v1480_v47 = vadd.f32 0.4994258, %v1479_v36  ;;  %v2106_v48 = vmul.f32 %v2105_v37, %v4434_v8  ;;  %v2117_v51 = vmul.f32 %v2116_v38, %v4434_v8  ;;  %v2745_v0 = vadd.f32 0.0036580483, %v2744_v52 }
  0xca   : > { %v830_v56 = vmul.f32 %v829_v41, %v4406_v49  ;;  %v841_v57 = vmul.f32 %v840_v42, %v4406_v49  ;;  %v1470_v58 = vmul.f32 %v1469_v43, %v4408_v50  ;;  %v4467_v4 = vmul.f32 0.5, %v4395_v44 }
  0xcb   : > { %v1481_v61 = vmul.f32 %v1480_v47, %v4408_v50  ;;  %v2107_v62 = vadd.f32 0.05243302, %v2106_v48  ;;  %v2118_v63 = vadd.f32 0.112945676, %v2117_v51  ;;  %v2746_v50 = vmul.f32 %v2745_v0, %v4444_v20 }
  0xcc   : > { %v4464_v1 = vadd.f32 1.0, %v841_v57  ;;  %v831_v11 = vadd.f32 1.1283791, %v830_v56  ;;  %v4479_v12 = vmul.f32 0.5, %v4411_v53  ;;  %v2755_v44 = vmul.f32 %v2754_v60, %v4444_v20 }
  0xcd   : > { %v4472_v7 = vadd.f32 1.0, %v1481_v61  ;;  %v2108_v49 = vmul.f32 %v2107_v62, %v4434_v8  ;;  %v2119_v9 = vmul.f32 %v2118_v63, %v4434_v8  ;;  %v1471_v14 = vadd.f32 1.1283791, %v1470_v58 }
  0xce   : > { %4031 = vrcp.f32 %v4464_v1  ;;  %v4484_v15 = vmul.f32 0.5, %v4414_v54  ;;  %v4486_v16 = vmul.f32 0.5, %v535_v10  ;;  %v854_v17 = vand.u32 2147483648, %v4464_v1 }
  0xcf   : > { %4033 = vrcp.f32 %v4472_v7  ;;  %v2109_v18 = vadd.f32 0.18741608, %v2108_v49  ;;  %v4489_v19 = vmin.f32 %v860_v5, 16.0  ;;  %v4491_v21 = vmul.f32 0.5, %v575_v6 }
  0xd0   : > { %v852_v53 = vand.u32 2147483647, %v4464_v1  ;;  %v2120_v22 = vadd.f32 0.4994258, %v2119_v9  ;;  %v2747_v23 = vadd.f32 0.05243302, %v2746_v50  ;;  %v832_v26 = vmul.f32 %v831_v11, %v4397_v45 }
  0xd1   : > { %v1492_v54 = vand.u32 2147483647, %v4472_v7  ;;  %v2110_v10 = vmul.f32 %v2109_v18, %v4434_v8  ;;  %v2756_v27 = vadd.f32 0.014752088, %v2755_v44  ;;  %vm848_vm0 = vweird.f32 %v4464_v1 }
  0xd2   : > { %v1472_v28 = vmul.f32 %v1471_v14, %v4400_v46  ;;  %v1494_v29 = vand.u32 2147483648, %v4472_v7  ;;  %v2121_v30 = vmul.f32 %v2120_v22, %v4434_v8  ;;  %v855_v32 = vor.u32 1.1754944e-38, %v854_v17 }
  0xd3   : > { %vm1488_vm1 = vweird.f32 %v4472_v7  ;;  %v2748_v33 = vmul.f32 %v2747_v23, %v4444_v20  ;;  %v2757_v45 = vmul.f32 %v2756_v27, %v4444_v20  ;;  %vm4508_vm2 = vcmp.eq.f32.partialorder %v852_v53, 8.507059e+37 }
  0xd4   : > { %v4032_v31 = vpop.eup %4031  ;;  %v4512_v46 = vadd.f32 1.0, %v2121_v30  ;;  %v862_v37 = vmul.f32 2.1237322e-06, %v4489_v19  ;;  %v873_v8 = vmul.f32 3.8918573e-05, %v4489_v19  ;;  %vm4517_vm3 = vcmp.eq.f32.partialorder %v1492_v54, 8.507059e+37 }
  0xd5   : > { %v4034_v34 = vpop.eup %4033  ;;  %v844_v35 = vmul.f32 %v4032_v31, %v4464_v1  ;;  %v2111_v41 = vadd.f32 1.1283791, %v2110_v10  ;;  %v2758_v42 = vadd.f32 0.112945676, %v2757_v45  ;;  %v1495_v47 = vor.u32 1.1754944e-38, %v1494_v29 }
  0xd6   : > { %v1484_v38 = vmul.f32 %v4034_v34, %v4472_v7  ;;  %4035 = vrcp.f32 %v4512_v46  ;;  %v4522_v48 = vmul.f32 0.70710677, %v575_v6  ;;  %vm849_vm4 = vweird.f32 %v4032_v31 }
  0xd7   : > { %v845_v43 = vsub.f32 1.0, %v844_v35  ;;  %v2759_v52 = vmul.f32 %v2758_v42, %v4444_v20  ;;  %v4526_v55 = vmul.f32 0.70710677, %v4495_v25  ;;  %v2749_v57 = vadd.f32 0.18741608, %v2748_v33  ;;  %vm850_vm6 = vmor %vm848_vm0, %vm849_vm4 }
  0xd8   : > { %v1485_v51 = vsub.f32 1.0, %v1484_v38  ;;  %v863_v58 = vadd.f32 0.00028619796, %v862_v37  ;;  %v874_v60 = vadd.f32 0.001143296, %v873_v8  ;;  %vm1489_vm5 = vweird.f32 %v4034_v34 }
  0xd9   : > { %v846_v56 = vmul.f32 %v4032_v31, %v845_v43  ;;  %v4529_v62 = vmul.f32 %v2111_v41, %v4421_v59  ;;  %v2760_v63 = vadd.f32 0.4994258, %v2759_v52  ;;  %v1500_v49 = vmul.f32 %v4522_v48, %v4522_v48  ;;  %vm1490_vm8 = vmor %vm1488_vm1, %vm1489_vm5 }
  0xda   : > { %v1486_v61 = vmul.f32 %v4034_v34, %v1485_v51  ;;  %v864_v5 = vmul.f32 %v863_v58, %v4489_v19  ;;  %v875_v6 = vmul.f32 %v874_v60, %v4489_v19  ;;  %vm2128_vm7 = vweird.f32 %v4512_v46 }
  0xdb   : > { %v847_v0 = vadd.f32 %v4032_v31, %v846_v56  ;;  %v2132_v59 = vand.u32 2147483647, %v4512_v46  ;;  %v2761_v50 = vmul.f32 %v2760_v63, %v4444_v20  ;;  %v4543_v17 = vmin.f32 %v1500_v49, 16.0 }
  0xdc   : > { %v1487_v9 = vadd.f32 %v4034_v34, %v1486_v61  ;;  %v4036_v11 = vpop.eup %4035  ;;  %v865_v13 = vadd.f32 0.0036580483, %v864_v5  ;;  %v876_v14 = vadd.f32 0.014752088, %v875_v6  ;;  %v2134_v22 = vand.u32 2147483648, %v4512_v46 }
  0xdd   : > { %v851_v44 = vsel %vm850_vm6, %v4032_v31, %v847_v0  ;;  %v2124_v53 = vmul.f32 %v4036_v11, %v4512_v46  ;;  %v4552_v7 = vadd.f32 1.0, %v2761_v50  ;;  %v1502_v31 = vmul.f32 2.1237322e-06, %v4543_v17 }
  0xde   : > { %v856_v1 = vsel %vm4508_vm2, %v855_v32, %v851_v44  ;;  %v1491_v18 = vsel %vm1490_vm8, %v4034_v34, %v1487_v9  ;;  %v866_v10 = vmul.f32 %v865_v13, %v4489_v19  ;;  %v877_v30 = vmul.f32 %v876_v14, %v4489_v19 }
  0xdf   : > { %v857_v23 = vmul.f32 %v856_v1, %v832_v26  ;;  %v1496_v54 = vsel %vm4517_vm3, %v1495_v47, %v1491_v18  ;;  %v2125_v29 = vsub.f32 1.0, %v2124_v53  ;;  %v2750_v33 = vmul.f32 %v2749_v57, %v4444_v20 }
  0xe0   : > { %v1497_v27 = vmul.f32 %v1496_v54, %v1472_v28  ;;  %4037 = vrcp.f32 %v4552_v7  ;;  %v2140_v26 = vmul.f32 %v4526_v55, %v4526_v55  ;;  %vm2129_vm9 = vweird.f32 %v4036_v11 }
  0xe1   : > { %v3838_v32 = vclamps-f32 %v857_v23, 1.0  ;;  %v2126_v34 = vmul.f32 %v4036_v11, %v2125_v29  ;;  %v867_v35 = vadd.f32 0.05243302, %v866_v10  ;;  %vm4563_vm10 = vcmp.eq.f32.partialorder %v2132_v59, 8.507059e+37  ;;  %vm2130_vm11 = vmor %vm2128_vm7, %vm2129_vm9 }
  0xe2   : > { %v3854_v45 = vclamps-f32 %v1497_v27, 1.0  ;;  %v878_v37 = vadd.f32 0.112945676, %v877_v30  ;;  %v1503_v8 = vadd.f32 0.00028619796, %v1502_v31  ;;  %v2135_v41 = vor.u32 1.1754944e-38, %v2134_v22 }
  0xe3   : > { %v3380_v28 = vadd.f32 1.0, %v3838_v32  ;;  %v2127_v39 = vadd.f32 %v4036_v11, %v2126_v34  ;;  %v868_v20 = vmul.f32 %v867_v35, %v4489_v19  ;;  %v1513_v51 = vmul.f32 3.8918573e-05, %v4543_v17 }
  0xe4   : > { %v3396_v38 = vadd.f32 1.0, %v3854_v45  ;;  %v879_v43 = vmul.f32 %v878_v37, %v4489_v19  ;;  %v1504_v47 = vmul.f32 %v1503_v8, %v4543_v17  ;;  %v4575_v58 = vmin.f32 %v2140_v26, 16.0 }
  0xe5   : > { %v3444_v42 = vmul.f32 %v3380_v28, %v4428_v3  ;;  %v2131_v56 = vsel %vm2130_vm11, %v4036_v11, %v2127_v39  ;;  %v869_v57 = vadd.f32 0.18741608, %v868_v20  ;;  %v1514_v63 = vadd.f32 0.001143296, %v1513_v51 }
  0xe6   : > { %v3460_v52 = vmul.f32 %v3396_v38, %v4467_v4  ;;  %v4038_v60 = vpop.eup %4037  ;;  %v2136_v3 = vsel %vm4563_vm10, %v2135_v41, %v2131_v56  ;;  %v880_v46 = vadd.f32 0.4994258, %v879_v43  ;;  %v1505_v61 = vadd.f32 0.0036580483, %v1504_v47  ;;  %v537_v38 = vpop.f32.mrf.mxu0 }
  0xe7   : > { %3508 = vst [vmem:[%s4577_s8] sm:$0xff] %v3444_v42  ;;  %v2137_v0 = vmul.f32 %v2136_v3, %v4529_v62  ;;  %v2751_v4 = vadd.f32 1.1283791, %v2750_v33  ;;  %v2764_v5 = vmul.f32 %v4038_v60, %v4552_v7  ;;  %v870_v6 = vmul.f32 %v869_v57, %v4489_v19  ;;  %v654_v62 = vpop.f32.mrf.mxu3 }
  0xe8   : > { %3524 = vst [vmem:[%s4577_s8 + $0x80] sm:$0xff] %v3460_v52  ;;  %v881_v49 = vmul.f32 %v880_v46, %v4489_v19  ;;  %v1506_v9 = vmul.f32 %v1505_v61, %v4543_v17  ;;  %v1515_v59 = vmul.f32 %v1514_v63, %v4543_v17  ;;  %v2142_v50 = vmul.f32 2.1237322e-06, %v4575_v58 }
  0xe9   : > { %v3870_v11 = vclamps-f32 %v2137_v0, 1.0  ;;  %v2765_v44 = vsub.f32 1.0, %v2764_v5  ;;  %v2772_v13 = vand.u32 2147483647, %v4552_v7  ;;  %v2153_v14 = vmul.f32 3.8918573e-05, %v4575_v58 }
  0xea   : > { %v2774_v1 = vand.u32 2147483648, %v4552_v7  ;;  %v4593_v18 = vadd.f32 1.0, %v881_v49  ;;  %v1507_v53 = vadd.f32 0.05243302, %v1506_v9  ;;  %v1516_v22 = vadd.f32 0.014752088, %v1515_v59 }
  0xeb   : > { %v3412_v19 = vadd.f32 1.0, %v3870_v11  ;;  %v2766_v23 = vmul.f32 %v4038_v60, %v2765_v44  ;;  %vm2769_vm12 = vweird.f32 %v4038_v60  ;;  %v2143_v54 = vadd.f32 0.00028619796, %v2142_v50 }
  0xec   : > { %vm2768_vm13 = vweird.f32 %v4552_v7  ;;  %v871_v10 = vadd.f32 1.1283791, %v870_v6  ;;  %4039 = vrcp.f32 %v4593_v18  ;;  %v4598_v27 = vadd.f32 %v4391_v40, %v654_v62 }
  0xed   : > { %v3476_v29 = vmul.f32 %v3412_v19, %v4479_v12  ;;  %v2767_v30 = vadd.f32 %v4038_v60, %v2766_v23  ;;  %v1508_v31 = vmul.f32 %v1507_v53, %v4543_v17  ;;  %v1517_v32 = vmul.f32 %v1516_v22, %v4543_v17  ;;  %vm2770_vm14 = vmor %vm2768_vm13, %vm2769_vm12 }
  0xee   : > { %v2752_v33 = vmul.f32 %v2751_v4, %v4426_v2  ;;  %v2775_v26 = vor.u32 1.1754944e-38, %v2774_v1  ;;  %v2144_v45 = vmul.f32 %v2143_v54, %v4575_v58  ;;  %v2154_v7 = vadd.f32 0.001143296, %v2153_v14 }
  0xef   : > { %3540 = vst [vmem:[%s4577_s8 + $0x100] sm:$0xff] %v3476_v29  ;;  %v2771_v34 = vsel %vm2770_vm14, %v4038_v60, %v2767_v30  ;;  %vm2773_vm15 = vcmp.eq.f32.partialorder %v2772_v13, 8.507059e+37  ;;  %v1509_v35 = vadd.f32 0.18741608, %v1508_v31  ;;  %v1518_v28 = vadd.f32 0.112945676, %v1517_v32  ;;  %v577_v13 = vpop.f32.mrf.mxu1 }
  0xf0   : > { %v2776_v36 = vsel %vm2773_vm15, %v2775_v26, %v2771_v34  ;;  %v2145_v37 = vadd.f32 0.0036580483, %v2144_v45  ;;  %v2155_v12 = vmul.f32 %v2154_v7, %v4575_v58  ;;  %v4608_v8 = vmul.f32 0.70710677, %v4598_v27 }
  0xf1   : > { %v2777_v39 = vmul.f32 %v2776_v36, %v2752_v33  ;;  %v872_v2 = vmul.f32 %v871_v10, %v4447_v24  ;;  %v1519_v41 = vmul.f32 %v1518_v28, %v4543_v17  ;;  %v4613_v20 = vmul.f32 0.5, %v4495_v25 }
  0xf2   : > { %v4040_v42 = vpop.eup %4039  ;;  %v892_v43 = vand.u32 2147483647, %v4593_v18  ;;  %v2146_v47 = vmul.f32 %v2145_v37, %v4575_v58  ;;  %v2156_v51 = vadd.f32 0.014752088, %v2155_v12  ;;  %v2780_v52 = vmul.f32 %v4608_v8, %v4608_v8 }
  0xf3   : > { %v3886_v56 = vclamps-f32 %v2777_v39, 1.0  ;;  %v884_v57 = vmul.f32 %v4040_v42, %v4593_v18  ;;  %v1510_v60 = vmul.f32 %v1509_v35, %v4543_v17  ;;  %v538_v24 = vadd.f32 %v4391_v40, %v537_v38 }
  0xf4   : > { %v1520_v3 = vadd.f32 0.4994258, %v1519_v41  ;;  %v2147_v46 = vadd.f32 0.05243302, %v2146_v47  ;;  %v2157_v25 = vmul.f32 %v2156_v51, %v4575_v58  ;;  %v4623_v61 = vmin.f32 %v2780_v52, 16.0 }
  0xf5   : > { %v3428_v63 = vadd.f32 1.0, %v3886_v56  ;;  %v885_v0 = vsub.f32 1.0, %v884_v57  ;;  %vm889_vm0 = vweird.f32 %v4040_v42  ;;  %v894_v4 = vand.u32 2147483648, %v4593_v18 }
  0xf6   : > { %v1521_v5 = vmul.f32 %v1520_v3, %v4543_v17  ;;  %v2148_v6 = vmul.f32 %v2147_v46, %v4575_v58  ;;  %v2158_v49 = vadd.f32 0.112945676, %v2157_v25  ;;  %v2782_v9 = vmul.f32 2.1237322e-06, %v4623_v61  ;;  %v617_v25 = vpop.f32.mrf.mxu2 }
  0xf7   : > { %v3492_v59 = vmul.f32 %v3428_v63, %v4484_v15  ;;  %v886_v50 = vmul.f32 %v4040_v42, %v885_v0  ;;  %v2793_v11 = vmul.f32 3.8918573e-05, %v4623_v61  ;;  %v4631_v44 = vmul.f32 0.70710677, %v538_v24 }
  0xf8   : > { %v1511_v14 = vadd.f32 1.1283791, %v1510_v60  ;;  %v4633_v62 = vadd.f32 1.0, %v1521_v5  ;;  %v2159_v1 = vmul.f32 %v2158_v49, %v4575_v58  ;;  %v2783_v53 = vadd.f32 0.00028619796, %v2782_v9 }
  0xf9   : > { %3556 = vst [vmem:[%s4577_s8 + $0x180] sm:$0xff] %v3492_v59  ;;  %v887_v17 = vadd.f32 %v4040_v42, %v886_v50  ;;  %vm888_vm1 = vweird.f32 %v4593_v18  ;;  %v895_v22 = vor.u32 1.1754944e-38, %v894_v4  ;;  %v2794_v19 = vadd.f32 0.001143296, %v2793_v11 }
  0xfa   : > { %vm890_vm2 = vmor %vm888_vm1, %vm889_vm0  ;;  %4041 = vrcp.f32 %v4633_v62  ;;  %v2149_v15 = vadd.f32 0.18741608, %v2148_v6  ;;  %v900_v23 = vmul.f32 %v4631_v44, %v4631_v44  ;;  %v4643_v54 = vadd.f32 %v4391_v40, %v577_v13 }
  0xfb   : > { %v891_v10 = vsel %vm890_vm2, %v4040_v42, %v887_v17  ;;  %vm893_vm3 = vcmp.eq.f32.partialorder %v892_v43, 8.507059e+37  ;;  %v2160_v29 = vadd.f32 0.4994258, %v2159_v1  ;;  %v2784_v30 = vmul.f32 %v2783_v53, %v4623_v61 }
  0xfc   : > { %v896_v31 = vsel %vm893_vm3, %v895_v22, %v891_v10  ;;  %v4647_v18 = vmul.f32 %v1511_v14, %v4522_v48  ;;  %v4650_v32 = vmul.f32 0.5, %v4598_v27  ;;  %v2795_v33 = vmul.f32 %v2794_v19, %v4623_v61 }
  0xfd   : > { %v897_v26 = vmul.f32 %v896_v31, %v872_v2  ;;  %v1532_v45 = vand.u32 2147483647, %v4633_v62  ;;  %v2161_v7 = vmul.f32 %v2160_v29, %v4575_v58  ;;  %v2785_v34 = vadd.f32 0.0036580483, %v2784_v30 }
  0xfe   : > { %v2150_v35 = vmul.f32 %v2149_v15, %v4575_v58  ;;  %v2796_v28 = vadd.f32 0.014752088, %v2795_v33  ;;  %v4656_v36 = vmin.f32 %v900_v23, 16.0  ;;  %v4659_v37 = vmul.f32 0.70710677, %v4643_v54 }
  0xff   : > { %v3839_v48 = vclamps-f32 %v897_v26, 1.0  ;;  %v4661_v12 = vadd.f32 1.0, %v2161_v7  ;;  %v2786_v27 = vmul.f32 %v2785_v34, %v4623_v61  ;;  %v4664_v38 = vmul.f32 0.5, %v538_v24 }
 0x100   : > { %v4042_v39 = vpop.eup %4041  ;;  %v1534_v2 = vand.u32 2147483648, %v4633_v62  ;;  %v2797_v41 = vmul.f32 %v2796_v28, %v4623_v61  ;;  %v902_v58 = vmul.f32 2.1237322e-06, %v4656_v36  ;;  %v913_v42 = vmul.f32 3.8918573e-05, %v4656_v36 }
 0x101   : > { %v3381_v43 = vadd.f32 1.0, %v3839_v48  ;;  %v1524_v47 = vmul.f32 %v4042_v39, %v4633_v62  ;;  %4043 = vrcp.f32 %v4661_v12  ;;  %v1540_v51 = vmul.f32 %v4659_v37, %v4659_v37 }
 0x102   : > { %vm1528_vm4 = vweird.f32 %v4633_v62  ;;  %vm4675_vm5 = vcmp.eq.f32.partialorder %v1532_v45, 8.507059e+37  ;;  %v2151_v56 = vadd.f32 1.1283791, %v2150_v35  ;;  %v2787_v57 = vadd.f32 0.05243302, %v2786_v27 }
 0x103   : > { %v3445_v60 = vmul.f32 %v3381_v43, %v4486_v16  ;;  %v1525_v24 = vsub.f32 1.0, %v1524_v47  ;;  %v2798_v3 = vadd.f32 0.112945676, %v2797_v41  ;;  %v903_v46 = vadd.f32 0.00028619796, %v902_v58 }
 0x104   : > { %vm1529_vm6 = vweird.f32 %v4042_v39  ;;  %v1535_v63 = vor.u32 1.1754944e-38, %v1534_v2  ;;  %v2788_v0 = vmul.f32 %v2787_v57, %v4623_v61  ;;  %v914_v4 = vadd.f32 0.001143296, %v913_v42 }
 0x105   : > { %3509 = vst [vmem:[%s4577_s8 + $0x8] sm:$0xff] %v3445_v60  ;;  %v1526_v5 = vmul.f32 %v4042_v39, %v1525_v24  ;;  %v2799_v6 = vmul.f32 %v2798_v3, %v4623_v61  ;;  %v904_v49 = vmul.f32 %v903_v46, %v4656_v36  ;;  %v4684_v9 = vmin.f32 %v1540_v51, 16.0  ;;  %vm1530_vm7 = vmor %vm1528_vm4, %vm1529_vm6 }
 0x106   : > { %v2152_v59 = vmul.f32 %v2151_v56, %v4526_v55  ;;  %v2172_v16 = vand.u32 2147483647, %v4661_v12  ;;  %v915_v50 = vmul.f32 %v914_v4, %v4656_v36  ;;  %v618_v11 = vadd.f32 %v4391_v40, %v617_v25 }
 0x107   : > { %v4044_v13 = vpop.eup %4043  ;;  %v1527_v14 = vadd.f32 %v4042_v39, %v1526_v5  ;;  %v2800_v1 = vadd.f32 0.4994258, %v2799_v6  ;;  %v905_v53 = vadd.f32 0.0036580483, %v904_v49  ;;  %v1542_v17 = vmul.f32 2.1237322e-06, %v4684_v9 }
 0x108   : > { %v2164_v22 = vmul.f32 %v4044_v13, %v4661_v12  ;;  %v2174_v55 = vand.u32 2147483648, %v4661_v12  ;;  %v2789_v19 = vadd.f32 0.18741608, %v2788_v0  ;;  %v916_v15 = vadd.f32 0.014752088, %v915_v50 }
 0x109   : > { %v1531_v23 = vsel %vm1530_vm7, %v4042_v39, %v1527_v14  ;;  %v2801_v10 = vmul.f32 %v2800_v1, %v4623_v61  ;;  %v906_v29 = vmul.f32 %v905_v53, %v4656_v36  ;;  %v1543_v30 = vadd.f32 0.00028619796, %v1542_v17 }
 0x10a   : > { %v1536_v31 = vsel %vm4675_vm5, %v1535_v63, %v1531_v23  ;;  %v2165_v33 = vsub.f32 1.0, %v2164_v22  ;;  %vm2169_vm8 = vweird.f32 %v4044_v13  ;;  %v917_v62 = vmul.f32 %v916_v15, %v4656_v36 }
 0x10b   : > { %v1537_v26 = vmul.f32 %v1536_v31, %v4647_v18  ;;  %v4702_v45 = vadd.f32 1.0, %v2801_v10  ;;  %v907_v7 = vadd.f32 0.05243302, %v906_v29  ;;  %v1544_v34 = vmul.f32 %v1543_v30, %v4684_v9 }
 0x10c   : > { %v2166_v35 = vmul.f32 %v4044_v13, %v2165_v33  ;;  %v2790_v28 = vmul.f32 %v2789_v19, %v4623_v61  ;;  %v918_v48 = vadd.f32 0.112945676, %v917_v62  ;;  %v1553_v27 = vmul.f32 3.8918573e-05, %v4684_v9 }
 0x10d   : > { %v3855_v39 = vclamps-f32 %v1537_v26, 1.0  ;;  %vm2168_vm9 = vweird.f32 %v4661_v12  ;;  %vm4708_vm10 = vcmp.eq.f32.partialorder %v2172_v16, 8.507059e+37  ;;  %4045 = vrcp.f32 %v4702_v45  ;;  %v657_v16 = vpop.f32.mrf.mxu3 }
 0x10e   : > { %v2167_v18 = vadd.f32 %v4044_v13, %v2166_v35  ;;  %v908_v41 = vmul.f32 %v907_v7, %v4656_v36  ;;  %v919_v58 = vmul.f32 %v918_v48, %v4656_v36  ;;  %v4715_v42 = vmul.f32 0.70710677, %v618_v11  ;;  %vm2170_vm11 = vmor %vm2168_vm9, %vm2169_vm8 }
 0x10f   : > { %v3397_v61 = vadd.f32 1.0, %v3855_v39  ;;  %v2175_v43 = vor.u32 1.1754944e-38, %v2174_v55  ;;  %v1545_v47 = vadd.f32 0.0036580483, %v1544_v34  ;;  %v1554_v12 = vadd.f32 0.001143296, %v1553_v27 }
 0x110   : > { %v2171_v51 = vsel %vm2170_vm11, %v4044_v13, %v2167_v18  ;;  %v2791_v52 = vadd.f32 1.1283791, %v2790_v28  ;;  %v909_v56 = vadd.f32 0.18741608, %v908_v41  ;;  %v920_v57 = vadd.f32 0.4994258, %v919_v58 }
 0x111   : > { %v3461_v60 = vmul.f32 %v3397_v61, %v4491_v21  ;;  %v2176_v24 = vsel %vm4708_vm10, %v2175_v43, %v2171_v51  ;;  %v1546_v3 = vmul.f32 %v1545_v47, %v4684_v9  ;;  %v1555_v46 = vmul.f32 %v1554_v12, %v4684_v9 }
 0x112   : > { %v2177_v25 = vmul.f32 %v2176_v24, %v2152_v59  ;;  %v2812_v63 = vand.u32 2147483647, %v4702_v45  ;;  %v921_v0 = vmul.f32 %v920_v57, %v4656_v36  ;;  %v2180_v4 = vmul.f32 %v4715_v42, %v4715_v42 }
 0x113   : > { %v4046_v5 = vpop.eup %4045  ;;  %3525 = vst [vmem:[%s4577_s8 + $0x88] sm:$0xff] %v3461_v60  ;;  %v4729_v6 = vmul.f32 0.5, %v4643_v54  ;;  %v1547_v21 = vadd.f32 0.05243302, %v1546_v3  ;;  %v1556_v49 = vadd.f32 0.014752088, %v1555_v46  ;;  %v2792_v13 = vmul.f32 %v2791_v52, %v4608_v8  ;;  %v539_v8 = vpop.f32.mrf.mxu0 }
 0x114   : > { %v3871_v50 = vclamps-f32 %v2177_v25, 1.0  ;;  %v2804_v59 = vmul.f32 %v4046_v5, %v4702_v45  ;;  %v4733_v14 = vmul.f32 0.5, %v618_v11  ;;  %v910_v1 = vmul.f32 %v909_v56, %v4656_v36 }
 0x115   : > { %v4736_v53 = vadd.f32 1.0, %v921_v0  ;;  %v1557_v17 = vmul.f32 %v1556_v49, %v4684_v9  ;;  %v4739_v22 = vmin.f32 %v2180_v4, 16.0  ;;  %v1548_v19 = vmul.f32 %v1547_v21, %v4684_v9 }
 0x116   : > { %v3413_v54 = vadd.f32 1.0, %v3871_v50  ;;  %v2805_v55 = vsub.f32 1.0, %v2804_v59  ;;  %v658_v15 = vadd.f32 %v4391_v40, %v657_v16  ;;  %vm2808_vm12 = vweird.f32 %v4702_v45 }
 0x117   : > { %vm4744_vm13 = vcmp.eq.f32.partialorder %v2812_v63, 8.507059e+37  ;;  %v2814_v36 = vand.u32 2147483648, %v4702_v45  ;;  %4047 = vrcp.f32 %v4736_v53  ;;  %vm2809_vm14 = vweird.f32 %v4046_v5 }
 0x118   : > { %v3477_v23 = vmul.f32 %v3413_v54, %v4613_v20  ;;  %v2806_v10 = vmul.f32 %v4046_v5, %v2805_v55  ;;  %v1558_v29 = vadd.f32 0.112945676, %v1557_v17  ;;  %v911_v30 = vadd.f32 1.1283791, %v910_v1  ;;  %vm2810_vm15 = vmor %vm2808_vm12, %vm2809_vm14 }
 0x119   : > { %v2182_v31 = vmul.f32 2.1237322e-06, %v4739_v22  ;;  %v2193_v33 = vmul.f32 3.8918573e-05, %v4739_v22  ;;  %v4754_v62 = vadd.f32 %v4391_v40, %v539_v8  ;;  %v1549_v7 = vadd.f32 0.18741608, %v1548_v19 }
 0x11a   : > { %3541 = vst [vmem:[%s4577_s8 + $0x108] sm:$0xff] %v3477_v23  ;;  %v2807_v26 = vadd.f32 %v4046_v5, %v2806_v10  ;;  %v1559_v34 = vmul.f32 %v1558_v29, %v4684_v9  ;;  %v4758_v35 = vmul.f32 0.70710677, %v658_v15  ;;  %v2815_v20 = vor.u32 1.1754944e-38, %v2814_v36  ;;  %v579_v29 = vpop.f32.mrf.mxu1 }
 0x11b   : > { %v2183_v28 = vadd.f32 0.00028619796, %v2182_v31  ;;  %v2194_v48 = vadd.f32 0.001143296, %v2193_v33  ;;  %v4762_v27 = vmul.f32 0.5, %v658_v15  ;;  %v934_v52 = vand.u32 2147483648, %v4736_v53 }
 0x11c   : > { %v2811_v39 = vsel %vm2810_vm15, %v4046_v5, %v2807_v26  ;;  %v932_v2 = vand.u32 2147483647, %v4736_v53  ;;  %v1560_v18 = vadd.f32 0.4994258, %v1559_v34  ;;  %v2820_v41 = vmul.f32 %v4758_v35, %v4758_v35 }
 0x11d   : > { %v4048_v58 = vpop.eup %4047  ;;  %v2816_v61 = vsel %vm4744_vm13, %v2815_v20, %v2811_v39  ;;  %v2184_v43 = vmul.f32 %v2183_v28, %v4739_v22  ;;  %v2195_v45 = vmul.f32 %v2194_v48, %v4739_v22  ;;  %v4772_v47 = vmul.f32 0.70710677, %v4754_v62 }
 0x11e   : > { %v2817_v12 = vmul.f32 %v2816_v61, %v2792_v13  ;;  %v924_v51 = vmul.f32 %v4048_v58, %v4736_v53  ;;  %v1550_v56 = vmul.f32 %v1549_v7, %v4684_v9  ;;  %v1561_v57 = vmul.f32 %v1560_v18, %v4684_v9 }
 0x11f   : > { %v2185_v60 = vadd.f32 0.0036580483, %v2184_v43  ;;  %v2196_v24 = vadd.f32 0.014752088, %v2195_v45  ;;  %v4778_v3 = vmin.f32 %v2820_v41, 16.0  ;;  %vm929_vm0 = vweird.f32 %v4048_v58 }
 0x120   : > { %v3887_v46 = vclamps-f32 %v2817_v12, 1.0  ;;  %v925_v25 = vsub.f32 1.0, %v924_v51  ;;  %v940_v63 = vmul.f32 %v4772_v47, %v4772_v47  ;;  %v4782_v0 = vadd.f32 1.0, %v1561_v57  ;;  %v619_v57 = vpop.f32.mrf.mxu2 }
 0x121   : > { %v2186_v4 = vmul.f32 %v2185_v60, %v4739_v22  ;;  %v2197_v5 = vmul.f32 %v2196_v24, %v4739_v22  ;;  %v2822_v21 = vmul.f32 2.1237322e-06, %v4778_v3  ;;  %v2833_v16 = vmul.f32 3.8918573e-05, %v4778_v3 }
 0x122   : > { %v3429_v49 = vadd.f32 1.0, %v3887_v46  ;;  %v926_v9 = vmul.f32 %v4048_v58, %v925_v25  ;;  %v4788_v50 = vmin.f32 %v940_v63, 16.0  ;;  %vm928_vm1 = vweird.f32 %v4736_v53 }
 0x123   : > { %vm4791_vm2 = vcmp.eq.f32.partialorder %v932_v2, 8.507059e+37  ;;  %v935_v59 = vor.u32 1.1754944e-38, %v934_v52  ;;  %4049 = vrcp.f32 %v4782_v0  ;;  %v2187_v54 = vadd.f32 0.05243302, %v2186_v4  ;;  %vm930_vm3 = vmor %vm928_vm1, %vm929_vm0 }
 0x124   : > { %v3493_v1 = vmul.f32 %v3429_v49, %v4650_v32  ;;  %v927_v17 = vadd.f32 %v4048_v58, %v926_v9  ;;  %v2198_v55 = vadd.f32 0.112945676, %v2197_v5  ;;  %v912_v19 = vmul.f32 %v911_v30, %v4631_v44 }
 0x125   : > { %v1551_v15 = vadd.f32 1.1283791, %v1550_v56  ;;  %v2823_v8 = vadd.f32 0.00028619796, %v2822_v21  ;;  %v2834_v11 = vadd.f32 0.001143296, %v2833_v16  ;;  %v2188_v36 = vmul.f32 %v2187_v54, %v4739_v22 }
 0x126   : > { %3557 = vst [vmem:[%s4577_s8 + $0x188] sm:$0xff] %v3493_v1  ;;  %v931_v53 = vsel %vm930_vm3, %v4048_v58, %v927_v17  ;;  %v2199_v23 = vmul.f32 %v2198_v55, %v4739_v22  ;;  %v942_v10 = vmul.f32 2.1237322e-06, %v4788_v50  ;;  %v953_v30 = vmul.f32 3.8918573e-05, %v4788_v50 }
 0x127   : > { %v936_v32 = vsel %vm4791_vm2, %v935_v59, %v931_v53  ;;  %v2824_v31 = vmul.f32 %v2823_v8, %v4778_v3  ;;  %v2835_v44 = vmul.f32 %v2834_v11, %v4778_v3  ;;  %v2189_v26 = vadd.f32 0.18741608, %v2188_v36 }
 0x128   : > { %v937_v33 = vmul.f32 %v936_v32, %v912_v19  ;;  %v2200_v7 = vadd.f32 0.4994258, %v2199_v23  ;;  %v943_v34 = vadd.f32 0.00028619796, %v942_v10  ;;  %v954_v39 = vadd.f32 0.001143296, %v953_v30 }
 0x129   : > { %v4050_v20 = vpop.eup %4049  ;;  %v2825_v28 = vadd.f32 0.0036580483, %v2824_v31  ;;  %v2836_v48 = vadd.f32 0.014752088, %v2835_v44  ;;  %v4809_v2 = vadd.f32 %v4391_v40, %v579_v29  ;;  %v1572_v58 = vand.u32 2147483647, %v4782_v0 }
 0x12a   : > { %v3840_v18 = vclamps-f32 %v937_v33, 1.0  ;;  %v1564_v41 = vmul.f32 %v4050_v20, %v4782_v0  ;;  %v1574_v61 = vand.u32 2147483648, %v4782_v0  ;;  %v2201_v43 = vmul.f32 %v2200_v7, %v4739_v22 }
 0x12b   : > { %v2826_v45 = vmul.f32 %v2825_v28, %v4778_v3  ;;  %v2837_v12 = vmul.f32 %v2836_v48, %v4778_v3  ;;  %v944_v51 = vmul.f32 %v943_v34, %v4788_v50  ;;  %vm1568_vm4 = vweird.f32 %v4782_v0 }
 0x12c   : > { %v3382_v52 = vadd.f32 1.0, %v3840_v18  ;;  %v1565_v56 = vsub.f32 1.0, %v1564_v41  ;;  %v2190_v40 = vmul.f32 %v2189_v26, %v4739_v22  ;;  %v4820_v60 = vadd.f32 1.0, %v2201_v43  ;;  %v4830_v22 = vld [vmem:[%s4344_s19] ss:$0 sm:$0xff]  ;;  %v659_v43 = vpop.f32.mrf.mxu3 }
 0x12d   : > { %v2827_v24 = vadd.f32 0.05243302, %v2826_v45  ;;  %v2838_v46 = vadd.f32 0.112945676, %v2837_v12  ;;  %v955_v25 = vmul.f32 %v954_v39, %v4788_v50  ;;  %vm1569_vm5 = vweird.f32 %v4050_v20 }
 0x12e   : > { %v3446_v63 = vmul.f32 %v3382_v52, %v4664_v38  ;;  %v1566_v4 = vmul.f32 %v4050_v20, %v1565_v56  ;;  %v945_v5 = vadd.f32 0.0036580483, %v944_v51  ;;  %vm4824_vm6 = vcmp.eq.f32.partialorder %v1572_v58, 8.507059e+37  ;;  %vm1570_vm7 = vmor %vm1568_vm4, %vm1569_vm5 }
 0x12f   : > { %v1575_v49 = vor.u32 1.1754944e-38, %v1574_v61  ;;  %4051 = vrcp.f32 %v4820_v60  ;;  %v4833_v9 = vadd.f32 %v4830_v22, %v619_v57  ;;  %v2828_v13 = vmul.f32 %v2827_v24, %v4778_v3 }
 0x130   : > { %3510 = vst [vmem:[%s4577_s8 + $0x10] sm:$0xff] %v3446_v63  ;;  %v1567_v16 = vadd.f32 %v4050_v20, %v1566_v4  ;;  %v2839_v38 = vmul.f32 %v2838_v46, %v4778_v3  ;;  %v946_v59 = vmul.f32 %v945_v5, %v4788_v50  ;;  %v1552_v1 = vmul.f32 %v1551_v15, %v4659_v37 }
 0x131   : > { %v2191_v17 = vadd.f32 1.1283791, %v2190_v40  ;;  %v956_v54 = vadd.f32 0.014752088, %v955_v25  ;;  %v4843_v55 = vmul.f32 0.70710677, %v4809_v2  ;;  %vm2208_vm8 = vweird.f32 %v4820_v60 }
 0x132   : > { %v1571_v19 = vsel %vm1570_vm7, %v4050_v20, %v1567_v16  ;;  %v2829_v8 = vadd.f32 0.18741608, %v2828_v13  ;;  %v2840_v11 = vadd.f32 0.4994258, %v2839_v38  ;;  %v947_v53 = vadd.f32 0.05243302, %v946_v59 }
 0x133   : > { %v1576_v36 = vsel %vm4824_vm6, %v1575_v49, %v1571_v19  ;;  %v957_v23 = vmul.f32 %v956_v54, %v4788_v50  ;;  %v1580_v37 = vmul.f32 %v4843_v55, %v4843_v55  ;;  %v4851_v0 = vmul.f32 0.70710677, %v4833_v9 }
 0x134   : > { %v1577_v15 = vmul.f32 %v1576_v36, %v1552_v1  ;;  %v2830_v10 = vmul.f32 %v2829_v8, %v4778_v3  ;;  %v2841_v29 = vmul.f32 %v2840_v11, %v4778_v3  ;;  %v948_v32 = vmul.f32 %v947_v53, %v4788_v50 }
 0x135   : > { %v4052_v31 = vpop.eup %4051  ;;  %v2192_v44 = vmul.f32 %v2191_v17, %v4715_v42  ;;  %v2212_v30 = vand.u32 2147483647, %v4820_v60  ;;  %v958_v33 = vadd.f32 0.112945676, %v957_v23  ;;  %v4858_v26 = vmin.f32 %v1580_v37, 16.0 }
 0x136   : > { %v3856_v7 = vclamps-f32 %v1577_v15, 1.0  ;;  %v2204_v34 = vmul.f32 %v4052_v31, %v4820_v60  ;;  %v2214_v20 = vand.u32 2147483648, %v4820_v60  ;;  %v2220_v28 = vmul.f32 %v4851_v0, %v4851_v0 }
 0x137   : > { %v4864_v48 = vadd.f32 1.0, %v2841_v29  ;;  %v949_v3 = vadd.f32 0.18741608, %v948_v32  ;;  %v959_v39 = vmul.f32 %v958_v33, %v4788_v50  ;;  %v1582_v42 = vmul.f32 2.1237322e-06, %v4858_v26 }
 0x138   : > { %v3398_v18 = vadd.f32 1.0, %v3856_v7  ;;  %v2205_v41 = vsub.f32 1.0, %v2204_v34  ;;  %v2831_v58 = vadd.f32 1.1283791, %v2830_v10  ;;  %v1593_v61 = vmul.f32 3.8918573e-05, %v4858_v26 }
 0x139   : > { %vm2209_vm9 = vweird.f32 %v4052_v31  ;;  %vm4870_vm10 = vcmp.eq.f32.partialorder %v2212_v30, 8.507059e+37  ;;  %4053 = vrcp.f32 %v4864_v48  ;;  %v950_v52 = vmul.f32 %v949_v3, %v4788_v50 }
 0x13a   : > { %v3462_v12 = vmul.f32 %v3398_v18, %v4729_v6  ;;  %v2206_v51 = vmul.f32 %v4052_v31, %v2205_v41  ;;  %v960_v56 = vadd.f32 0.4994258, %v959_v39  ;;  %v2215_v40 = vor.u32 1.1754944e-38, %v2214_v20  ;;  %vm2210_vm11 = vmor %vm2208_vm8, %vm2209_vm9 }
 0x13b   : > { %v1583_v57 = vadd.f32 0.00028619796, %v1582_v42  ;;  %v1594_v24 = vadd.f32 0.001143296, %v1593_v61  ;;  %v4878_v46 = vadd.f32 %v4830_v22, %v659_v43  ;;  %v2832_v63 = vmul.f32 %v2831_v58, %v4758_v35 }
 0x13c   : > { %3526 = vst [vmem:[%s4577_s8 + $0x90] sm:$0xff] %v3462_v12  ;;  %v2207_v25 = vadd.f32 %v4052_v31, %v2206_v51  ;;  %v961_v4 = vmul.f32 %v960_v56, %v4788_v50  ;;  %v4883_v5 = vmin.f32 %v2220_v28, 16.0  ;;  %v2852_v6 = vand.u32 2147483647, %v4864_v48 }
 0x13d   : > { %v2854_v21 = vand.u32 2147483648, %v4864_v48  ;;  %v1584_v49 = vmul.f32 %v1583_v57, %v4858_v26  ;;  %v1595_v16 = vmul.f32 %v1594_v24, %v4858_v26  ;;  %v951_v38 = vadd.f32 1.1283791, %v950_v52 }
 0x13e   : > { %v2211_v13 = vsel %vm2210_vm11, %v4052_v31, %v2207_v25  ;;  %v4892_v59 = vadd.f32 1.0, %v961_v4  ;;  %v2222_v35 = vmul.f32 2.1237322e-06, %v4883_v5  ;;  %v2233_v54 = vmul.f32 3.8918573e-05, %v4883_v5 }
 0x13f   : > { %v4054_v50 = vpop.eup %4053  ;;  %v2216_v1 = vsel %vm4870_vm10, %v2215_v40, %v2211_v13  ;;  %v1585_v60 = vadd.f32 0.0036580483, %v1584_v49  ;;  %v1596_v17 = vadd.f32 0.014752088, %v1595_v16  ;;  %vm2848_vm12 = vweird.f32 %v4864_v48  ;;  %v542_v13 = vpop.f32.mrf.mxu0 }
 0x140   : > { %v2217_v19 = vmul.f32 %v2216_v1, %v2192_v44  ;;  %v2844_v8 = vmul.f32 %v4054_v50, %v4864_v48  ;;  %4055 = vrcp.f32 %v4892_v59  ;;  %vm4901_vm13 = vcmp.eq.f32.partialorder %v2852_v6, 8.507059e+37 }
 0x141   : > { %v2855_v53 = vor.u32 1.1754944e-38, %v2854_v21  ;;  %v1586_v36 = vmul.f32 %v1585_v60, %v4858_v26  ;;  %v4907_v23 = vmul.f32 0.70710677, %v4878_v46  ;;  %v1597_v10 = vmul.f32 %v1596_v17, %v4858_v26 }
 0x142   : > { %v3872_v37 = vclamps-f32 %v2217_v19, 1.0  ;;  %v2845_v15 = vsub.f32 1.0, %v2844_v8  ;;  %v2223_v29 = vadd.f32 0.00028619796, %v2222_v35  ;;  %vm2849_vm14 = vweird.f32 %v4054_v50 }
 0x143   : > { %v952_v32 = vmul.f32 %v951_v38, %v4772_v47  ;;  %v1587_v31 = vadd.f32 0.05243302, %v1586_v36  ;;  %v2234_v44 = vadd.f32 0.001143296, %v2233_v54  ;;  %v1598_v7 = vadd.f32 0.112945676, %v1597_v10  ;;  %vm2850_vm0 = vmor %vm2848_vm12, %vm2849_vm14 }
 0x144   : > { %v3414_v30 = vadd.f32 1.0, %v3872_v37  ;;  %v2846_v33 = vmul.f32 %v4054_v50, %v2845_v15  ;;  %v2224_v34 = vmul.f32 %v2223_v29, %v4883_v5  ;;  %vm968_vm15 = vweird.f32 %v4892_v59 }
 0x145   : > { %v1588_v20 = vmul.f32 %v1587_v31, %v4858_v26  ;;  %v2235_v28 = vmul.f32 %v2234_v44, %v4883_v5  ;;  %v2860_v3 = vmul.f32 %v4907_v23, %v4907_v23  ;;  %v1599_v18 = vmul.f32 %v1598_v7, %v4858_v26 }
 0x146   : > { %v4056_v39 = vpop.eup %4055  ;;  %v3478_v47 = vmul.f32 %v3414_v30, %v4733_v14  ;;  %v2847_v42 = vadd.f32 %v4054_v50, %v2846_v33  ;;  %v2225_v41 = vadd.f32 0.0036580483, %v2224_v34  ;;  %v972_v61 = vand.u32 2147483647, %v4892_v59 }
 0x147   : > { %v964_v58 = vmul.f32 %v4056_v39, %v4892_v59  ;;  %v974_v43 = vand.u32 2147483648, %v4892_v59  ;;  %v2236_v45 = vadd.f32 0.014752088, %v2235_v28  ;;  %v1600_v51 = vadd.f32 0.4994258, %v1599_v18 }
 0x148   : > { %3542 = vst [vmem:[%s4577_s8 + $0x110] sm:$0xff] %v3478_v47  ;;  %v2851_v12 = vsel %vm2850_vm0, %v4054_v50, %v2847_v42  ;;  %v2226_v14 = vmul.f32 %v2225_v41, %v4883_v5  ;;  %v4927_v52 = vmin.f32 %v2860_v3, 16.0  ;;  %v1589_v48 = vadd.f32 0.18741608, %v1588_v20 }
 0x149   : > { %v2856_v56 = vsel %vm4901_vm13, %v2855_v53, %v2851_v12  ;;  %v965_v40 = vsub.f32 1.0, %v964_v58  ;;  %v2237_v57 = vmul.f32 %v2236_v45, %v4883_v5  ;;  %v1601_v25 = vmul.f32 %v1600_v51, %v4858_v26 }
 0x14a   : > { %v2857_v24 = vmul.f32 %v2856_v56, %v2832_v63  ;;  %v2227_v4 = vadd.f32 0.05243302, %v2226_v14  ;;  %v2862_v6 = vmul.f32 2.1237322e-06, %v4927_v52  ;;  %vm969_vm1 = vweird.f32 %v4056_v39  ;;  %v662_v14 = vpop.f32.mrf.mxu3 }
 0x14b   : > { %v966_v21 = vmul.f32 %v4056_v39, %v965_v40  ;;  %v2238_v49 = vadd.f32 0.112945676, %v2237_v57  ;;  %v2873_v16 = vmul.f32 3.8918573e-05, %v4927_v52  ;;  %v4935_v35 = vadd.f32 1.0, %v1601_v25  ;;  %vm970_vm2 = vmor %vm968_vm15, %vm969_vm1 }
 0x14c   : > { %v3888_v38 = vclamps-f32 %v2857_v24, 1.0  ;;  %v2228_v50 = vmul.f32 %v2227_v4, %v4883_v5  ;;  %v2863_v1 = vadd.f32 0.00028619796, %v2862_v6  ;;  %v975_v17 = vor.u32 1.1754944e-38, %v974_v43 }
 0x14d   : > { %v967_v60 = vadd.f32 %v4056_v39, %v966_v21  ;;  %v1590_v63 = vmul.f32 %v1589_v48, %v4858_v26  ;;  %v2239_v54 = vmul.f32 %v2238_v49, %v4883_v5  ;;  %4057 = vrcp.f32 %v4935_v35 }
 0x14e   : > { %v3430_v19 = vadd.f32 1.0, %v3888_v38  ;;  %v2874_v8 = vadd.f32 0.001143296, %v2873_v16  ;;  %v543_v11 = vadd.f32 %v4830_v22, %v542_v13  ;;  %vm973_vm3 = vcmp.eq.f32.partialorder %v972_v61, 8.507059e+37  ;;  %v622_v61 = vpop.f32.mrf.mxu2 }
 0x14f   : > { %v971_v53 = vsel %vm970_vm2, %v4056_v39, %v967_v60  ;;  %v2229_v36 = vadd.f32 0.18741608, %v2228_v50  ;;  %v2240_v37 = vadd.f32 0.4994258, %v2239_v54  ;;  %v695_v26 = vmul.f32 0.5, %v4754_v62 }
 0x150   : > { %v3494_v15 = vmul.f32 %v3430_v19, %v4762_v27  ;;  %v976_v10 = vsel %vm973_vm3, %v975_v17, %v971_v53  ;;  %v2864_v29 = vmul.f32 %v2863_v1, %v4927_v52  ;;  %v4948_v59 = vmul.f32 0.5, %v4809_v2  ;;  %v582_v27 = vpop.f32.mrf.mxu1 }
 0x151   : > { %v977_v31 = vmul.f32 %v976_v10, %v952_v32  ;;  %v1591_v44 = vadd.f32 1.1283791, %v1590_v63  ;;  %v2241_v30 = vmul.f32 %v2240_v37, %v4883_v5  ;;  %v2230_v33 = vmul.f32 %v2229_v36, %v4883_v5 }
 0x152   : > { %3558 = vst [vmem:[%s4577_s8 + $0x190] sm:$0xff] %v3494_v15  ;;  %v2865_v7 = vadd.f32 0.0036580483, %v2864_v29  ;;  %v2875_v34 = vmul.f32 %v2874_v8, %v4927_v52  ;;  %v4954_v20 = vmul.f32 0.70710677, %v543_v11  ;;  %v4958_v32 = vmul.f32 0.5, %v4833_v9 }
 0x153   : > { %v3841_v62 = vclamps-f32 %v977_v31, 1.0  ;;  %v1612_v28 = vand.u32 2147483647, %v4935_v35  ;;  %v4960_v2 = vadd.f32 1.0, %v2241_v30  ;;  %v4058_v3 = vpop.eup %4057  ;;  %v1614_v39 = vand.u32 2147483648, %v4935_v35 }
 0x154   : > { %v2866_v47 = vmul.f32 %v2865_v7, %v4927_v52  ;;  %v2876_v5 = vadd.f32 0.014752088, %v2875_v34  ;;  %v980_v42 = vmul.f32 %v4954_v20, %v4954_v20  ;;  %v1604_v41 = vmul.f32 %v4058_v3, %v4935_v35 }
 0x155   : > { %v3383_v18 = vadd.f32 1.0, %v3841_v62  ;;  %v4968_v58 = vmul.f32 0.5, %v4878_v46  ;;  %v4971_v9 = vadd.f32 %v4830_v22, %v582_v27  ;;  %v1592_v43 = vmul.f32 %v1591_v44, %v4843_v55 }
 0x156   : > { %vm1608_vm4 = vweird.f32 %v4935_v35  ;;  %v2231_v45 = vadd.f32 1.1283791, %v2230_v33  ;;  %4059 = vrcp.f32 %v4960_v2  ;;  %v1605_v51 = vsub.f32 1.0, %v1604_v41 }
 0x157   : > { %v3447_v12 = vmul.f32 %v3383_v18, %v695_v26  ;;  %vm4976_vm5 = vcmp.eq.f32.partialorder %v1612_v28, 8.507059e+37  ;;  %v2877_v46 = vmul.f32 %v2876_v5, %v4927_v52  ;;  %v1615_v56 = vor.u32 1.1754944e-38, %v1614_v39 }
 0x158   : > { %v2867_v40 = vadd.f32 0.05243302, %v2866_v47  ;;  %v4981_v48 = vmin.f32 %v980_v42, 16.0  ;;  %v623_v57 = vadd.f32 %v4830_v22, %v622_v61  ;;  %v1606_v55 = vmul.f32 %v4058_v3, %v1605_v51 }
 0x159   : > { %3511 = vst [vmem:[%s4577_s8 + $0x18] sm:$0xff] %v3447_v12  ;;  %vm1609_vm6 = vweird.f32 %v4058_v3  ;;  %v2878_v24 = vadd.f32 0.112945676, %v2877_v46  ;;  %v4986_v25 = vmul.f32 0.70710677, %v4971_v9  ;;  %v2232_v4 = vmul.f32 %v2231_v45, %v4851_v0 }
 0x15a   : > { %v4989_v6 = vmul.f32 0.5, %v543_v11  ;;  %v982_v21 = vmul.f32 2.1237322e-06, %v4981_v48  ;;  %v993_v49 = vmul.f32 3.8918573e-05, %v4981_v48  ;;  %v1607_v16 = vadd.f32 %v4058_v3, %v1606_v55  ;;  %vm1610_vm7 = vmor %vm1608_vm4, %vm1609_vm6  ;;  %v544_v55 = vpop.f32.mrf.mxu0 }
 0x15b   : > { %v2252_v13 = vand.u32 2147483647, %v4960_v2  ;;  %v2879_v38 = vmul.f32 %v2878_v24, %v4927_v52  ;;  %v1620_v50 = vmul.f32 %v4986_v25, %v4986_v25  ;;  %vm2248_vm8 = vweird.f32 %v4960_v2 }
 0x15c   : > { %v4060_v1 = vpop.eup %4059  ;;  %v983_v0 = vadd.f32 0.00028619796, %v982_v21  ;;  %v994_v60 = vadd.f32 0.001143296, %v993_v49  ;;  %v5000_v17 = vmul.f32 0.70710677, %v623_v57  ;;  %v1611_v63 = vsel %vm1610_vm7, %v4058_v3, %v1607_v16 }
 0x15d   : > { %v2244_v54 = vmul.f32 %v4060_v1, %v4960_v2  ;;  %v2254_v19 = vand.u32 2147483648, %v4960_v2  ;;  %v2868_v8 = vmul.f32 %v2867_v40, %v4927_v52  ;;  %v1616_v11 = vsel %vm4976_vm5, %v1615_v56, %v1611_v63 }
 0x15e   : > { %v2880_v53 = vadd.f32 0.4994258, %v2879_v38  ;;  %v984_v35 = vmul.f32 %v983_v0, %v4981_v48  ;;  %v995_v36 = vmul.f32 %v994_v60, %v4981_v48  ;;  %v1617_v37 = vmul.f32 %v1616_v11, %v1592_v43 }
 0x15f   : > { %v2245_v15 = vsub.f32 1.0, %v2244_v54  ;;  %vm5009_vm9 = vcmp.eq.f32.partialorder %v2252_v13, 8.507059e+37  ;;  %v5013_v10 = vmin.f32 %v1620_v50, 16.0  ;;  %v2260_v30 = vmul.f32 %v5000_v17, %v5000_v17 }
 0x160   : > { %v2881_v29 = vmul.f32 %v2880_v53, %v4927_v52  ;;  %v985_v31 = vadd.f32 0.0036580483, %v984_v35  ;;  %v996_v44 = vadd.f32 0.014752088, %v995_v36  ;;  %v3857_v33 = vclamps-f32 %v1617_v37, 1.0 }
 0x161   : > { %v2246_v7 = vmul.f32 %v4060_v1, %v2245_v15  ;;  %vm2249_vm10 = vweird.f32 %v4060_v1  ;;  %v1622_v34 = vmul.f32 2.1237322e-06, %v5013_v10  ;;  %v2869_v27 = vadd.f32 0.18741608, %v2868_v8 }
 0x162   : > { %v5019_v62 = vadd.f32 1.0, %v2881_v29  ;;  %v986_v28 = vmul.f32 %v985_v31, %v4981_v48  ;;  %v997_v3 = vmul.f32 %v996_v44, %v4981_v48  ;;  %v3399_v39 = vadd.f32 1.0, %v3857_v33  ;;  %vm2250_vm11 = vmor %vm2248_vm8, %vm2249_vm10 }
 0x163   : > { %v2247_v47 = vadd.f32 %v4060_v1, %v2246_v7  ;;  %v1623_v5 = vadd.f32 0.00028619796, %v1622_v34  ;;  %v1633_v42 = vmul.f32 3.8918573e-05, %v5013_v10  ;;  %v2255_v18 = vor.u32 1.1754944e-38, %v2254_v19 }
 0x164   : > { %4061 = vrcp.f32 %v5019_v62  ;;  %v5028_v41 = vmul.f32 0.5, %v4971_v9  ;;  %v5030_v61 = vmin.f32 %v2260_v30, 16.0  ;;  %v3463_v43 = vmul.f32 %v3399_v39, %v4948_v59 }
 0x165   : > { %v2251_v45 = vsel %vm2250_vm11, %v4060_v1, %v2247_v47  ;;  %v987_v12 = vadd.f32 0.05243302, %v986_v28  ;;  %v998_v51 = vadd.f32 0.112945676, %v997_v3  ;;  %v2870_v2 = vmul.f32 %v2869_v27, %v4927_v52 }
 0x166   : > { %v2256_v46 = vsel %vm5009_vm9, %v2255_v18, %v2251_v45  ;;  %v1624_v56 = vmul.f32 %v1623_v5, %v5013_v10  ;;  %v5037_v40 = vmul.f32 0.5, %v623_v57  ;;  %3527 = vst [vmem:[%s4577_s8 + $0x98] sm:$0xff] %v3463_v43  ;;  %v1634_v21 = vadd.f32 0.001143296, %v1633_v42 }
 0x167   : > { %v2257_v9 = vmul.f32 %v2256_v46, %v2232_v4  ;;  %v988_v24 = vmul.f32 %v987_v12, %v4981_v48  ;;  %v999_v59 = vmul.f32 %v998_v51, %v4981_v48  ;;  %v2262_v16 = vmul.f32 2.1237322e-06, %v5030_v61 }
 0x168   : > { %v1625_v49 = vadd.f32 0.0036580483, %v1624_v56  ;;  %v2273_v13 = vmul.f32 3.8918573e-05, %v5030_v61  ;;  %v5045_v38 = vadd.f32 %v4830_v22, %v662_v14  ;;  %v1635_v57 = vmul.f32 %v1634_v21, %v5013_v10 }
 0x169   : > { %v3873_v52 = vclamps-f32 %v2257_v9, 1.0  ;;  %v1000_v50 = vadd.f32 0.4994258, %v999_v59  ;;  %v5049_v1 = vadd.f32 %v4830_v22, %v544_v55  ;;  %v2871_v0 = vadd.f32 1.1283791, %v2870_v2 }
 0x16a   : > { %v4062_v4 = vpop.eup %4061  ;;  %v1626_v60 = vmul.f32 %v1625_v49, %v5013_v10  ;;  %v2263_v63 = vadd.f32 0.00028619796, %v2262_v16  ;;  %v2274_v54 = vadd.f32 0.001143296, %v2273_v13  ;;  %v2892_v11 = vand.u32 2147483647, %v5019_v62 }
 0x16b   : > { %v3415_v19 = vadd.f32 1.0, %v3873_v52  ;;  %v2884_v8 = vmul.f32 %v4062_v4, %v5019_v62  ;;  %v989_v53 = vadd.f32 0.18741608, %v988_v24  ;;  %v1001_v35 = vmul.f32 %v1000_v50, %v4981_v48 }
 0x16c   : > { %v1627_v36 = vadd.f32 0.05243302, %v1626_v60  ;;  %v1636_v37 = vadd.f32 0.014752088, %v1635_v57  ;;  %v2264_v15 = vmul.f32 %v2263_v63, %v5030_v61  ;;  %v2894_v31 = vand.u32 2147483648, %v5019_v62 }
 0x16d   : > { %v3479_v26 = vmul.f32 %v3415_v19, %v4958_v32  ;;  %v2885_v29 = vsub.f32 1.0, %v2884_v8  ;;  %v2275_v44 = vmul.f32 %v2274_v54, %v5030_v61  ;;  %vm2889_vm12 = vweird.f32 %v4062_v4  ;;  %v584_v32 = vpop.f32.mrf.mxu1 }
 0x16e   : > { %v5059_v30 = vadd.f32 1.0, %v1001_v35  ;;  %v1637_v33 = vmul.f32 %v1636_v37, %v5013_v10  ;;  %v2265_v7 = vadd.f32 0.0036580483, %v2264_v15  ;;  %v1628_v27 = vmul.f32 %v1627_v36, %v5013_v10 }
 0x16f   : > { %3543 = vst [vmem:[%s4577_s8 + $0x118] sm:$0xff] %v3479_v26  ;;  %v2886_v34 = vmul.f32 %v4062_v4, %v2885_v29  ;;  %v2276_v28 = vadd.f32 0.014752088, %v2275_v44  ;;  %v5065_v3 = vmul.f32 0.70710677, %v5045_v38  ;;  %v2872_v39 = vmul.f32 %v2871_v0, %v4907_v23 }
 0x170   : > { %vm2888_vm13 = vweird.f32 %v5019_v62  ;;  %v990_v47 = vmul.f32 %v989_v53, %v4981_v48  ;;  %4063 = vrcp.f32 %v5059_v30  ;;  %vm2893_vm14 = vcmp.eq.f32.partialorder %v2892_v11, 8.507059e+37 }
 0x171   : > { %v2887_v5 = vadd.f32 %v4062_v4, %v2886_v34  ;;  %v1638_v42 = vadd.f32 0.112945676, %v1637_v33  ;;  %v2266_v18 = vmul.f32 %v2265_v7, %v5030_v61  ;;  %vm2890_vm15 = vmor %vm2888_vm13, %vm2889_vm12  ;;  %v2895_v43 = vor.u32 1.1754944e-38, %v2894_v31 }
 0x172   : > { %v2277_v45 = vmul.f32 %v2276_v28, %v5030_v61  ;;  %v2900_v12 = vmul.f32 %v5065_v3, %v5065_v3  ;;  %v5077_v23 = vadd.f32 %v4830_v22, %v584_v32  ;;  %v1629_v48 = vadd.f32 0.18741608, %v1628_v27 }
 0x173   : > { %v2891_v62 = vsel %vm2890_vm15, %v4062_v4, %v2887_v5  ;;  %v1639_v51 = vmul.f32 %v1638_v42, %v5013_v10  ;;  %v2267_v14 = vadd.f32 0.05243302, %v2266_v18  ;;  %v991_v2 = vadd.f32 1.1283791, %v990_v47 }
 0x174   : > { %v2896_v46 = vsel %vm2893_vm14, %v2895_v43, %v2891_v62  ;;  %v2278_v56 = vadd.f32 0.112945676, %v2277_v45  ;;  %v5080_v55 = vmin.f32 %v2900_v12, 16.0  ;;  %v1012_v24 = vand.u32 2147483647, %v5059_v30 }
 0x175   : > { %v2897_v9 = vmul.f32 %v2896_v46, %v2872_v39  ;;  %v1640_v59 = vadd.f32 0.4994258, %v1639_v51  ;;  %v2268_v21 = vmul.f32 %v2267_v14, %v5030_v61  ;;  %v5088_v50 = vmul.f32 0.70710677, %v5049_v1 }
 0x176   : > { %v4064_v49 = vpop.eup %4063  ;;  %v2279_v16 = vmul.f32 %v2278_v56, %v5030_v61  ;;  %v2902_v13 = vmul.f32 2.1237322e-06, %v5080_v55  ;;  %v2913_v52 = vmul.f32 3.8918573e-05, %v5080_v55  ;;  %v1014_v0 = vand.u32 2147483648, %v5059_v30 }
 0x177   : > { %v3889_v57 = vclamps-f32 %v2897_v9, 1.0  ;;  %v1004_v4 = vmul.f32 %v4064_v49, %v5059_v30  ;;  %v1630_v60 = vmul.f32 %v1629_v48, %v5013_v10  ;;  %v1641_v63 = vmul.f32 %v1640_v59, %v5013_v10 }
 0x178   : > { %v2269_v54 = vadd.f32 0.18741608, %v2268_v21  ;;  %v2280_v19 = vadd.f32 0.4994258, %v2279_v16  ;;  %v2903_v8 = vadd.f32 0.00028619796, %v2902_v13  ;;  %v1020_v36 = vmul.f32 %v5088_v50, %v5088_v50 }
 0x179   : > { %v3431_v11 = vadd.f32 1.0, %v3889_v57  ;;  %v1005_v53 = vsub.f32 1.0, %v1004_v4  ;;  %v2914_v35 = vadd.f32 0.001143296, %v2913_v52  ;;  %vm1009_vm0 = vweird.f32 %v4064_v49 }
 0x17a   : > { %v5096_v37 = vadd.f32 1.0, %v1641_v63  ;;  %v2281_v15 = vmul.f32 %v2280_v19, %v5030_v61  ;;  %v2904_v26 = vmul.f32 %v2903_v8, %v5080_v55  ;;  %v5102_v44 = vmin.f32 %v1020_v36, 16.0  ;;  %v624_v19 = vpop.f32.mrf.mxu2 }
 0x17b   : > { %v3495_v29 = vmul.f32 %v3431_v11, %v4968_v58  ;;  %v1006_v10 = vmul.f32 %v4064_v49, %v1005_v53  ;;  %v2915_v31 = vmul.f32 %v2914_v35, %v5080_v55  ;;  %vm1008_vm1 = vweird.f32 %v5059_v30 }
 0x17c   : > { %vm5105_vm2 = vcmp.eq.f32.partialorder %v1012_v24, 8.507059e+37  ;;  %4065 = vrcp.f32 %v5096_v37  ;;  %v2270_v7 = vmul.f32 %v2269_v54, %v5030_v61  ;;  %v1015_v27 = vor.u32 1.1754944e-38, %v1014_v0  ;;  %vm1010_vm3 = vmor %vm1008_vm1, %vm1009_vm0 }
 0x17d   : > { %3559 = vst [vmem:[%s4577_s8 + $0x198] sm:$0xff] %v3495_v29  ;;  %v1007_v34 = vadd.f32 %v4064_v49, %v1006_v10  ;;  %v5112_v28 = vadd.f32 1.0, %v2281_v15  ;;  %v2905_v58 = vadd.f32 0.0036580483, %v2904_v26  ;;  %v992_v32 = vmul.f32 %v991_v2, %v4954_v20 }
 0x17e   : > { %v1631_v39 = vadd.f32 1.1283791, %v1630_v60  ;;  %v2916_v30 = vadd.f32 0.014752088, %v2915_v31  ;;  %v1022_v47 = vmul.f32 2.1237322e-06, %v5102_v44  ;;  %vm1648_vm4 = vweird.f32 %v5096_v37 }
 0x17f   : > { %v1011_v5 = vsel %vm1010_vm3, %v4064_v49, %v1007_v34  ;;  %v1652_v42 = vand.u32 2147483647, %v5096_v37  ;;  %v1654_v18 = vand.u32 2147483648, %v5096_v37  ;;  %4067 = vrcp.f32 %v5112_v28 }
 0x180   : > { %v1016_v61 = vsel %vm5105_vm2, %v1015_v27, %v1011_v5  ;;  %v2271_v43 = vadd.f32 1.1283791, %v2270_v7  ;;  %v5123_v45 = vmul.f32 0.5, %v5045_v38  ;;  %v2906_v20 = vmul.f32 %v2905_v58, %v5080_v55 }
 0x181   : > { %v1017_v12 = vmul.f32 %v1016_v61, %v992_v32  ;;  %v2917_v62 = vmul.f32 %v2916_v30, %v5080_v55  ;;  %v1023_v48 = vadd.f32 0.00028619796, %v1022_v47  ;;  %v1033_v51 = vmul.f32 3.8918573e-05, %v5102_v44 }
 0x182   : > { %v4066_v14 = vpop.eup %4065  ;;  %v1632_v46 = vmul.f32 %v1631_v39, %v4986_v25  ;;  %v2907_v2 = vadd.f32 0.05243302, %v2906_v20  ;;  %v5131_v56 = vmul.f32 0.5, %v5049_v1  ;;  %vm5134_vm5 = vcmp.eq.f32.partialorder %v1652_v42, 8.507059e+37 }
 0x183   : > { %v3842_v9 = vclamps-f32 %v1017_v12, 1.0  ;;  %v1644_v38 = vmul.f32 %v4066_v14, %v5096_v37  ;;  %v1655_v59 = vor.u32 1.1754944e-38, %v1654_v18  ;;  %v2918_v21 = vadd.f32 0.112945676, %v2917_v62 }
 0x184   : > { %v2908_v49 = vmul.f32 %v2907_v2, %v5080_v55  ;;  %v1024_v16 = vmul.f32 %v1023_v48, %v5102_v44  ;;  %v1034_v25 = vadd.f32 0.001143296, %v1033_v51  ;;  %v5141_v13 = vmul.f32 0.70710677, %v5077_v23 }
 0x185   : > { %v4068_v52 = vpop.eup %4067  ;;  %v3384_v1 = vadd.f32 1.0, %v3842_v9  ;;  %v1645_v57 = vsub.f32 1.0, %v1644_v38  ;;  %v2272_v4 = vmul.f32 %v2271_v43, %v5000_v17  ;;  %v2919_v0 = vmul.f32 %v2918_v21, %v5080_v55 }
 0x186   : > { %vm1649_vm6 = vweird.f32 %v4066_v14  ;;  %v2284_v60 = vmul.f32 %v4068_v52, %v5112_v28  ;;  %v2909_v63 = vadd.f32 0.18741608, %v2908_v49  ;;  %v1025_v54 = vadd.f32 0.0036580483, %v1024_v16 }
 0x187   : > { %v3448_v8 = vmul.f32 %v3384_v1, %v4989_v6  ;;  %v1646_v11 = vmul.f32 %v4066_v14, %v1645_v57  ;;  %v2920_v53 = vadd.f32 0.4994258, %v2919_v0  ;;  %v1035_v35 = vmul.f32 %v1034_v25, %v5102_v44  ;;  %vm1650_vm7 = vmor %vm1648_vm4, %vm1649_vm6 }
 0x188   : > { %v2285_v36 = vsub.f32 1.0, %v2284_v60  ;;  %v2294_v15 = vand.u32 2147483648, %v5112_v28  ;;  %v1026_v26 = vmul.f32 %v1025_v54, %v5102_v44  ;;  %v1660_v17 = vmul.f32 %v5141_v13, %v5141_v13 }
 0x189   : > { %3512 = vst [vmem:[%s4577_s8 + $0x20] sm:$0xff] %v3448_v8  ;;  %v1647_v29 = vadd.f32 %v4066_v14, %v1646_v11  ;;  %v2921_v10 = vmul.f32 %v2920_v53, %v5080_v55  ;;  %v1036_v31 = vadd.f32 0.014752088, %v1035_v35  ;;  %v625_v33 = vadd.f32 %v4830_v22, %v624_v19 }
 0x18a   : > { %v2286_v6 = vmul.f32 %v4068_v52, %v2285_v36  ;;  %vm2289_vm8 = vweird.f32 %v4068_v52  ;;  %v2292_v7 = vand.u32 2147483647, %v5112_v28  ;;  %v2910_v34 = vmul.f32 %v2909_v63, %v5080_v55 }
 0x18b   : > { %v1651_v27 = vsel %vm1650_vm7, %v4066_v14, %v1647_v29  ;;  %v5160_v58 = vadd.f32 1.0, %v2921_v10  ;;  %v1037_v32 = vmul.f32 %v1036_v31, %v5102_v44  ;;  %v5163_v39 = vmin.f32 %v1660_v17, 16.0 }
 0x18c   : > { %v1656_v30 = vsel %vm5134_vm5, %v1655_v59, %v1651_v27  ;;  %v2287_v47 = vadd.f32 %v4068_v52, %v2286_v6  ;;  %vm2288_vm9 = vweird.f32 %v5112_v28  ;;  %v1027_v37 = vadd.f32 0.05243302, %v1026_v26  ;;  %v664_v59 = vpop.f32.mrf.mxu3  ;;  %v547_v6 = vpop.f32.mrf.mxu0 }
 0x18d   : > { %v1657_v5 = vmul.f32 %v1656_v30, %v1632_v46  ;;  %vm2290_vm10 = vmor %vm2288_vm9, %vm2289_vm8  ;;  %v2295_v42 = vor.u32 1.1754944e-38, %v2294_v15  ;;  %4069 = vrcp.f32 %v5160_v58  ;;  %v5169_v55 = vmul.f32 0.70710677, %v625_v33 }
 0x18e   : > { %v2291_v18 = vsel %vm2290_vm10, %v4068_v52, %v2287_v47  ;;  %vm2293_vm11 = vcmp.eq.f32.partialorder %v2292_v7, 8.507059e+37  ;;  %v2911_v61 = vadd.f32 1.1283791, %v2910_v34  ;;  %v1038_v43 = vadd.f32 0.112945676, %v1037_v32 }
 0x18f   : > { %v3858_v20 = vclamps-f32 %v1657_v5, 1.0  ;;  %v2296_v12 = vsel %vm2293_vm11, %v2295_v42, %v2291_v18  ;;  %v5172_v62 = vmul.f32 0.5, %v5077_v23  ;;  %v1662_v48 = vmul.f32 2.1237322e-06, %v5163_v39 }
 0x190   : > { %v2297_v28 = vmul.f32 %v2296_v12, %v2272_v4  ;;  %v1028_v51 = vmul.f32 %v1027_v37, %v5102_v44  ;;  %v1039_v14 = vmul.f32 %v1038_v43, %v5102_v44  ;;  %v5177_v46 = vmul.f32 0.5, %v625_v33 }
 0x191   : > { %v3400_v2 = vadd.f32 1.0, %v3858_v20  ;;  %v1663_v9 = vadd.f32 0.00028619796, %v1662_v48  ;;  %v1673_v38 = vmul.f32 3.8918573e-05, %v5163_v39  ;;  %v2300_v24 = vmul.f32 %v5169_v55, %v5169_v55 }
 0x192   : > { %v3874_v23 = vclamps-f32 %v2297_v28, 1.0  ;;  %v2912_v21 = vmul.f32 %v2911_v61, %v5065_v3  ;;  %v2932_v49 = vand.u32 2147483647, %v5160_v58  ;;  %v1040_v16 = vadd.f32 0.4994258, %v1039_v14 }
 0x193   : > { %v4070_v25 = vpop.eup %4069  ;;  %v3464_v52 = vmul.f32 %v3400_v2, %v5028_v41  ;;  %v1664_v1 = vmul.f32 %v1663_v9, %v5163_v39  ;;  %v1674_v57 = vadd.f32 0.001143296, %v1673_v38  ;;  %v5186_v4 = vmin.f32 %v2300_v24, 16.0 }
 0x194   : > { %v3416_v0 = vadd.f32 1.0, %v3874_v23  ;;  %v2924_v60 = vmul.f32 %v4070_v25, %v5160_v58  ;;  %v1029_v63 = vadd.f32 0.18741608, %v1028_v51  ;;  %v5190_v54 = vadd.f32 %v4830_v22, %v664_v59 }
 0x195   : > { %3528 = vst [vmem:[%s4577_s8 + $0xa0] sm:$0xff] %v3464_v52  ;;  %v1041_v3 = vmul.f32 %v1040_v16, %v5102_v44  ;;  %v1665_v19 = vadd.f32 0.0036580483, %v1664_v1  ;;  %v1675_v8 = vmul.f32 %v1674_v57, %v5163_v39  ;;  %v2302_v41 = vmul.f32 2.1237322e-06, %v5186_v4 }
 0x196   : > { %v3480_v11 = vmul.f32 %v3416_v0, %v5037_v40  ;;  %v2925_v53 = vsub.f32 1.0, %v2924_v60  ;;  %v2934_v35 = vand.u32 2147483648, %v5160_v58  ;;  %v2313_v36 = vmul.f32 3.8918573e-05, %v5186_v4 }
 0x197   : > { %v5199_v15 = vadd.f32 1.0, %v1041_v3  ;;  %v1666_v26 = vmul.f32 %v1665_v19, %v5163_v39  ;;  %v1676_v17 = vadd.f32 0.014752088, %v1675_v8  ;;  %v2303_v29 = vadd.f32 0.00028619796, %v2302_v41 }
 0x198   : > { %3544 = vst [vmem:[%s4577_s8 + $0x120] sm:$0xff] %v3480_v11  ;;  %v2926_v10 = vmul.f32 %v4070_v25, %v2925_v53  ;;  %vm2929_vm12 = vweird.f32 %v4070_v25  ;;  %v2314_v31 = vadd.f32 0.001143296, %v2313_v36  ;;  %v5204_v33 = vmul.f32 0.70710677, %v5190_v54 }
 0x199   : > { %vm2928_vm13 = vweird.f32 %v5160_v58  ;;  %vm5207_vm14 = vcmp.eq.f32.partialorder %v2932_v49, 8.507059e+37  ;;  %v1030_v7 = vmul.f32 %v1029_v63, %v5102_v44  ;;  %4071 = vrcp.f32 %v5199_v15 }
 0x19a   : > { %v2927_v34 = vadd.f32 %v4070_v25, %v2926_v10  ;;  %v1667_v27 = vadd.f32 0.05243302, %v1666_v26  ;;  %v1677_v32 = vmul.f32 %v1676_v17, %v5163_v39  ;;  %v2304_v30 = vmul.f32 %v2303_v29, %v5186_v4  ;;  %vm2930_vm15 = vmor %vm2928_vm13, %vm2929_vm12 }
 0x19b   : > { %v2935_v47 = vor.u32 1.1754944e-38, %v2934_v35  ;;  %v2315_v37 = vmul.f32 %v2314_v31, %v5186_v4  ;;  %v2940_v58 = vmul.f32 %v5204_v33, %v5204_v33  ;;  %v5219_v5 = vadd.f32 %v4830_v22, %v547_v6 }
 0x19c   : > { %v2931_v42 = vsel %vm2930_vm15, %v4070_v25, %v2927_v34  ;;  %v1668_v44 = vmul.f32 %v1667_v27, %v5163_v39  ;;  %v1678_v18 = vadd.f32 0.112945676, %v1677_v32  ;;  %v2305_v61 = vadd.f32 0.0036580483, %v2304_v30 }
 0x19d   : > { %v2936_v43 = vsel %vm5207_vm14, %v2935_v47, %v2931_v42  ;;  %v1031_v20 = vadd.f32 1.1283791, %v1030_v7  ;;  %v2316_v12 = vadd.f32 0.014752088, %v2315_v37  ;;  %v5224_v48 = vmin.f32 %v2940_v58, 16.0 }
 0x19e   : > { %v2937_v28 = vmul.f32 %v2936_v43, %v2912_v21  ;;  %v1052_v51 = vand.u32 2147483647, %v5199_v15  ;;  %v1679_v14 = vmul.f32 %v1678_v18, %v5163_v39  ;;  %v2306_v22 = vmul.f32 %v2305_v61, %v5186_v4 }
 0x19f   : > { %v4072_v2 = vpop.eup %4071  ;;  %v2317_v9 = vmul.f32 %v2316_v12, %v5186_v4  ;;  %v2942_v38 = vmul.f32 2.1237322e-06, %v5224_v48  ;;  %v2953_v24 = vmul.f32 3.8918573e-05, %v5224_v48  ;;  %v5233_v59 = vmul.f32 0.70710677, %v5219_v5 }
 0x1a0   : > { %v3890_v23 = vclamps-f32 %v2937_v28, 1.0  ;;  %v1044_v49 = vmul.f32 %v4072_v2, %v5199_v15  ;;  %v1054_v21 = vand.u32 2147483648, %v5199_v15  ;;  %v1669_v16 = vadd.f32 0.18741608, %v1668_v44  ;;  %v587_v44 = vpop.f32.mrf.mxu1 }
 0x1a1   : > { %v1680_v25 = vadd.f32 0.4994258, %v1679_v14  ;;  %v2307_v52 = vadd.f32 0.05243302, %v2306_v22  ;;  %v2318_v1 = vadd.f32 0.112945676, %v2317_v9  ;;  %v1060_v63 = vmul.f32 %v5233_v59, %v5233_v59 }
 0x1a2   : > { %v3432_v57 = vadd.f32 1.0, %v3890_v23  ;;  %v1045_v0 = vsub.f32 1.0, %v1044_v49  ;;  %v2943_v60 = vadd.f32 0.00028619796, %v2942_v38  ;;  %v2954_v41 = vadd.f32 0.001143296, %v2953_v24 }
 0x1a3   : > { %v1681_v3 = vmul.f32 %v1680_v25, %v5163_v39  ;;  %v2308_v19 = vmul.f32 %v2307_v52, %v5186_v4  ;;  %v2319_v8 = vmul.f32 %v2318_v1, %v5186_v4  ;;  %vm1049_vm0 = vweird.f32 %v4072_v2 }
 0x1a4   : > { %v3496_v11 = vmul.f32 %v3432_v57, %v5123_v45  ;;  %v1046_v53 = vmul.f32 %v4072_v2, %v1045_v0  ;;  %v2944_v35 = vmul.f32 %v2943_v60, %v5224_v48  ;;  %v1670_v36 = vmul.f32 %v1669_v16, %v5163_v39 }
 0x1a5   : > { %v5245_v26 = vadd.f32 1.0, %v1681_v3  ;;  %v2320_v17 = vadd.f32 0.4994258, %v2319_v8  ;;  %v2955_v29 = vmul.f32 %v2954_v41, %v5224_v48  ;;  %v1032_v10 = vmul.f32 %v1031_v20, %v5088_v50 }
 0x1a6   : > { %3560 = vst [vmem:[%s4577_s8 + $0x1a0] sm:$0xff] %v3496_v11  ;;  %v1047_v31 = vadd.f32 %v4072_v2, %v1046_v53  ;;  %vm1048_vm1 = vweird.f32 %v5199_v15  ;;  %v2945_v6 = vadd.f32 0.0036580483, %v2944_v35  ;;  %v1055_v45 = vor.u32 1.1754944e-38, %v1054_v21 }
 0x1a7   : > { %vm1050_vm2 = vmor %vm1048_vm1, %vm1049_vm0  ;;  %4073 = vrcp.f32 %v5245_v26  ;;  %v2309_v40 = vadd.f32 0.18741608, %v2308_v19  ;;  %v5252_v7 = vmin.f32 %v1060_v63, 16.0  ;;  %vm1053_vm3 = vcmp.eq.f32.partialorder %v1052_v51, 8.507059e+37 }
 0x1a8   : > { %v1051_v39 = vsel %vm1050_vm2, %v4072_v2, %v1047_v31  ;;  %v2321_v34 = vmul.f32 %v2320_v17, %v5186_v4  ;;  %v2946_v27 = vmul.f32 %v2945_v6, %v5224_v48  ;;  %v1671_v30 = vadd.f32 1.1283791, %v1670_v36  ;;  %v5274_v2 = vld [vmem:[%s4344_s19] ss:$0 sm:$0xff] }
 0x1a9   : > { %v1056_v32 = vsel %vm1053_vm3, %v1055_v45, %v1051_v39  ;;  %v5257_v50 = vmul.f32 0.5, %v5190_v54  ;;  %v2956_v15 = vadd.f32 0.014752088, %v2955_v29  ;;  %v1692_v37 = vand.u32 2147483647, %v5245_v26  ;;  %v627_v45 = vpop.f32.mrf.mxu2 }
 0x1aa   : > { %v1057_v47 = vmul.f32 %v1056_v32, %v1032_v10  ;;  %v5260_v58 = vadd.f32 1.0, %v2321_v34  ;;  %v2947_v42 = vadd.f32 0.05243302, %v2946_v27  ;;  %v1694_v18 = vand.u32 2147483648, %v5245_v26 }
 0x1ab   : > { %v2310_v61 = vmul.f32 %v2309_v40, %v5186_v4  ;;  %v2957_v43 = vmul.f32 %v2956_v15, %v5224_v48  ;;  %v1062_v20 = vmul.f32 2.1237322e-06, %v5252_v7  ;;  %v5268_v54 = vmul.f32 0.5, %v5219_v5 }
 0x1ac   : > { %v3843_v12 = vclamps-f32 %v1057_v47, 1.0  ;;  %4075 = vrcp.f32 %v5260_v58  ;;  %v1073_v28 = vmul.f32 3.8918573e-05, %v5252_v7  ;;  %v1672_v14 = vmul.f32 %v1671_v30, %v5141_v13  ;;  %v667_v30 = vpop.f32.mrf.mxu3 }
 0x1ad   : > { %v4074_v51 = vpop.eup %4073  ;;  %vm1688_vm4 = vweird.f32 %v5245_v26  ;;  %v2958_v22 = vadd.f32 0.112945676, %v2957_v43  ;;  %v588_v4 = vadd.f32 %v5274_v2, %v587_v44  ;;  %v2948_v24 = vmul.f32 %v2947_v42, %v5224_v48 }
 0x1ae   : > { %v3385_v9 = vadd.f32 1.0, %v3843_v12  ;;  %v1684_v38 = vmul.f32 %v4074_v51, %v5245_v26  ;;  %v1063_v5 = vadd.f32 0.00028619796, %v1062_v20  ;;  %vm5279_vm5 = vcmp.eq.f32.partialorder %v1692_v37, 8.507059e+37 }
 0x1af   : > { %v1695_v49 = vor.u32 1.1754944e-38, %v1694_v18  ;;  %v2311_v13 = vadd.f32 1.1283791, %v2310_v61  ;;  %v2959_v21 = vmul.f32 %v2958_v22, %v5224_v48  ;;  %v1074_v1 = vadd.f32 0.001143296, %v1073_v28 }
 0x1b0   : > { %v3449_v16 = vmul.f32 %v3385_v9, %v5131_v56  ;;  %v1685_v25 = vsub.f32 1.0, %v1684_v38  ;;  %v1064_v52 = vmul.f32 %v1063_v5, %v5252_v7  ;;  %vm1689_vm6 = vweird.f32 %v4074_v51 }
 0x1b1   : > { %v2960_v57 = vadd.f32 0.4994258, %v2959_v21  ;;  %v5286_v0 = vmul.f32 0.5, %v588_v4  ;;  %v5288_v60 = vmul.f32 0.70710677, %v588_v4  ;;  %v1075_v41 = vmul.f32 %v1074_v1, %v5252_v7  ;;  %vm1690_vm7 = vmor %vm1688_vm4, %vm1689_vm6 }
 0x1b2   : > { %v4076_v63 = vpop.eup %4075  ;;  %3513 = vst [vmem:[%s4577_s8 + $0x28] sm:$0xff] %v3449_v16  ;;  %v1686_v3 = vmul.f32 %v4074_v51, %v1685_v25  ;;  %v2949_v19 = vadd.f32 0.18741608, %v2948_v24  ;;  %v1065_v8 = vadd.f32 0.0036580483, %v1064_v52  ;;  %v2312_v11 = vmul.f32 %v2311_v13, %v5169_v55 }
 0x1b3   : > { %v2324_v56 = vmul.f32 %v4076_v63, %v5260_v58  ;;  %v2332_v53 = vand.u32 2147483647, %v5260_v58  ;;  %v2961_v35 = vmul.f32 %v2960_v57, %v5224_v48  ;;  %v1076_v29 = vadd.f32 0.014752088, %v1075_v41 }
 0x1b4   : > { %v1687_v36 = vadd.f32 %v4074_v51, %v1686_v3  ;;  %v1066_v17 = vmul.f32 %v1065_v8, %v5252_v7  ;;  %v1700_v10 = vmul.f32 %v5288_v60, %v5288_v60  ;;  %vm2328_vm8 = vweird.f32 %v5260_v58 }
 0x1b5   : > { %v2325_v31 = vsub.f32 1.0, %v2324_v56  ;;  %v2334_v55 = vand.u32 2147483648, %v5260_v58  ;;  %v5304_v6 = vadd.f32 1.0, %v2961_v35  ;;  %v2950_v39 = vmul.f32 %v2949_v19, %v5224_v48 }
 0x1b6   : > { %v1691_v40 = vsel %vm1690_vm7, %v4074_v51, %v1687_v36  ;;  %v1077_v34 = vmul.f32 %v1076_v29, %v5252_v7  ;;  %v5308_v27 = vmin.f32 %v1700_v10, 16.0  ;;  %vm2329_vm9 = vweird.f32 %v4076_v63 }
 0x1b7   : > { %v1696_v32 = vsel %vm5279_vm5, %v1695_v49, %v1691_v40  ;;  %v2326_v26 = vmul.f32 %v4076_v63, %v2325_v31  ;;  %4077 = vrcp.f32 %v5304_v6  ;;  %vm5313_vm10 = vcmp.eq.f32.partialorder %v2332_v53, 8.507059e+37  ;;  %vm2330_vm11 = vmor %vm2328_vm8, %vm2329_vm9 }
 0x1b8   : > { %v1697_v15 = vmul.f32 %v1696_v32, %v1672_v14  ;;  %v1067_v37 = vadd.f32 0.05243302, %v1066_v17  ;;  %v628_v48 = vadd.f32 %v5274_v2, %v627_v45  ;;  %v1078_v44 = vadd.f32 0.112945676, %v1077_v34 }
 0x1b9   : > { %v2327_v42 = vadd.f32 %v4076_v63, %v2326_v26  ;;  %v1702_v18 = vmul.f32 2.1237322e-06, %v5308_v27  ;;  %v1713_v61 = vmul.f32 3.8918573e-05, %v5308_v27  ;;  %v2335_v20 = vor.u32 1.1754944e-38, %v2334_v55 }
 0x1ba   : > { %v3859_v43 = vclamps-f32 %v1697_v15, 1.0  ;;  %v2951_v12 = vadd.f32 1.1283791, %v2950_v39  ;;  %v5323_v28 = vadd.f32 %v5274_v2, %v667_v30  ;;  %v1079_v14 = vmul.f32 %v1078_v44, %v5252_v7 }
 0x1bb   : > { %v2331_v51 = vsel %vm2330_vm11, %v4076_v63, %v2327_v42  ;;  %v1703_v22 = vadd.f32 0.00028619796, %v1702_v18  ;;  %v1714_v4 = vadd.f32 0.001143296, %v1713_v61  ;;  %v1068_v24 = vmul.f32 %v1067_v37, %v5252_v7 }
 0x1bc   : > { %v3401_v9 = vadd.f32 1.0, %v3859_v43  ;;  %v2336_v38 = vsel %vm5313_vm10, %v2335_v20, %v2331_v51  ;;  %v5329_v5 = vmul.f32 0.70710677, %v628_v48  ;;  %v1080_v49 = vadd.f32 0.4994258, %v1079_v14 }
 0x1bd   : > { %v4078_v58 = vpop.eup %4077  ;;  %v2337_v23 = vmul.f32 %v2336_v38, %v2312_v11  ;;  %v1704_v13 = vmul.f32 %v1703_v22, %v5308_v27  ;;  %v1715_v21 = vmul.f32 %v1714_v4, %v5308_v27  ;;  %v2952_v25 = vmul.f32 %v2951_v12, %v5204_v33 }
 0x1be   : > { %v3465_v16 = vmul.f32 %v3401_v9, %v5172_v62  ;;  %v2964_v52 = vmul.f32 %v4078_v58, %v5304_v6  ;;  %v2972_v1 = vand.u32 2147483647, %v5304_v6  ;;  %v1081_v63 = vmul.f32 %v1080_v49, %v5252_v7 }
 0x1bf   : > { %v3875_v57 = vclamps-f32 %v2337_v23, 1.0  ;;  %v1705_v3 = vadd.f32 0.0036580483, %v1704_v13  ;;  %v1716_v19 = vadd.f32 0.014752088, %v1715_v21  ;;  %v2974_v41 = vand.u32 2147483648, %v5304_v6 }
 0x1c0   : > { %3529 = vst [vmem:[%s4577_s8 + $0xa8] sm:$0xff] %v3465_v16  ;;  %v2965_v8 = vsub.f32 1.0, %v2964_v52  ;;  %v1069_v11 = vadd.f32 0.18741608, %v1068_v24  ;;  %v2340_v56 = vmul.f32 %v5329_v5, %v5329_v5  ;;  %v5342_v33 = vadd.f32 1.0, %v1081_v63 }
 0x1c1   : > { %v3417_v62 = vadd.f32 1.0, %v3875_v57  ;;  %v1706_v53 = vmul.f32 %v1705_v3, %v5308_v27  ;;  %v1717_v35 = vmul.f32 %v1716_v19, %v5308_v27  ;;  %vm2969_vm12 = vweird.f32 %v4078_v58 }
 0x1c2   : > { %v2966_v36 = vmul.f32 %v4078_v58, %v2965_v8  ;;  %v5346_v17 = vmin.f32 %v2340_v56, 16.0  ;;  %v5349_v29 = vmul.f32 0.70710677, %v5323_v28  ;;  %vm2968_vm13 = vweird.f32 %v5304_v6  ;;  %v549_v6 = vpop.f32.mrf.mxu0 }
 0x1c3   : > { %v3481_v10 = vmul.f32 %v3417_v62, %v5177_v46  ;;  %4079 = vrcp.f32 %v5342_v33  ;;  %v5354_v31 = vmul.f32 0.5, %v628_v48  ;;  %v1070_v45 = vmul.f32 %v1069_v11, %v5252_v7  ;;  %vm2970_vm14 = vmor %vm2968_vm13, %vm2969_vm12  ;;  %v589_v11 = vpop.f32.mrf.mxu1 }
 0x1c4   : > { %v2967_v55 = vadd.f32 %v4078_v58, %v2966_v36  ;;  %v1707_v40 = vadd.f32 0.05243302, %v1706_v53  ;;  %v1718_v39 = vadd.f32 0.112945676, %v1717_v35  ;;  %v2975_v34 = vor.u32 1.1754944e-38, %v2974_v41 }
 0x1c5   : > { %3545 = vst [vmem:[%s4577_s8 + $0x128] sm:$0xff] %v3481_v10  ;;  %v2342_v32 = vmul.f32 2.1237322e-06, %v5346_v17  ;;  %v2353_v26 = vmul.f32 3.8918573e-05, %v5346_v17  ;;  %v2980_v46 = vmul.f32 %v5349_v29, %v5349_v29  ;;  %vm2973_vm15 = vcmp.eq.f32.partialorder %v2972_v1, 8.507059e+37 }
 0x1c6   : > { %v2971_v30 = vsel %vm2970_vm14, %v4078_v58, %v2967_v55  ;;  %v1708_v15 = vmul.f32 %v1707_v40, %v5308_v27  ;;  %v1719_v47 = vmul.f32 %v1718_v39, %v5308_v27  ;;  %v1071_v18 = vadd.f32 1.1283791, %v1070_v45 }
 0x1c7   : > { %v2976_v7 = vsel %vm2973_vm15, %v2975_v34, %v2971_v30  ;;  %v2343_v37 = vadd.f32 0.00028619796, %v2342_v32  ;;  %v2354_v48 = vadd.f32 0.001143296, %v2353_v26  ;;  %v5364_v42 = vmin.f32 %v2980_v46, 16.0 }
 0x1c8   : > { %v2977_v44 = vmul.f32 %v2976_v7, %v2952_v25  ;;  %v1720_v61 = vadd.f32 0.4994258, %v1719_v47  ;;  %v5367_v43 = vadd.f32 %v5274_v2, %v549_v6  ;;  %v1092_v38 = vand.u32 2147483647, %v5342_v33 }
 0x1c9   : > { %v4080_v20 = vpop.eup %4079  ;;  %v2344_v12 = vmul.f32 %v2343_v37, %v5346_v17  ;;  %v2355_v51 = vmul.f32 %v2354_v48, %v5346_v17  ;;  %v2982_v14 = vmul.f32 2.1237322e-06, %v5364_v42  ;;  %v2993_v22 = vmul.f32 3.8918573e-05, %v5364_v42 }
 0x1ca   : > { %v3891_v4 = vclamps-f32 %v2977_v44, 1.0  ;;  %v1084_v9 = vmul.f32 %v4080_v20, %v5342_v33  ;;  %v1709_v24 = vadd.f32 0.18741608, %v1708_v15  ;;  %v1721_v58 = vmul.f32 %v1720_v61, %v5308_v27 }
 0x1cb   : > { %v2345_v23 = vadd.f32 0.0036580483, %v2344_v12  ;;  %v2356_v49 = vadd.f32 0.014752088, %v2355_v51  ;;  %v2983_v13 = vadd.f32 0.00028619796, %v2982_v14  ;;  %vm1089_vm0 = vweird.f32 %v4080_v20 }
 0x1cc   : > { %v3433_v21 = vadd.f32 1.0, %v3891_v4  ;;  %v1085_v16 = vsub.f32 1.0, %v1084_v9  ;;  %v1094_v25 = vand.u32 2147483648, %v5342_v33  ;;  %v2994_v52 = vadd.f32 0.001143296, %v2993_v22 }
 0x1cd   : > { %v5377_v1 = vadd.f32 1.0, %v1721_v58  ;;  %v2346_v57 = vmul.f32 %v2345_v23, %v5346_v17  ;;  %v2357_v63 = vmul.f32 %v2356_v49, %v5346_v17  ;;  %v2984_v3 = vmul.f32 %v2983_v13, %v5364_v42 }
 0x1ce   : > { %v3497_v19 = vmul.f32 %v3433_v21, %v5257_v50  ;;  %v1086_v8 = vmul.f32 %v4080_v20, %v1085_v16  ;;  %v2995_v41 = vmul.f32 %v2994_v52, %v5364_v42  ;;  %v1072_v56 = vmul.f32 %v1071_v18, %v5233_v59 }
 0x1cf   : > { %vm1088_vm1 = vweird.f32 %v5342_v33  ;;  %v1710_v62 = vmul.f32 %v1709_v24, %v5308_v27  ;;  %4081 = vrcp.f32 %v5377_v1  ;;  %vm1093_vm2 = vcmp.eq.f32.partialorder %v1092_v38, 8.507059e+37 }
 0x1d0   : > { %3561 = vst [vmem:[%s4577_s8 + $0x1a8] sm:$0xff] %v3497_v19  ;;  %v1087_v53 = vadd.f32 %v4080_v20, %v1086_v8  ;;  %v2347_v35 = vadd.f32 0.05243302, %v2346_v57  ;;  %v2358_v36 = vadd.f32 0.112945676, %v2357_v63  ;;  %vm1090_vm3 = vmor %vm1088_vm1, %vm1089_vm0  ;;  %v1095_v50 = vor.u32 1.1754944e-38, %v1094_v25 }
 0x1d1   : > { %v2985_v10 = vadd.f32 0.0036580483, %v2984_v3  ;;  %v2996_v55 = vadd.f32 0.014752088, %v2995_v41  ;;  %v5390_v45 = vadd.f32 %v5274_v2, %v589_v11  ;;  %v5395_v27 = vmul.f32 0.70710677, %v5367_v43  ;;  %v629_v41 = vpop.f32.mrf.mxu2 }
 0x1d2   : > { %v1091_v40 = vsel %vm1090_vm3, %v4080_v20, %v1087_v53  ;;  %v2348_v59 = vmul.f32 %v2347_v35, %v5346_v17  ;;  %v2359_v33 = vmul.f32 %v2358_v36, %v5346_v17  ;;  %v1711_v34 = vadd.f32 1.1283791, %v1710_v62 }
 0x1d3   : > { %v1096_v39 = vsel %vm1093_vm2, %v1095_v50, %v1091_v40  ;;  %v2986_v32 = vmul.f32 %v2985_v10, %v5364_v42  ;;  %v2997_v26 = vmul.f32 %v2996_v55, %v5364_v42  ;;  %v1100_v15 = vmul.f32 %v5395_v27, %v5395_v27 }
 0x1d4   : > { %v1097_v46 = vmul.f32 %v1096_v39, %v1072_v56  ;;  %v2349_v6 = vadd.f32 0.18741608, %v2348_v59  ;;  %v2360_v30 = vadd.f32 0.4994258, %v2359_v33  ;;  %v5402_v48 = vmul.f32 0.70710677, %v5390_v45 }
 0x1d5   : > { %v4082_v47 = vpop.eup %4081  ;;  %v2987_v7 = vadd.f32 0.05243302, %v2986_v32  ;;  %v2998_v37 = vadd.f32 0.112945676, %v2997_v26  ;;  %v1732_v61 = vand.u32 2147483647, %v5377_v1  ;;  %v1712_v9 = vmul.f32 %v1711_v34, %v5288_v60 }
 0x1d6   : > { %v3844_v44 = vclamps-f32 %v1097_v46, 1.0  ;;  %v1724_v18 = vmul.f32 %v4082_v47, %v5377_v1  ;;  %v2350_v20 = vmul.f32 %v2349_v6, %v5346_v17  ;;  %v2361_v12 = vmul.f32 %v2360_v30, %v5346_v17 }
 0x1d7   : > { %v2988_v51 = vmul.f32 %v2987_v7, %v5364_v42  ;;  %v2999_v14 = vmul.f32 %v2998_v37, %v5364_v42  ;;  %v5410_v22 = vmin.f32 %v1100_v15, 16.0  ;;  %v1734_v24 = vand.u32 2147483648, %v5377_v1 }
 0x1d8   : > { %v3386_v4 = vadd.f32 1.0, %v3844_v44  ;;  %v1725_v38 = vsub.f32 1.0, %v1724_v18  ;;  %v5414_v58 = vadd.f32 1.0, %v2361_v12  ;;  %v1740_v17 = vmul.f32 %v5402_v48, %v5402_v48 }
 0x1d9   : > { %v2989_v23 = vadd.f32 0.18741608, %v2988_v51  ;;  %v3000_v49 = vadd.f32 0.4994258, %v2999_v14  ;;  %vm1729_vm4 = vweird.f32 %v4082_v47  ;;  %v1102_v16 = vmul.f32 2.1237322e-06, %v5410_v22 }
 0x1da   : > { %v3450_v13 = vmul.f32 %v3386_v4, %v5268_v54  ;;  %v1726_v21 = vmul.f32 %v4082_v47, %v1725_v38  ;;  %vm1728_vm5 = vweird.f32 %v5377_v1  ;;  %vm5421_vm6 = vcmp.eq.f32.partialorder %v1732_v61, 8.507059e+37 }
 0x1db   : > { %v2351_v25 = vadd.f32 1.1283791, %v2350_v20  ;;  %4083 = vrcp.f32 %v5414_v58  ;;  %v2990_v57 = vmul.f32 %v2989_v23, %v5364_v42  ;;  %v3001_v63 = vmul.f32 %v3000_v49, %v5364_v42  ;;  %vm1730_vm7 = vmor %vm1728_vm5, %vm1729_vm4 }
 0x1dc   : > { %3514 = vst [vmem:[%s4577_s8 + $0x30] sm:$0xff] %v3450_v13  ;;  %v1727_v52 = vadd.f32 %v4082_v47, %v1726_v21  ;;  %v1103_v54 = vadd.f32 0.00028619796, %v1102_v16  ;;  %v1735_v3 = vor.u32 1.1754944e-38, %v1734_v24  ;;  %v2372_v19 = vand.u32 2147483647, %v5414_v58 }
 0x1dd   : > { %v1113_v1 = vmul.f32 3.8918573e-05, %v5410_v22  ;;  %v5431_v8 = vmin.f32 %v1740_v17, 16.0  ;;  %v2374_v56 = vand.u32 2147483648, %v5414_v58  ;;  %v5434_v62 = vadd.f32 1.0, %v3001_v63 }
 0x1de   : > { %v1731_v11 = vsel %vm1730_vm7, %v4082_v47, %v1727_v52  ;;  %v1104_v53 = vmul.f32 %v1103_v54, %v5410_v22  ;;  %v2991_v35 = vadd.f32 1.1283791, %v2990_v57  ;;  %v5443_v40 = vadd.f32 %v5274_v2, %v629_v41 }
 0x1df   : > { %v1736_v42 = vsel %vm5421_vm6, %v1735_v3, %v1731_v11  ;;  %v1114_v36 = vadd.f32 0.001143296, %v1113_v1  ;;  %v1742_v50 = vmul.f32 2.1237322e-06, %v5431_v8  ;;  %4085 = vrcp.f32 %v5434_v62 }
 0x1e0   : > { %v1737_v10 = vmul.f32 %v1736_v42, %v1712_v9  ;;  %v1753_v55 = vmul.f32 3.8918573e-05, %v5431_v8  ;;  %v2352_v33 = vmul.f32 %v2351_v25, %v5329_v5  ;;  %vm2368_vm8 = vweird.f32 %v5414_v58 }
 0x1e1   : > { %v4084_v59 = vpop.eup %4083  ;;  %v1105_v39 = vadd.f32 0.0036580483, %v1104_v53  ;;  %v1115_v34 = vmul.f32 %v1114_v36, %v5410_v22  ;;  %vm5449_vm9 = vcmp.eq.f32.partialorder %v2372_v19, 8.507059e+37  ;;  %v2375_v6 = vor.u32 1.1754944e-38, %v2374_v56 }
 0x1e2   : > { %v3860_v32 = vclamps-f32 %v1737_v10, 1.0  ;;  %v2364_v26 = vmul.f32 %v4084_v59, %v5414_v58  ;;  %v1743_v30 = vadd.f32 0.00028619796, %v1742_v50  ;;  %v5454_v15 = vmul.f32 %v2991_v35, %v5349_v29 }
 0x1e3   : > { %v3012_v47 = vand.u32 2147483647, %v5434_v62  ;;  %v1106_v5 = vmul.f32 %v1105_v39, %v5410_v22  ;;  %v1116_v7 = vadd.f32 0.014752088, %v1115_v34  ;;  %v1754_v61 = vadd.f32 0.001143296, %v1753_v55  ;;  %v669_v55 = vpop.f32.mrf.mxu3 }
 0x1e4   : > { %v3402_v37 = vadd.f32 1.0, %v3860_v32  ;;  %v2365_v44 = vsub.f32 1.0, %v2364_v26  ;;  %v1744_v18 = vmul.f32 %v1743_v30, %v5431_v8  ;;  %vm2369_vm10 = vweird.f32 %v4084_v59 }
 0x1e5   : > { %vm3008_vm11 = vweird.f32 %v5434_v62  ;;  %v1107_v20 = vadd.f32 0.05243302, %v1106_v5  ;;  %v1117_v12 = vmul.f32 %v1116_v7, %v5410_v22  ;;  %v5462_v29 = vmul.f32 0.70710677, %v5443_v40  ;;  %v4086_v51 = vpop.eup %4085  ;;  %vm2370_vm12 = vmor %vm2368_vm8, %vm2369_vm10 }
 0x1e6   : > { %v3466_v14 = vmul.f32 %v3402_v37, %v5286_v0  ;;  %v2366_v4 = vmul.f32 %v4084_v59, %v2365_v44  ;;  %v1745_v9 = vadd.f32 0.0036580483, %v1744_v18  ;;  %v1755_v38 = vmul.f32 %v1754_v61, %v5431_v8 }
 0x1e7   : > { %v3004_v24 = vmul.f32 %v4086_v51, %v5434_v62  ;;  %v3014_v23 = vand.u32 2147483648, %v5434_v62  ;;  %v1108_v49 = vmul.f32 %v1107_v20, %v5410_v22  ;;  %v1118_v17 = vadd.f32 0.112945676, %v1117_v12 }
 0x1e8   : > { %3530 = vst [vmem:[%s4577_s8 + $0xb0] sm:$0xff] %v3466_v14  ;;  %v2367_v13 = vadd.f32 %v4084_v59, %v2366_v4  ;;  %v1746_v21 = vmul.f32 %v1745_v9, %v5431_v8  ;;  %v1756_v16 = vadd.f32 0.014752088, %v1755_v38  ;;  %v2380_v60 = vmul.f32 %v5462_v29, %v5462_v29  ;;  %v552_v14 = vpop.f32.mrf.mxu0 }
 0x1e9   : > { %v3005_v0 = vsub.f32 1.0, %v3004_v24  ;;  %vm5476_vm13 = vcmp.eq.f32.partialorder %v3012_v47, 8.507059e+37  ;;  %v1109_v52 = vadd.f32 0.18741608, %v1108_v49  ;;  %v1119_v57 = vmul.f32 %v1118_v17, %v5410_v22 }
 0x1ea   : > { %v2371_v63 = vsel %vm2370_vm12, %v4084_v59, %v2367_v13  ;;  %v1747_v54 = vadd.f32 0.05243302, %v1746_v21  ;;  %v1757_v3 = vmul.f32 %v1756_v16, %v5431_v8  ;;  %v5482_v19 = vmin.f32 %v2380_v60, 16.0 }
 0x1eb   : > { %v2376_v1 = vsel %vm5449_vm9, %v2375_v6, %v2371_v63  ;;  %v3006_v41 = vmul.f32 %v4086_v51, %v3005_v0  ;;  %vm3009_vm14 = vweird.f32 %v4086_v51  ;;  %v1120_v58 = vadd.f32 0.4994258, %v1119_v57  ;;  %v592_v57 = vpop.f32.mrf.mxu1 }
 0x1ec   : > { %v2377_v11 = vmul.f32 %v2376_v1, %v2352_v33  ;;  %v1748_v56 = vmul.f32 %v1747_v54, %v5431_v8  ;;  %v1758_v53 = vadd.f32 0.112945676, %v1757_v3  ;;  %v2382_v42 = vmul.f32 2.1237322e-06, %v5482_v19  ;;  %vm3010_vm15 = vmor %vm3008_vm11, %vm3009_vm14 }
 0x1ed   : > { %v3007_v35 = vadd.f32 %v4086_v51, %v3006_v41  ;;  %v3015_v36 = vor.u32 1.1754944e-38, %v3014_v23  ;;  %v1121_v50 = vmul.f32 %v1120_v58, %v5410_v22  ;;  %v2393_v10 = vmul.f32 3.8918573e-05, %v5482_v19 }
 0x1ee   : > { %v3876_v59 = vclamps-f32 %v2377_v11, 1.0  ;;  %v1110_v39 = vmul.f32 %v1109_v52, %v5410_v22  ;;  %v1749_v34 = vadd.f32 0.18741608, %v1748_v56  ;;  %v1759_v33 = vmul.f32 %v1758_v53, %v5431_v8 }
 0x1ef   : > { %v3011_v32 = vsel %vm3010_vm15, %v4086_v51, %v3007_v35  ;;  %v5494_v26 = vadd.f32 1.0, %v1121_v50  ;;  %v2383_v46 = vadd.f32 0.00028619796, %v2382_v42  ;;  %v2394_v6 = vadd.f32 0.001143296, %v2393_v10 }
 0x1f0   : > { %v3418_v30 = vadd.f32 1.0, %v3876_v59  ;;  %v3016_v47 = vsel %vm5476_vm13, %v3015_v36, %v3011_v32  ;;  %v1760_v5 = vadd.f32 0.4994258, %v1759_v33  ;;  %v670_v7 = vadd.f32 %v5274_v2, %v669_v55 }
 0x1f1   : > { %v746_v62 = vmul.f32 0.5, %v5323_v28  ;;  %v3017_v22 = vmul.f32 %v3016_v47, %v5454_v15  ;;  %v5502_v37 = vmul.f32 0.5, %v5367_v43  ;;  %4087 = vrcp.f32 %v5494_v26 }
 0x1f2   : > { %v3482_v44 = vmul.f32 %v3418_v30, %v5354_v31  ;;  %v5507_v18 = vmul.f32 0.5, %v5390_v45  ;;  %v1750_v61 = vmul.f32 %v1749_v34, %v5431_v8  ;;  %v1761_v20 = vmul.f32 %v1760_v5, %v5431_v8 }
 0x1f3   : > { %v3892_v12 = vclamps-f32 %v3017_v22, 1.0  ;;  %v1111_v51 = vadd.f32 1.1283791, %v1110_v39  ;;  %v2384_v28 = vmul.f32 %v2383_v46, %v5482_v19  ;;  %v2395_v15 = vmul.f32 %v2394_v6, %v5482_v19 }
 0x1f4   : > { %3546 = vst [vmem:[%s4577_s8 + $0x130] sm:$0xff] %v3482_v44  ;;  %v1132_v43 = vand.u32 2147483647, %v5494_v26  ;;  %v5515_v4 = vadd.f32 1.0, %v1761_v20  ;;  %v5517_v31 = vmul.f32 0.70710677, %v670_v7  ;;  %v5525_v49 = vadd.f32 %v5274_v2, %v552_v14 }
 0x1f5   : > { %v3434_v45 = vadd.f32 1.0, %v3892_v12  ;;  %v5520_v9 = vmul.f32 0.5, %v5443_v40  ;;  %v2385_v38 = vadd.f32 0.0036580483, %v2384_v28  ;;  %v2396_v8 = vadd.f32 0.014752088, %v2395_v15 }
 0x1f6   : > { %v1134_v24 = vand.u32 2147483648, %v5494_v26  ;;  %v1751_v23 = vadd.f32 1.1283791, %v1750_v61  ;;  %4089 = vrcp.f32 %v5515_v4  ;;  %v3020_v40 = vmul.f32 %v5517_v31, %v5517_v31 }
 0x1f7   : > { %v4088_v17 = vpop.eup %4087  ;;  %v3498_v13 = vmul.f32 %v3434_v45, %v746_v62  ;;  %v2386_v21 = vmul.f32 %v2385_v38, %v5482_v19  ;;  %v2397_v16 = vmul.f32 %v2396_v8, %v5482_v19  ;;  %v1112_v60 = vmul.f32 %v1111_v51, %v5395_v27 }
 0x1f8   : > { %v1124_v0 = vmul.f32 %v4088_v17, %v5494_v26  ;;  %vm5533_vm0 = vcmp.eq.f32.partialorder %v1132_v43, 8.507059e+37  ;;  %v5537_v52 = vmul.f32 0.5, %v670_v7  ;;  %vm1128_vm1 = vweird.f32 %v5494_v26 }
 0x1f9   : > { %3562 = vst [vmem:[%s4577_s8 + $0x1b0] sm:$0xff] %v3498_v13  ;;  %v2387_v63 = vadd.f32 0.05243302, %v2386_v21  ;;  %v2398_v54 = vadd.f32 0.112945676, %v2397_v16  ;;  %v5541_v3 = vmin.f32 %v3020_v40, 16.0  ;;  %v1752_v27 = vmul.f32 %v1751_v23, %v5402_v48 }
 0x1fa   : > { %v1125_v1 = vsub.f32 1.0, %v1124_v0  ;;  %v1135_v41 = vor.u32 1.1754944e-38, %v1134_v24  ;;  %v5545_v58 = vmul.f32 0.70710677, %v5525_v49  ;;  %v5551_v42 = vadd.f32 %v5274_v2, %v592_v57 }
 0x1fb   : > { %v2399_v11 = vmul.f32 %v2398_v54, %v5482_v19  ;;  %v3022_v56 = vmul.f32 2.1237322e-06, %v5541_v3  ;;  %v3033_v53 = vmul.f32 3.8918573e-05, %v5541_v3  ;;  %vm1129_vm2 = vweird.f32 %v4088_v17 }
 0x1fc   : > { %v4090_v35 = vpop.eup %4089  ;;  %v1126_v36 = vmul.f32 %v4088_v17, %v1125_v1  ;;  %v1772_v50 = vand.u32 2147483647, %v5515_v4  ;;  %v1140_v48 = vmul.f32 %v5545_v58, %v5545_v58  ;;  %v1774_v55 = vand.u32 2147483648, %v5515_v4  ;;  %vm1130_vm3 = vmor %vm1128_vm1, %vm1129_vm2 }
 0x1fd   : > { %v1764_v10 = vmul.f32 %v4090_v35, %v5515_v4  ;;  %v2388_v59 = vmul.f32 %v2387_v63, %v5482_v19  ;;  %v2400_v39 = vadd.f32 0.4994258, %v2399_v11  ;;  %v3023_v33 = vadd.f32 0.00028619796, %v3022_v56 }
 0x1fe   : > { %v1127_v34 = vadd.f32 %v4088_v17, %v1126_v36  ;;  %v3034_v32 = vadd.f32 0.001143296, %v3033_v53  ;;  %v5559_v46 = vmin.f32 %v1140_v48, 16.0  ;;  %vm1769_vm4 = vweird.f32 %v4090_v35 }
 0x1ff   : > { %v1765_v6 = vsub.f32 1.0, %v1764_v10  ;;  %v2401_v30 = vmul.f32 %v2400_v39, %v5482_v19  ;;  %v5565_v47 = vmul.f32 0.70710677, %v5551_v42  ;;  %v3024_v7 = vmul.f32 %v3023_v33, %v5541_v3 }
 0x200   : > { %v1131_v5 = vsel %vm1130_vm3, %v4088_v17, %v1127_v34  ;;  %v3035_v62 = vmul.f32 %v3034_v32, %v5541_v3  ;;  %v1142_v22 = vmul.f32 2.1237322e-06, %v5559_v46  ;;  %v2389_v26 = vadd.f32 0.18741608, %v2388_v59 }
 0x201   : > { %v1136_v44 = vsel %vm5533_vm0, %v1135_v41, %v1131_v5  ;;  %v1766_v61 = vmul.f32 %v4090_v35, %v1765_v6  ;;  %v5572_v20 = vadd.f32 1.0, %v2401_v30  ;;  %v3025_v51 = vadd.f32 0.0036580483, %v3024_v7 }
 0x202   : > { %v1137_v12 = vmul.f32 %v1136_v44, %v1112_v60  ;;  %v3036_v28 = vadd.f32 0.014752088, %v3035_v62  ;;  %v1143_v15 = vadd.f32 0.00028619796, %v1142_v22  ;;  %vm1768_vm5 = vweird.f32 %v5515_v4  ;;  %v632_v4 = vpop.f32.mrf.mxu2 }
 0x203   : > { %v1767_v14 = vadd.f32 %v4090_v35, %v1766_v61  ;;  %vm1773_vm6 = vcmp.eq.f32.partialorder %v1772_v50, 8.507059e+37  ;;  %4091 = vrcp.f32 %v5572_v20  ;;  %vm1770_vm7 = vmor %vm1768_vm5, %vm1769_vm4  ;;  %v1775_v45 = vor.u32 1.1754944e-38, %v1774_v55 }
 0x204   : > { %v3845_v43 = vclamps-f32 %v1137_v12, 1.0  ;;  %v3026_v38 = vmul.f32 %v3025_v51, %v5541_v3  ;;  %v1780_v8 = vmul.f32 %v5565_v47, %v5565_v47  ;;  %v3037_v23 = vmul.f32 %v3036_v28, %v5541_v3 }
 0x205   : > { %v1771_v24 = vsel %vm1770_vm7, %v4090_v35, %v1767_v14  ;;  %v1144_v17 = vmul.f32 %v1143_v15, %v5559_v46  ;;  %v1153_v13 = vmul.f32 3.8918573e-05, %v5559_v46  ;;  %v2390_v40 = vmul.f32 %v2389_v26, %v5482_v19 }
 0x206   : > { %v3387_v21 = vadd.f32 1.0, %v3845_v43  ;;  %v1776_v16 = vsel %vm1773_vm6, %v1775_v45, %v1771_v24  ;;  %v5585_v60 = vmul.f32 0.5, %v5525_v49  ;;  %v3027_v25 = vadd.f32 0.05243302, %v3026_v38 }
 0x207   : > { %v1777_v0 = vmul.f32 %v1776_v16, %v1752_v27  ;;  %v3038_v57 = vadd.f32 0.112945676, %v3037_v23  ;;  %v1145_v63 = vadd.f32 0.0036580483, %v1144_v17  ;;  %v1154_v1 = vadd.f32 0.001143296, %v1153_v13 }
 0x208   : > { %v3451_v54 = vmul.f32 %v3387_v21, %v5502_v37  ;;  %v5588_v41 = vmin.f32 %v1780_v8, 16.0  ;;  %v633_v11 = vadd.f32 %v5274_v2, %v632_v4  ;;  %v3028_v35 = vmul.f32 %v3027_v25, %v5541_v3 }
 0x209   : > { %v4092_v56 = vpop.eup %4091  ;;  %v3861_v53 = vclamps-f32 %v1777_v0, 1.0  ;;  %v3039_v19 = vmul.f32 %v3038_v57, %v5541_v3  ;;  %v1146_v49 = vmul.f32 %v1145_v63, %v5559_v46  ;;  %v2391_v27 = vadd.f32 1.1283791, %v2390_v40 }
 0x20a   : > { %3515 = vst [vmem:[%s4577_s8 + $0x38] sm:$0xff] %v3451_v54  ;;  %v2404_v36 = vmul.f32 %v4092_v56, %v5572_v20  ;;  %v1155_v50 = vmul.f32 %v1154_v1, %v5559_v46  ;;  %v1782_v37 = vmul.f32 2.1237322e-06, %v5588_v41  ;;  %v2412_v10 = vand.u32 2147483647, %v5572_v20 }
 0x20b   : > { %v3403_v48 = vadd.f32 1.0, %v3861_v53  ;;  %v2414_v55 = vand.u32 2147483648, %v5572_v20  ;;  %v3040_v59 = vadd.f32 0.4994258, %v3039_v19  ;;  %vm2409_vm8 = vweird.f32 %v4092_v56 }
 0x20c   : > { %v2405_v39 = vsub.f32 1.0, %v2404_v36  ;;  %v1147_v34 = vadd.f32 0.05243302, %v1146_v49  ;;  %v1156_v33 = vadd.f32 0.014752088, %v1155_v50  ;;  %vm2408_vm9 = vweird.f32 %v5572_v20  ;;  %v672_v20 = vpop.f32.mrf.mxu3 }
 0x20d   : > { %v3467_v32 = vmul.f32 %v3403_v48, %v5507_v18  ;;  %v3029_v6 = vadd.f32 0.18741608, %v3028_v35  ;;  %v3041_v30 = vmul.f32 %v3040_v59, %v5541_v3  ;;  %v1783_v5 = vadd.f32 0.00028619796, %v1782_v37  ;;  %vm2410_vm10 = vmor %vm2408_vm9, %vm2409_vm8 }
 0x20e   : > { %v2406_v7 = vmul.f32 %v4092_v56, %v2405_v39  ;;  %v1148_v62 = vmul.f32 %v1147_v34, %v5559_v46  ;;  %v1157_v22 = vmul.f32 %v1156_v33, %v5559_v46  ;;  %v1793_v44 = vmul.f32 3.8918573e-05, %v5588_v41 }
 0x20f   : > { %3531 = vst [vmem:[%s4577_s8 + $0xb8] sm:$0xff] %v3467_v32  ;;  %v5607_v61 = vadd.f32 1.0, %v3041_v30  ;;  %v5610_v26 = vmul.f32 0.5, %v5551_v42  ;;  %v1784_v18 = vmul.f32 %v1783_v5, %v5588_v41  ;;  %v2415_v14 = vor.u32 1.1754944e-38, %v2414_v55 }
 0x210   : > { %v2407_v12 = vadd.f32 %v4092_v56, %v2406_v7  ;;  %v1149_v51 = vadd.f32 0.18741608, %v1148_v62  ;;  %v1158_v28 = vadd.f32 0.112945676, %v1157_v22  ;;  %v1794_v15 = vadd.f32 0.001143296, %v1793_v44 }
 0x211   : > { %v3030_v43 = vmul.f32 %v3029_v6, %v5541_v3  ;;  %4093 = vrcp.f32 %v5607_v61  ;;  %v5616_v45 = vmul.f32 0.70710677, %v633_v11  ;;  %v2392_v38 = vmul.f32 %v2391_v27, %v5462_v29 }
 0x212   : > { %v2411_v42 = vsel %vm2410_vm10, %v4092_v56, %v2407_v12  ;;  %vm2413_vm11 = vcmp.eq.f32.partialorder %v2412_v10, 8.507059e+37  ;;  %v1159_v8 = vmul.f32 %v1158_v28, %v5559_v46  ;;  %v1150_v23 = vmul.f32 %v1149_v51, %v5559_v46  ;;  %v554_v56 = vpop.f32.mrf.mxu0 }
 0x213   : > { %v2416_v24 = vsel %vm2413_vm11, %v2415_v14, %v2411_v42  ;;  %v1785_v17 = vadd.f32 0.0036580483, %v1784_v18  ;;  %v1795_v13 = vmul.f32 %v1794_v15, %v5588_v41  ;;  %v5622_v3 = vmul.f32 0.5, %v633_v11 }
 0x214   : > { %v2417_v4 = vmul.f32 %v2416_v24, %v2392_v38  ;;  %v1160_v21 = vadd.f32 0.4994258, %v1159_v8  ;;  %v5625_v16 = vadd.f32 %v5274_v2, %v672_v20  ;;  %v3031_v40 = vadd.f32 1.1283791, %v3030_v43 }
 0x215   : > { %v1786_v29 = vmul.f32 %v1785_v17, %v5588_v41  ;;  %v1796_v0 = vadd.f32 0.014752088, %v1795_v13  ;;  %v2420_v25 = vmul.f32 %v5616_v45, %v5616_v45  ;;  %v3052_v63 = vand.u32 2147483647, %v5607_v61 }
 0x216   : > { %v3877_v57 = vclamps-f32 %v2417_v4, 1.0  ;;  %v3054_v54 = vand.u32 2147483648, %v5607_v61  ;;  %v1161_v1 = vmul.f32 %v1160_v21, %v5559_v46  ;;  %v1151_v53 = vadd.f32 1.1283791, %v1150_v23 }
 0x217   : > { %v4094_v11 = vpop.eup %4093  ;;  %v1787_v35 = vadd.f32 0.05243302, %v1786_v29  ;;  %v1797_v19 = vmul.f32 %v1796_v0, %v5588_v41  ;;  %v5634_v49 = vmin.f32 %v2420_v25, 16.0  ;;  %v5640_v37 = vmul.f32 0.70710677, %v5625_v16 }
 0x218   : > { %v3419_v27 = vadd.f32 1.0, %v3877_v57  ;;  %v3044_v36 = vmul.f32 %v4094_v11, %v5607_v61  ;;  %v5637_v50 = vadd.f32 1.0, %v1161_v1  ;;  %v5645_v55 = vadd.f32 %v5274_v2, %v554_v56  ;;  %v634_v57 = vpop.f32.mrf.mxu2 }
 0x219   : > { %v1798_v48 = vadd.f32 0.112945676, %v1797_v19  ;;  %v2422_v46 = vmul.f32 2.1237322e-06, %v5634_v49  ;;  %v2433_v10 = vmul.f32 3.8918573e-05, %v5634_v49  ;;  %v3032_v39 = vmul.f32 %v3031_v40, %v5517_v31  ;;  %v594_v19 = vpop.f32.mrf.mxu1 }
 0x21a   : > { %v3483_v59 = vmul.f32 %v3419_v27, %v5520_v9  ;;  %v3045_v34 = vsub.f32 1.0, %v3044_v36  ;;  %4095 = vrcp.f32 %v5637_v50  ;;  %vm3048_vm12 = vweird.f32 %v5607_v61 }
 0x21b   : > { %vm3049_vm13 = vweird.f32 %v4094_v11  ;;  %v1788_v33 = vmul.f32 %v1787_v35, %v5588_v41  ;;  %v1799_v32 = vmul.f32 %v1798_v48, %v5588_v41  ;;  %v2423_v30 = vadd.f32 0.00028619796, %v2422_v46 }
 0x21c   : > { %3547 = vst [vmem:[%s4577_s8 + $0x138] sm:$0xff] %v3483_v59  ;;  %v3046_v6 = vmul.f32 %v4094_v11, %v3045_v34  ;;  %v2434_v5 = vadd.f32 0.001143296, %v2433_v10  ;;  %v3060_v2 = vmul.f32 %v5640_v37, %v5640_v37  ;;  %vm5656_vm14 = vcmp.eq.f32.partialorder %v3052_v63, 8.507059e+37  ;;  %vm3050_vm15 = vmor %vm3048_vm12, %vm3049_vm13 }
 0x21d   : > { %v3055_v31 = vor.u32 1.1754944e-38, %v3054_v54  ;;  %v1152_v7 = vmul.f32 %v1151_v53, %v5545_v58  ;;  %v1800_v62 = vadd.f32 0.4994258, %v1799_v32  ;;  %v2424_v44 = vmul.f32 %v2423_v30, %v5634_v49  ;;  %v5702_v30 = vld [vmem:[%s4344_s19] ss:$0 sm:$0xff] }
 0x21e   : > { %v3047_v22 = vadd.f32 %v4094_v11, %v3046_v6  ;;  %v2435_v18 = vmul.f32 %v2434_v5, %v5634_v49  ;;  %v5663_v12 = vmin.f32 %v3060_v2, 16.0  ;;  %v1172_v51 = vand.u32 2147483647, %v5637_v50 }
 0x21f   : > { %v1789_v28 = vadd.f32 0.18741608, %v1788_v33  ;;  %v1801_v15 = vmul.f32 %v1800_v62, %v5588_v41  ;;  %v5671_v14 = vmul.f32 0.70710677, %v5645_v55  ;;  %v2425_v20 = vadd.f32 0.0036580483, %v2424_v44 }
 0x220   : > { %v4096_v58 = vpop.eup %4095  ;;  %v3051_v43 = vsel %vm3050_vm15, %v4094_v11, %v3047_v22  ;;  %v2436_v38 = vadd.f32 0.014752088, %v2435_v18  ;;  %v3062_v42 = vmul.f32 2.1237322e-06, %v5663_v12  ;;  %vm1168_vm0 = vweird.f32 %v5637_v50 }
 0x221   : > { %v3056_v8 = vsel %vm5656_vm14, %v3055_v31, %v3051_v43  ;;  %v1164_v61 = vmul.f32 %v4096_v58, %v5637_v50  ;;  %v1174_v24 = vand.u32 2147483648, %v5637_v50  ;;  %v5679_v17 = vadd.f32 1.0, %v1801_v15 }
 0x222   : > { %v3057_v23 = vmul.f32 %v3056_v8, %v3032_v39  ;;  %v2426_v13 = vmul.f32 %v2425_v20, %v5634_v49  ;;  %v2437_v4 = vmul.f32 %v2436_v38, %v5634_v49  ;;  %v1790_v40 = vmul.f32 %v1789_v28, %v5588_v41 }
 0x223   : > { %v1165_v21 = vsub.f32 1.0, %v1164_v61  ;;  %v3063_v29 = vadd.f32 0.00028619796, %v3062_v42  ;;  %v3073_v0 = vmul.f32 3.8918573e-05, %v5663_v12  ;;  %vm5685_vm1 = vcmp.eq.f32.partialorder %v1172_v51, 8.507059e+37 }
 0x224   : > { %v3893_v25 = vclamps-f32 %v3057_v23, 1.0  ;;  %4097 = vrcp.f32 %v5679_v17  ;;  %v1180_v63 = vmul.f32 %v5671_v14, %v5671_v14  ;;  %vm1169_vm2 = vweird.f32 %v4096_v58 }
 0x225   : > { %v1166_v54 = vmul.f32 %v4096_v58, %v1165_v21  ;;  %v2427_v1 = vadd.f32 0.05243302, %v2426_v13  ;;  %v2438_v56 = vadd.f32 0.112945676, %v2437_v4  ;;  %v1175_v53 = vor.u32 1.1754944e-38, %v1174_v24  ;;  %vm1170_vm3 = vmor %vm1168_vm0, %vm1169_vm2 }
 0x226   : > { %v3435_v11 = vadd.f32 1.0, %v3893_v25  ;;  %v3064_v41 = vmul.f32 %v3063_v29, %v5663_v12  ;;  %v3074_v35 = vadd.f32 0.001143296, %v3073_v0  ;;  %v1791_v36 = vadd.f32 1.1283791, %v1790_v40 }
 0x227   : > { %v1167_v27 = vadd.f32 %v4096_v58, %v1166_v54  ;;  %v2428_v48 = vmul.f32 %v2427_v1, %v5634_v49  ;;  %v2439_v46 = vmul.f32 %v2438_v56, %v5634_v49  ;;  %v5699_v34 = vmin.f32 %v1180_v63, 16.0 }
 0x228   : > { %v3499_v10 = vmul.f32 %v3435_v11, %v5537_v52  ;;  %v3065_v59 = vadd.f32 0.0036580483, %v3064_v41  ;;  %v3075_v39 = vmul.f32 %v3074_v35, %v5663_v12  ;;  %v595_v5 = vadd.f32 %v5702_v30, %v594_v19 }
 0x229   : > { %v1171_v33 = vsel %vm1170_vm3, %v4096_v58, %v1167_v27  ;;  %v2429_v32 = vadd.f32 0.18741608, %v2428_v48  ;;  %v2440_v6 = vadd.f32 0.4994258, %v2439_v46  ;;  %v1182_v31 = vmul.f32 2.1237322e-06, %v5699_v34 }
 0x22a   : > { %v4098_v2 = vpop.eup %4097  ;;  %3563 = vst [vmem:[%s4577_s8 + $0x1b8] sm:$0xff] %v3499_v10  ;;  %v1176_v52 = vsel %vm5685_vm1, %v1175_v53, %v1171_v33  ;;  %v3066_v50 = vmul.f32 %v3065_v59, %v5663_v12  ;;  %v3076_v9 = vadd.f32 0.014752088, %v3075_v39  ;;  %v1812_v44 = vand.u32 2147483647, %v5679_v17 }
 0x22b   : > { %v1177_v62 = vmul.f32 %v1176_v52, %v1152_v7  ;;  %v1804_v22 = vmul.f32 %v4098_v2, %v5679_v17  ;;  %v1814_v18 = vand.u32 2147483648, %v5679_v17  ;;  %v2441_v51 = vmul.f32 %v2440_v6, %v5634_v49 }
 0x22c   : > { %v3067_v28 = vadd.f32 0.05243302, %v3066_v50  ;;  %v3077_v15 = vmul.f32 %v3076_v9, %v5663_v12  ;;  %v1183_v58 = vadd.f32 0.00028619796, %v1182_v31  ;;  %v2430_v38 = vmul.f32 %v2429_v32, %v5634_v49 }
 0x22d   : > { %v3846_v43 = vclamps-f32 %v1177_v62, 1.0  ;;  %v1805_v20 = vsub.f32 1.0, %v1804_v22  ;;  %v1193_v42 = vmul.f32 3.8918573e-05, %v5699_v34  ;;  %v5717_v8 = vadd.f32 1.0, %v2441_v51 }
 0x22e   : > { %v3068_v7 = vmul.f32 %v3067_v28, %v5663_v12  ;;  %v3078_v61 = vadd.f32 0.112945676, %v3077_v15  ;;  %v1184_v24 = vmul.f32 %v1183_v58, %v5699_v34  ;;  %vm1809_vm4 = vweird.f32 %v4098_v2  ;;  %v674_v15 = vpop.f32.mrf.mxu3 }
 0x22f   : > { %v3388_v23 = vadd.f32 1.0, %v3846_v43  ;;  %v1806_v13 = vmul.f32 %v4098_v2, %v1805_v20  ;;  %v1194_v4 = vadd.f32 0.001143296, %v1193_v42  ;;  %v1792_v21 = vmul.f32 %v1791_v36, %v5565_v47 }
 0x230   : > { %vm1808_vm5 = vweird.f32 %v5679_v17  ;;  %4099 = vrcp.f32 %v5717_v8  ;;  %v5725_v49 = vmul.f32 0.5, %v5625_v16  ;;  %v1815_v0 = vor.u32 1.1754944e-38, %v1814_v18 }
 0x231   : > { %v3452_v40 = vmul.f32 %v3388_v23, %v5585_v60  ;;  %v1807_v29 = vadd.f32 %v4098_v2, %v1806_v13  ;;  %v3079_v25 = vmul.f32 %v3078_v61, %v5663_v12  ;;  %vm1810_vm6 = vmor %vm1808_vm5, %vm1809_vm4  ;;  %v2431_v63 = vadd.f32 1.1283791, %v2430_v38 }
 0x232   : > { %v3069_v54 = vadd.f32 0.18741608, %v3068_v7  ;;  %v1185_v1 = vadd.f32 0.0036580483, %v1184_v24  ;;  %v1195_v47 = vmul.f32 %v1194_v4, %v5699_v34  ;;  %vm1813_vm7 = vcmp.eq.f32.partialorder %v1812_v44, 8.507059e+37 }
 0x233   : > { %3516 = vst [vmem:[%s4577_s8 + $0x40] sm:$0xff] %v3452_v40  ;;  %v1811_v17 = vsel %vm1810_vm6, %v4098_v2, %v1807_v29  ;;  %v3080_v56 = vadd.f32 0.4994258, %v3079_v25  ;;  %v5731_v11 = vmul.f32 0.70710677, %v595_v5  ;;  %v5735_v41 = vadd.f32 %v5702_v30, %v634_v57 }
 0x234   : > { %v1816_v16 = vsel %vm1813_vm7, %v1815_v0, %v1811_v17  ;;  %v1186_v60 = vmul.f32 %v1185_v1, %v5699_v34  ;;  %v1196_v53 = vadd.f32 0.014752088, %v1195_v47  ;;  %v2452_v19 = vand.u32 2147483647, %v5717_v8  ;;  %v557_v17 = vpop.f32.mrf.mxu0 }
 0x235   : > { %v1817_v35 = vmul.f32 %v1816_v16, %v1792_v21  ;;  %v3081_v27 = vmul.f32 %v3080_v56, %v5663_v12  ;;  %v1820_v36 = vmul.f32 %v5731_v11, %v5731_v11  ;;  %v2454_v46 = vand.u32 2147483648, %v5717_v8 }
 0x236   : > { %v4100_v48 = vpop.eup %4099  ;;  %v1187_v10 = vadd.f32 0.05243302, %v1186_v60  ;;  %v1197_v59 = vmul.f32 %v1196_v53, %v5699_v34  ;;  %v5744_v39 = vmul.f32 0.70710677, %v5735_v41  ;;  %v5748_v6 = vmul.f32 0.5, %v5645_v55 }
 0x237   : > { %v3862_v33 = vclamps-f32 %v1817_v35, 1.0  ;;  %v2444_v32 = vmul.f32 %v4100_v48, %v5717_v8  ;;  %v5750_v2 = vmul.f32 0.5, %v595_v5  ;;  %v3070_v52 = vmul.f32 %v3069_v54, %v5663_v12 }
 0x238   : > { %v5753_v50 = vadd.f32 1.0, %v3081_v27  ;;  %v1198_v9 = vadd.f32 0.112945676, %v1197_v59  ;;  %v5755_v31 = vmin.f32 %v1820_v36, 16.0  ;;  %v2432_v22 = vmul.f32 %v2431_v63, %v5616_v45 }
 0x239   : > { %v3404_v62 = vadd.f32 1.0, %v3862_v33  ;;  %v2445_v44 = vsub.f32 1.0, %v2444_v32  ;;  %v2460_v18 = vmul.f32 %v5744_v39, %v5744_v39  ;;  %vm5760_vm8 = vcmp.eq.f32.partialorder %v2452_v19, 8.507059e+37 }
 0x23a   : > { %v2455_v5 = vor.u32 1.1754944e-38, %v2454_v46  ;;  %4101 = vrcp.f32 %v5753_v50  ;;  %v1188_v12 = vmul.f32 %v1187_v10, %v5699_v34  ;;  %vm2449_vm9 = vweird.f32 %v4100_v48 }
 0x23b   : > { %v3468_v51 = vmul.f32 %v3404_v62, %v5610_v26  ;;  %v2446_v28 = vmul.f32 %v4100_v48, %v2445_v44  ;;  %v1199_v45 = vmul.f32 %v1198_v9, %v5699_v34  ;;  %vm2448_vm10 = vweird.f32 %v5717_v8 }
 0x23c   : > { %v3071_v58 = vadd.f32 1.1283791, %v3070_v52  ;;  %v1822_v43 = vmul.f32 2.1237322e-06, %v5755_v31  ;;  %v1833_v20 = vmul.f32 3.8918573e-05, %v5755_v31  ;;  %vm2450_vm11 = vmor %vm2448_vm10, %vm2449_vm9  ;;  %v5776_v13 = vadd.f32 %v5702_v30, %v674_v15 }
 0x23d   : > { %3532 = vst [vmem:[%s4577_s8 + $0xc0] sm:$0xff] %v3468_v51  ;;  %v2447_v38 = vadd.f32 %v4100_v48, %v2446_v28  ;;  %v3092_v42 = vand.u32 2147483647, %v5753_v50  ;;  %v1200_v7 = vadd.f32 0.4994258, %v1199_v45  ;;  %v5773_v61 = vmin.f32 %v2460_v18, 16.0 }
 0x23e   : > { %v1189_v26 = vadd.f32 0.18741608, %v1188_v12  ;;  %v1823_v24 = vadd.f32 0.00028619796, %v1822_v43  ;;  %v1834_v23 = vadd.f32 0.001143296, %v1833_v20  ;;  %vm3088_vm12 = vweird.f32 %v5753_v50 }
 0x23f   : > { %v2451_v8 = vsel %vm2450_vm11, %v4100_v48, %v2447_v38  ;;  %v3094_v4 = vand.u32 2147483648, %v5753_v50  ;;  %v1201_v21 = vmul.f32 %v1200_v7, %v5699_v34  ;;  %v2462_v40 = vmul.f32 2.1237322e-06, %v5773_v61 }
 0x240   : > { %v4102_v29 = vpop.eup %4101  ;;  %v2456_v0 = vsel %vm5760_vm8, %v2455_v5, %v2451_v8  ;;  %v1824_v25 = vmul.f32 %v1823_v24, %v5755_v31  ;;  %v1835_v57 = vmul.f32 %v1834_v23, %v5755_v31  ;;  %v2473_v63 = vmul.f32 3.8918573e-05, %v5773_v61 }
 0x241   : > { %v2457_v54 = vmul.f32 %v2456_v0, %v2432_v22  ;;  %v3084_v1 = vmul.f32 %v4102_v29, %v5753_v50  ;;  %vm5788_vm13 = vcmp.eq.f32.partialorder %v3092_v42, 8.507059e+37  ;;  %v1190_v56 = vmul.f32 %v1189_v26, %v5699_v34 }
 0x242   : > { %v5793_v16 = vadd.f32 1.0, %v1201_v21  ;;  %v1825_v60 = vadd.f32 0.0036580483, %v1824_v25  ;;  %v1836_v53 = vadd.f32 0.014752088, %v1835_v57  ;;  %vm3089_vm14 = vweird.f32 %v4102_v29 }
 0x243   : > { %v3878_v35 = vclamps-f32 %v2457_v54, 1.0  ;;  %v3085_v19 = vsub.f32 1.0, %v3084_v1  ;;  %v2463_v27 = vadd.f32 0.00028619796, %v2462_v40  ;;  %v2474_v36 = vadd.f32 0.001143296, %v2473_v63  ;;  %vm3090_vm15 = vmor %vm3088_vm12, %vm3089_vm14 }
 0x244   : > { %v3095_v48 = vor.u32 1.1754944e-38, %v3094_v4  ;;  %4103 = vrcp.f32 %v5793_v16  ;;  %v5797_v46 = vadd.f32 %v5702_v30, %v557_v17  ;;  %v1826_v34 = vmul.f32 %v1825_v60, %v5755_v31 }
 0x245   : > { %v3420_v10 = vadd.f32 1.0, %v3878_v35  ;;  %v3086_v59 = vmul.f32 %v4102_v29, %v3085_v19  ;;  %v1837_v33 = vmul.f32 %v1836_v53, %v5755_v31  ;;  %v1191_v32 = vadd.f32 1.1283791, %v1190_v56 }
 0x246   : > { %v1212_v52 = vand.u32 2147483647, %v5793_v16  ;;  %v2464_v9 = vmul.f32 %v2463_v27, %v5773_v61  ;;  %v2475_v62 = vmul.f32 %v2474_v36, %v5773_v61  ;;  %v1827_v18 = vadd.f32 0.05243302, %v1826_v34 }
 0x247   : > { %v3484_v22 = vmul.f32 %v3420_v10, %v5622_v3  ;;  %v3087_v44 = vadd.f32 %v4102_v29, %v3086_v59  ;;  %v1838_v55 = vadd.f32 0.112945676, %v1837_v33  ;;  %v3072_v5 = vmul.f32 %v3071_v58, %v5640_v37  ;;  %v597_v33 = vpop.f32.mrf.mxu1 }
 0x248   : > { %v2465_v12 = vadd.f32 0.0036580483, %v2464_v9  ;;  %v2476_v51 = vadd.f32 0.014752088, %v2475_v62  ;;  %v5810_v28 = vmul.f32 0.70710677, %v5776_v13  ;;  %v1828_v15 = vmul.f32 %v1827_v18, %v5755_v31 }
 0x249   : > { %3548 = vst [vmem:[%s4577_s8 + $0x140] sm:$0xff] %v3484_v22  ;;  %v3091_v45 = vsel %vm3090_vm15, %v4102_v29, %v3087_v44  ;;  %v1839_v3 = vmul.f32 %v1838_v55, %v5755_v31  ;;  %v5816_v43 = vmul.f32 0.70710677, %v5797_v46  ;;  %v1214_v26 = vand.u32 2147483648, %v5793_v16 }
 0x24a   : > { %v4104_v20 = vpop.eup %4103  ;;  %v3096_v37 = vsel %vm5788_vm13, %v3095_v48, %v3091_v45  ;;  %v2466_v50 = vmul.f32 %v2465_v12, %v5773_v61  ;;  %v2477_v58 = vmul.f32 %v2476_v51, %v5773_v61  ;;  %v3100_v38 = vmul.f32 %v5810_v28, %v5810_v28  ;;  %v637_v51 = vpop.f32.mrf.mxu2 }
 0x24b   : > { %v3097_v42 = vmul.f32 %v3096_v37, %v3072_v5  ;;  %v1204_v7 = vmul.f32 %v4104_v20, %v5793_v16  ;;  %v1829_v24 = vadd.f32 0.18741608, %v1828_v15  ;;  %v1192_v23 = vmul.f32 %v1191_v32, %v5671_v14 }
 0x24c   : > { %v1840_v8 = vadd.f32 0.4994258, %v1839_v3  ;;  %v2467_v4 = vadd.f32 0.05243302, %v2466_v50  ;;  %v2478_v21 = vadd.f32 0.112945676, %v2477_v58  ;;  %v1220_v25 = vmul.f32 %v5816_v43, %v5816_v43 }
 0x24d   : > { %v3894_v40 = vclamps-f32 %v3097_v42, 1.0  ;;  %v1205_v29 = vsub.f32 1.0, %v1204_v7  ;;  %v5827_v0 = vmin.f32 %v3100_v38, 16.0  ;;  %v1830_v57 = vmul.f32 %v1829_v24, %v5755_v31 }
 0x24e   : > { %v1841_v63 = vmul.f32 %v1840_v8, %v5755_v31  ;;  %v2468_v54 = vmul.f32 %v2467_v4, %v5773_v61  ;;  %v2479_v1 = vmul.f32 %v2478_v21, %v5773_v61  ;;  %vm1209_vm0 = vweird.f32 %v4104_v20 }
 0x24f   : > { %v3436_v47 = vadd.f32 1.0, %v3894_v40  ;;  %v1206_v14 = vmul.f32 %v4104_v20, %v1205_v29  ;;  %v3102_v17 = vmul.f32 2.1237322e-06, %v5827_v0  ;;  %vm1208_vm1 = vweird.f32 %v5793_v16 }
 0x250   : > { %v5837_v56 = vadd.f32 1.0, %v1841_v63  ;;  %v2469_v60 = vadd.f32 0.18741608, %v2468_v54  ;;  %v2480_v53 = vadd.f32 0.4994258, %v2479_v1  ;;  %vm1213_vm2 = vcmp.eq.f32.partialorder %v1212_v52, 8.507059e+37  ;;  %vm1210_vm3 = vmor %vm1208_vm1, %vm1209_vm0 }
 0x251   : > { %v3500_v35 = vmul.f32 %v3436_v47, %v5725_v49  ;;  %v1207_v19 = vadd.f32 %v4104_v20, %v1206_v14  ;;  %v3103_v31 = vadd.f32 0.00028619796, %v3102_v17  ;;  %v1215_v27 = vor.u32 1.1754944e-38, %v1214_v26 }
 0x252   : > { %v1831_v36 = vadd.f32 1.1283791, %v1830_v57  ;;  %4105 = vrcp.f32 %v5837_v56  ;;  %v5841_v48 = vmin.f32 %v1220_v25, 16.0  ;;  %v2470_v16 = vmul.f32 %v2469_v60, %v5773_v61 }
 0x253   : > { %3564 = vst [vmem:[%s4577_s8 + $0x1c0] sm:$0xff] %v3500_v35  ;;  %v1211_v10 = vsel %vm1210_vm3, %v4104_v20, %v1207_v19  ;;  %v2481_v59 = vmul.f32 %v2480_v53, %v5773_v61  ;;  %v3104_v34 = vmul.f32 %v3103_v31, %v5827_v0  ;;  %v1854_v32 = vand.u32 2147483648, %v5837_v56 }
 0x254   : > { %v1216_v49 = vsel %vm1213_vm2, %v1215_v27, %v1211_v10  ;;  %v5849_v52 = vmul.f32 0.5, %v5735_v41  ;;  %v3113_v9 = vmul.f32 3.8918573e-05, %v5827_v0  ;;  %v1852_v22 = vand.u32 2147483647, %v5837_v56 }
 0x255   : > { %v1217_v62 = vmul.f32 %v1216_v49, %v1192_v23  ;;  %v5853_v44 = vadd.f32 1.0, %v2481_v59  ;;  %v3105_v18 = vadd.f32 0.0036580483, %v3104_v34  ;;  %v2471_v55 = vadd.f32 1.1283791, %v2470_v16 }
 0x256   : > { %v3114_v5 = vadd.f32 0.001143296, %v3113_v9  ;;  %v1222_v61 = vmul.f32 2.1237322e-06, %v5841_v48  ;;  %v5857_v12 = vadd.f32 %v5702_v30, %v597_v33  ;;  %v1832_v41 = vmul.f32 %v1831_v36, %v5731_v11 }
 0x257   : > { %v3847_v45 = vclamps-f32 %v1217_v62, 1.0  ;;  %4107 = vrcp.f32 %v5853_v44  ;;  %v1233_v15 = vmul.f32 3.8918573e-05, %v5841_v48  ;;  %vm1848_vm4 = vweird.f32 %v5837_v56 }
 0x258   : > { %v4106_v3 = vpop.eup %4105  ;;  %v1855_v20 = vor.u32 1.1754944e-38, %v1854_v32  ;;  %v3106_v37 = vmul.f32 %v3105_v18, %v5827_v0  ;;  %v3115_v50 = vmul.f32 %v3114_v5, %v5827_v0  ;;  %vm5866_vm5 = vcmp.eq.f32.partialorder %v1852_v22, 8.507059e+37 }
 0x259   : > { %v3389_v58 = vadd.f32 1.0, %v3847_v45  ;;  %v1844_v38 = vmul.f32 %v4106_v3, %v5837_v56  ;;  %v1223_v11 = vadd.f32 0.00028619796, %v1222_v61  ;;  %v5871_v7 = vadd.f32 %v5702_v30, %v637_v51 }
 0x25a   : > { %v2472_v26 = vmul.f32 %v2471_v55, %v5744_v39  ;;  %v2492_v24 = vand.u32 2147483647, %v5853_v44  ;;  %v3107_v23 = vadd.f32 0.05243302, %v3106_v37  ;;  %v3116_v8 = vadd.f32 0.014752088, %v3115_v50 }
 0x25b   : > { %v3453_v4 = vmul.f32 %v3389_v58, %v5748_v6  ;;  %v1845_v21 = vsub.f32 1.0, %v1844_v38  ;;  %v1224_v40 = vmul.f32 %v1223_v11, %v5841_v48  ;;  %v1234_v29 = vadd.f32 0.001143296, %v1233_v15 }
 0x25c   : > { %vm2488_vm6 = vweird.f32 %v5853_v44  ;;  %v2494_v25 = vand.u32 2147483648, %v5853_v44  ;;  %v3108_v57 = vmul.f32 %v3107_v23, %v5827_v0  ;;  %v3117_v63 = vmul.f32 %v3116_v8, %v5827_v0 }
 0x25d   : > { %v5882_v39 = vmul.f32 0.70710677, %v5857_v12  ;;  %v4108_v54 = vpop.eup %4107  ;;  %3517 = vst [vmem:[%s4577_s8 + $0x48] sm:$0xff] %v3453_v4  ;;  %v1846_v1 = vmul.f32 %v4106_v3, %v1845_v21  ;;  %vm1849_vm7 = vweird.f32 %v4106_v3  ;;  %v1225_v6 = vadd.f32 0.0036580483, %v1224_v40 }
 0x25e   : > { %v1235_v47 = vmul.f32 %v1234_v29, %v5841_v48  ;;  %v2484_v14 = vmul.f32 %v4108_v54, %v5853_v44  ;;  %vm5887_vm8 = vcmp.eq.f32.partialorder %v2492_v24, 8.507059e+37  ;;  %v3118_v60 = vadd.f32 0.112945676, %v3117_v63  ;;  %vm1850_vm9 = vmor %vm1848_vm4, %vm1849_vm7 }
 0x25f   : > { %v5892_v53 = vmul.f32 0.70710677, %v5871_v7  ;;  %v1847_v35 = vadd.f32 %v4106_v3, %v1846_v1  ;;  %v1226_v19 = vmul.f32 %v1225_v6, %v5841_v48  ;;  %v1860_v27 = vmul.f32 %v5882_v39, %v5882_v39 }
 0x260   : > { %v1236_v31 = vadd.f32 0.014752088, %v1235_v47  ;;  %v2485_v36 = vsub.f32 1.0, %v2484_v14  ;;  %vm2489_vm10 = vweird.f32 %v4108_v54  ;;  %v3109_v10 = vadd.f32 0.18741608, %v3108_v57 }
 0x261   : > { %v3119_v16 = vmul.f32 %v3118_v60, %v5827_v0  ;;  %v1851_v59 = vsel %vm1850_vm9, %v4106_v3, %v1847_v35  ;;  %v1227_v34 = vadd.f32 0.05243302, %v1226_v19  ;;  %v5901_v49 = vmin.f32 %v1860_v27, 16.0  ;;  %vm2490_vm11 = vmor %vm2488_vm6, %vm2489_vm10 }
 0x262   : > { %v1237_v33 = vmul.f32 %v1236_v31, %v5841_v48  ;;  %v1856_v32 = vsel %vm5866_vm5, %v1855_v20, %v1851_v59  ;;  %v2486_v9 = vmul.f32 %v4108_v54, %v2485_v36  ;;  %v2500_v56 = vmul.f32 %v5892_v53, %v5892_v53 }
 0x263   : > { %v3120_v62 = vadd.f32 0.4994258, %v3119_v16  ;;  %v1857_v22 = vmul.f32 %v1856_v32, %v1832_v41  ;;  %v1228_v18 = vmul.f32 %v1227_v34, %v5841_v48  ;;  %v1862_v5 = vmul.f32 2.1237322e-06, %v5901_v49 }
 0x264   : > { %v1238_v55 = vadd.f32 0.112945676, %v1237_v33  ;;  %v2487_v61 = vadd.f32 %v4108_v54, %v2486_v9  ;;  %v2495_v51 = vor.u32 1.1754944e-38, %v2494_v25  ;;  %v1873_v15 = vmul.f32 3.8918573e-05, %v5901_v49 }
 0x265   : > { %v3121_v45 = vmul.f32 %v3120_v62, %v5827_v0  ;;  %v3863_v3 = vclamps-f32 %v1857_v22, 1.0  ;;  %v3110_v20 = vmul.f32 %v3109_v10, %v5827_v0  ;;  %v1229_v37 = vadd.f32 0.18741608, %v1228_v18 }
 0x266   : > { %v1239_v41 = vmul.f32 %v1238_v55, %v5841_v48  ;;  %v2491_v50 = vsel %vm2490_vm11, %v4108_v54, %v2487_v61  ;;  %v1863_v38 = vadd.f32 0.00028619796, %v1862_v5  ;;  %v1874_v42 = vadd.f32 0.001143296, %v1873_v15  ;;  %v677_v54 = vpop.f32.mrf.mxu3 }
 0x267   : > { %v5916_v58 = vadd.f32 1.0, %v3121_v45  ;;  %v3405_v11 = vadd.f32 1.0, %v3863_v3  ;;  %v2496_v24 = vsel %vm5887_vm8, %v2495_v51, %v2491_v50  ;;  %v5920_v8 = vmin.f32 %v2500_v56, 16.0  ;;  %v559_v45 = vpop.f32.mrf.mxu0 }
 0x268   : > { %v1240_v23 = vadd.f32 0.4994258, %v1239_v41  ;;  %v2497_v44 = vmul.f32 %v2496_v24, %v2472_v26  ;;  %v5923_v4 = vmul.f32 0.5, %v5776_v13  ;;  %v5927_v0 = vmul.f32 0.5, %v5797_v46 }
 0x269   : > { %4109 = vrcp.f32 %v5916_v58  ;;  %v3469_v21 = vmul.f32 %v3405_v11, %v5750_v2  ;;  %v1230_v40 = vmul.f32 %v1229_v37, %v5841_v48  ;;  %v5933_v25 = vmul.f32 0.5, %v5857_v12 }
 0x26a   : > { %v1241_v29 = vmul.f32 %v1240_v23, %v5841_v48  ;;  %v3879_v57 = vclamps-f32 %v2497_v44, 1.0  ;;  %v3111_v63 = vadd.f32 1.1283791, %v3110_v20  ;;  %v1864_v26 = vmul.f32 %v1863_v38, %v5901_v49 }
 0x26b   : > { %v1875_v13 = vmul.f32 %v1874_v42, %v5901_v49  ;;  %3533 = vst [vmem:[%s4577_s8 + $0xc8] sm:$0xff] %v3469_v21  ;;  %v3132_v46 = vand.u32 2147483647, %v5916_v58  ;;  %v2502_v2 = vmul.f32 2.1237322e-06, %v5920_v8  ;;  %v3134_v48 = vand.u32 2147483648, %v5916_v58 }
 0x26c   : > { %v5939_v1 = vadd.f32 1.0, %v1241_v29  ;;  %v3421_v6 = vadd.f32 1.0, %v3879_v57  ;;  %v1865_v12 = vadd.f32 0.0036580483, %v1864_v26  ;;  %v1231_v14 = vadd.f32 1.1283791, %v1230_v40 }
 0x26d   : > { %v1876_v47 = vadd.f32 0.014752088, %v1875_v13  ;;  %v5945_v17 = vmul.f32 0.5, %v5871_v7  ;;  %v678_v60 = vadd.f32 %v5702_v30, %v677_v54  ;;  %v2503_v36 = vadd.f32 0.00028619796, %v2502_v2 }
 0x26e   : > { %4111 = vrcp.f32 %v5939_v1  ;;  %v3485_v19 = vmul.f32 %v3421_v6, %v5849_v52  ;;  %v1866_v31 = vmul.f32 %v1865_v12, %v5901_v49  ;;  %v3112_v10 = vmul.f32 %v3111_v63, %v5810_v28  ;;  %v599_v12 = vpop.f32.mrf.mxu1 }
 0x26f   : > { %v4110_v35 = vpop.eup %4109  ;;  %v1877_v27 = vmul.f32 %v1876_v47, %v5901_v49  ;;  %vm3128_vm12 = vweird.f32 %v5916_v58  ;;  %vm5954_vm13 = vcmp.eq.f32.partialorder %v3132_v46, 8.507059e+37  ;;  %v3135_v7 = vor.u32 1.1754944e-38, %v3134_v48 }
 0x270   : > { %v3124_v16 = vmul.f32 %v4110_v35, %v5916_v58  ;;  %3549 = vst [vmem:[%s4577_s8 + $0x148] sm:$0xff] %v3485_v19  ;;  %v1867_v34 = vadd.f32 0.05243302, %v1866_v31  ;;  %v2504_v52 = vmul.f32 %v2503_v36, %v5920_v8  ;;  %v1232_v9 = vmul.f32 %v1231_v14, %v5816_v43 }
 0x271   : > { %v1878_v33 = vadd.f32 0.112945676, %v1877_v27  ;;  %v2513_v62 = vmul.f32 3.8918573e-05, %v5920_v8  ;;  %v5962_v28 = vmul.f32 0.70710677, %v678_v60  ;;  %vm1248_vm14 = vweird.f32 %v5939_v1 }
 0x272   : > { %v3125_v32 = vsub.f32 1.0, %v3124_v16  ;;  %v1868_v56 = vmul.f32 %v1867_v34, %v5901_v49  ;;  %v2505_v18 = vadd.f32 0.0036580483, %v2504_v52  ;;  %vm3129_vm15 = vweird.f32 %v4110_v35 }
 0x273   : > { %v1879_v22 = vmul.f32 %v1878_v33, %v5901_v49  ;;  %v2514_v61 = vadd.f32 0.001143296, %v2513_v62  ;;  %v3140_v51 = vmul.f32 %v5962_v28, %v5962_v28  ;;  %v1252_v15 = vand.u32 2147483647, %v5939_v1  ;;  %vm3130_vm0 = vmor %vm3128_vm12, %vm3129_vm15 }
 0x274   : > { %v4112_v55 = vpop.eup %4111  ;;  %v3126_v5 = vmul.f32 %v4110_v35, %v3125_v32  ;;  %v1254_v3 = vand.u32 2147483648, %v5939_v1  ;;  %v2506_v41 = vmul.f32 %v2505_v18, %v5920_v8  ;;  %v1869_v11 = vadd.f32 0.18741608, %v1868_v56 }
 0x275   : > { %v1244_v43 = vmul.f32 %v4112_v55, %v5939_v1  ;;  %v1880_v20 = vadd.f32 0.4994258, %v1879_v22  ;;  %v2515_v50 = vmul.f32 %v2514_v61, %v5920_v8  ;;  %v5974_v38 = vmin.f32 %v3140_v51, 16.0 }
 0x276   : > { %v3127_v37 = vadd.f32 %v4110_v35, %v3126_v5  ;;  %v560_v23 = vadd.f32 %v5702_v30, %v559_v45  ;;  %v2507_v21 = vadd.f32 0.05243302, %v2506_v41  ;;  %vm1249_vm1 = vweird.f32 %v4112_v55 }
 0x277   : > { %v1245_v42 = vsub.f32 1.0, %v1244_v43  ;;  %v1881_v24 = vmul.f32 %v1880_v20, %v5901_v49  ;;  %v2516_v40 = vadd.f32 0.014752088, %v2515_v50  ;;  %v3142_v29 = vmul.f32 2.1237322e-06, %v5974_v38  ;;  %vm1250_vm3 = vmor %vm1248_vm14, %vm1249_vm1 }
 0x278   : > { %v3131_v44 = vsel %vm3130_vm0, %v4110_v35, %v3127_v37  ;;  %vm5985_vm2 = vcmp.eq.f32.partialorder %v1252_v15, 8.507059e+37  ;;  %v1255_v6 = vor.u32 1.1754944e-38, %v1254_v3  ;;  %v2508_v48 = vmul.f32 %v2507_v21, %v5920_v8 }
 0x279   : > { %v3136_v57 = vsel %vm5954_vm13, %v3135_v7, %v3131_v44  ;;  %v1246_v63 = vmul.f32 %v4112_v55, %v1245_v42  ;;  %v5983_v26 = vadd.f32 1.0, %v1881_v24  ;;  %v2517_v54 = vmul.f32 %v2516_v40, %v5920_v8 }
 0x27a   : > { %v3137_v58 = vmul.f32 %v3136_v57, %v3112_v10  ;;  %v3143_v46 = vadd.f32 0.00028619796, %v3142_v29  ;;  %v1870_v14 = vmul.f32 %v1869_v11, %v5901_v49  ;;  %v5995_v35 = vmul.f32 0.5, %v678_v60  ;;  %v639_v29 = vpop.f32.mrf.mxu2 }
 0x27b   : > { %v1247_v2 = vadd.f32 %v4112_v55, %v1246_v63  ;;  %4113 = vrcp.f32 %v5983_v26  ;;  %v5997_v19 = vmul.f32 0.70710677, %v560_v23  ;;  %v2518_v27 = vadd.f32 0.112945676, %v2517_v54 }
 0x27c   : > { %v3895_v47 = vclamps-f32 %v3137_v58, 1.0  ;;  %v3144_v36 = vmul.f32 %v3143_v46, %v5974_v38  ;;  %v3153_v10 = vmul.f32 3.8918573e-05, %v5974_v38  ;;  %v6003_v7 = vmul.f32 0.5, %v560_v23 }
 0x27d   : > { %v1251_v31 = vsel %vm1250_vm3, %v4112_v55, %v1247_v2  ;;  %v6006_v1 = vadd.f32 %v5702_v30, %v599_v12  ;;  %v2509_v60 = vadd.f32 0.18741608, %v2508_v48  ;;  %v2519_v34 = vmul.f32 %v2518_v27, %v5920_v8 }
 0x27e   : > { %v3437_v16 = vadd.f32 1.0, %v3895_v47  ;;  %v1256_v59 = vsel %vm5985_vm2, %v1255_v6, %v1251_v31  ;;  %v3145_v33 = vadd.f32 0.0036580483, %v3144_v36  ;;  %v1871_v32 = vadd.f32 1.1283791, %v1870_v14 }
 0x27f   : > { %v1257_v49 = vmul.f32 %v1256_v59, %v1232_v9  ;;  %v3154_v62 = vadd.f32 0.001143296, %v3153_v10  ;;  %v1260_v56 = vmul.f32 %v5997_v19, %v5997_v19  ;;  %v1892_v55 = vand.u32 2147483647, %v5983_v26 }
 0x280   : > { %v3501_v52 = vmul.f32 %v3437_v16, %v5923_v4  ;;  %v2520_v5 = vadd.f32 0.4994258, %v2519_v34  ;;  %v3146_v61 = vmul.f32 %v3145_v33, %v5974_v38  ;;  %v1894_v51 = vand.u32 2147483648, %v5983_v26 }
 0x281   : > { %v4114_v22 = vpop.eup %4113  ;;  %v3848_v18 = vclamps-f32 %v1257_v49, 1.0  ;;  %v3155_v45 = vmul.f32 %v3154_v62, %v5974_v38  ;;  %v6018_v4 = vmin.f32 %v1260_v56, 16.0  ;;  %v2510_v15 = vmul.f32 %v2509_v60, %v5920_v8 }
 0x282   : > { %3565 = vst [vmem:[%s4577_s8 + $0x1c8] sm:$0xff] %v3501_v52  ;;  %v1884_v9 = vmul.f32 %v4114_v22, %v5983_v26  ;;  %v2521_v3 = vmul.f32 %v2520_v5, %v5920_v8  ;;  %v3147_v20 = vadd.f32 0.05243302, %v3146_v61  ;;  %vm1889_vm4 = vweird.f32 %v4114_v22 }
 0x283   : > { %v3390_v43 = vadd.f32 1.0, %v3848_v18  ;;  %v3156_v41 = vadd.f32 0.014752088, %v3155_v45  ;;  %v1262_v50 = vmul.f32 2.1237322e-06, %v6018_v4  ;;  %v1872_v57 = vmul.f32 %v1871_v32, %v5882_v39 }
 0x284   : > { %v1885_v37 = vsub.f32 1.0, %v1884_v9  ;;  %v6024_v11 = vadd.f32 1.0, %v2521_v3  ;;  %v3148_v24 = vmul.f32 %v3147_v20, %v5974_v38  ;;  %v1273_v23 = vmul.f32 3.8918573e-05, %v6018_v4 }
 0x285   : > { %v3454_v42 = vmul.f32 %v3390_v43, %v5927_v0  ;;  %v3157_v21 = vmul.f32 %v3156_v41, %v5974_v38  ;;  %v1263_v40 = vadd.f32 0.00028619796, %v1262_v50  ;;  %v6030_v8 = vmul.f32 0.70710677, %v6006_v1 }
 0x286   : > { %v1886_v44 = vmul.f32 %v4114_v22, %v1885_v37  ;;  %vm1888_vm5 = vweird.f32 %v5983_v26  ;;  %vm1893_vm6 = vcmp.eq.f32.partialorder %v1892_v55, 8.507059e+37  ;;  %4115 = vrcp.f32 %v6024_v11 }
 0x287   : > { %3518 = vst [vmem:[%s4577_s8 + $0x50] sm:$0xff] %v3454_v42  ;;  %v1895_v63 = vor.u32 1.1754944e-38, %v1894_v51  ;;  %v3158_v58 = vadd.f32 0.112945676, %v3157_v21  ;;  %v1264_v13 = vmul.f32 %v1263_v40, %v6018_v4  ;;  %vm1890_vm7 = vmor %vm1888_vm5, %vm1889_vm4  ;;  %v2511_v54 = vadd.f32 1.1283791, %v2510_v15 }
 0x288   : > { %v1887_v0 = vadd.f32 %v4114_v22, %v1886_v44  ;;  %v1274_v46 = vadd.f32 0.001143296, %v1273_v23  ;;  %v1900_v2 = vmul.f32 %v6030_v8, %v6030_v8  ;;  %v6041_v6 = vadd.f32 %v5702_v30, %v639_v29 }
 0x289   : > { %v3149_v26 = vadd.f32 0.18741608, %v3148_v24  ;;  %v3159_v48 = vmul.f32 %v3158_v58, %v5974_v38  ;;  %v1265_v12 = vadd.f32 0.0036580483, %v1264_v13  ;;  %v2532_v14 = vand.u32 2147483647, %v6024_v11  ;;  %v679_v58 = vpop.f32.mrf.mxu3 }
 0x28a   : > { %v1891_v39 = vsel %vm1890_vm7, %v4114_v22, %v1887_v0  ;;  %v1275_v31 = vmul.f32 %v1274_v46, %v6018_v4  ;;  %v6046_v27 = vmin.f32 %v1900_v2, 16.0  ;;  %v2534_v10 = vand.u32 2147483648, %v6024_v11 }
 0x28b   : > { %v1896_v47 = vsel %vm1893_vm6, %v1895_v63, %v1891_v39  ;;  %v3160_v16 = vadd.f32 0.4994258, %v3159_v48  ;;  %v1266_v59 = vmul.f32 %v1265_v12, %v6018_v4  ;;  %v3150_v62 = vmul.f32 %v3149_v26, %v5974_v38 }
 0x28c   : > { %v1897_v36 = vmul.f32 %v1896_v47, %v1872_v57  ;;  %v4116_v49 = vpop.eup %4115  ;;  %v1276_v60 = vadd.f32 0.014752088, %v1275_v31  ;;  %v1902_v34 = vmul.f32 2.1237322e-06, %v6046_v27  ;;  %v1913_v33 = vmul.f32 3.8918573e-05, %v6046_v27 }
 0x28d   : > { %v2524_v32 = vmul.f32 %v4116_v49, %v6024_v11  ;;  %vm2529_vm8 = vweird.f32 %v4116_v49  ;;  %v3161_v56 = vmul.f32 %v3160_v16, %v5974_v38  ;;  %v1267_v22 = vadd.f32 0.05243302, %v1266_v59 }
 0x28e   : > { %v3864_v52 = vclamps-f32 %v1897_v36, 1.0  ;;  %v1277_v18 = vmul.f32 %v1276_v60, %v6018_v4  ;;  %v1903_v55 = vadd.f32 0.00028619796, %v1902_v34  ;;  %v1914_v9 = vadd.f32 0.001143296, %v1913_v33  ;;  %v562_v34 = vpop.f32.mrf.mxu0 }
 0x28f   : > { %v2525_v61 = vsub.f32 1.0, %v2524_v32  ;;  %v6057_v51 = vmul.f32 0.70710677, %v6041_v6  ;;  %v6059_v45 = vadd.f32 1.0, %v3161_v56  ;;  %v1268_v43 = vmul.f32 %v1267_v22, %v6018_v4 }
 0x290   : > { %v3406_v5 = vadd.f32 1.0, %v3864_v52  ;;  %v1278_v15 = vadd.f32 0.112945676, %v1277_v18  ;;  %v1904_v3 = vmul.f32 %v1903_v55, %v6046_v27  ;;  %v1915_v37 = vmul.f32 %v1914_v9, %v6046_v27 }
 0x291   : > { %v2526_v20 = vmul.f32 %v4116_v49, %v2525_v61  ;;  %v2540_v41 = vmul.f32 %v6057_v51, %v6057_v51  ;;  %v2512_v50 = vmul.f32 %v2511_v54, %v5892_v53  ;;  %vm2528_vm9 = vweird.f32 %v6024_v11 }
 0x292   : > { %v3470_v38 = vmul.f32 %v3406_v5, %v5933_v25  ;;  %vm6069_vm10 = vcmp.eq.f32.partialorder %v2532_v14, 8.507059e+37  ;;  %4117 = vrcp.f32 %v6059_v45  ;;  %v3151_v23 = vadd.f32 1.1283791, %v3150_v62  ;;  %vm2530_vm11 = vmor %vm2528_vm9, %vm2529_vm8 }
 0x293   : > { %v2527_v24 = vadd.f32 %v4116_v49, %v2526_v20  ;;  %v1279_v25 = vmul.f32 %v1278_v15, %v6018_v4  ;;  %v1905_v44 = vadd.f32 0.0036580483, %v1904_v3  ;;  %v2535_v21 = vor.u32 1.1754944e-38, %v2534_v10 }
 0x294   : > { %3534 = vst [vmem:[%s4577_s8 + $0xd0] sm:$0xff] %v3470_v38  ;;  %v3172_v40 = vand.u32 2147483647, %v6059_v45  ;;  %v1916_v53 = vadd.f32 0.014752088, %v1915_v37  ;;  %v6078_v29 = vmin.f32 %v2540_v41, 16.0  ;;  %v6089_v10 = vadd.f32 %v5702_v30, %v679_v58 }
 0x295   : > { %v2531_v11 = vsel %vm2530_vm11, %v4116_v49, %v2527_v24  ;;  %v1269_v57 = vadd.f32 0.18741608, %v1268_v43  ;;  %v1280_v0 = vadd.f32 0.4994258, %v1279_v25  ;;  %v1906_v63 = vmul.f32 %v1905_v44, %v6046_v27 }
 0x296   : > { %v2536_v13 = vsel %vm6069_vm10, %v2535_v21, %v2531_v11  ;;  %v1917_v54 = vmul.f32 %v1916_v53, %v6046_v27  ;;  %v2542_v46 = vmul.f32 2.1237322e-06, %v6078_v29  ;;  %v2553_v2 = vmul.f32 3.8918573e-05, %v6078_v29 }
 0x297   : > { %v2537_v39 = vmul.f32 %v2536_v13, %v2512_v50  ;;  %v3174_v26 = vand.u32 2147483648, %v6059_v45  ;;  %v1281_v48 = vmul.f32 %v1280_v0, %v6018_v4  ;;  %v1907_v12 = vadd.f32 0.05243302, %v1906_v63 }
 0x298   : > { %v4118_v47 = vpop.eup %4117  ;;  %v1918_v14 = vadd.f32 0.112945676, %v1917_v54  ;;  %v2543_v31 = vadd.f32 0.00028619796, %v2542_v46  ;;  %v2554_v36 = vadd.f32 0.001143296, %v2553_v2  ;;  %v3152_v59 = vmul.f32 %v3151_v23, %v5962_v28 }
 0x299   : > { %v3880_v16 = vclamps-f32 %v2537_v39, 1.0  ;;  %v3164_v49 = vmul.f32 %v4118_v47, %v6059_v45  ;;  %v1270_v60 = vmul.f32 %v1269_v57, %v6018_v4  ;;  %v6094_v33 = vadd.f32 1.0, %v1281_v48 }
 0x29a   : > { %v1908_v52 = vmul.f32 %v1907_v12, %v6046_v27  ;;  %v1919_v32 = vmul.f32 %v1918_v14, %v6046_v27  ;;  %v2544_v62 = vmul.f32 %v2543_v31, %v6078_v29  ;;  %vm6099_vm12 = vcmp.eq.f32.partialorder %v3172_v40, 8.507059e+37 }
 0x29b   : > { %v3422_v56 = vadd.f32 1.0, %v3880_v16  ;;  %v3165_v22 = vsub.f32 1.0, %v3164_v49  ;;  %v2555_v28 = vmul.f32 %v2554_v36, %v6078_v29  ;;  %vm3169_vm13 = vweird.f32 %v4118_v47 }
 0x29c   : > { %v3175_v4 = vor.u32 1.1754944e-38, %v3174_v26  ;;  %4119 = vrcp.f32 %v6094_v33  ;;  %v6106_v55 = vadd.f32 %v5702_v30, %v562_v34  ;;  %v1909_v9 = vadd.f32 0.18741608, %v1908_v52 }
 0x29d   : > { %v3486_v5 = vmul.f32 %v3422_v56, %v5945_v17  ;;  %v3166_v61 = vmul.f32 %v4118_v47, %v3165_v22  ;;  %v1920_v43 = vadd.f32 0.4994258, %v1919_v32  ;;  %vm3168_vm14 = vweird.f32 %v6059_v45 }
 0x29e   : > { %v1271_v15 = vadd.f32 1.1283791, %v1270_v60  ;;  %v2545_v3 = vadd.f32 0.0036580483, %v2544_v62  ;;  %v2556_v38 = vadd.f32 0.014752088, %v2555_v28  ;;  %vm3170_vm15 = vmor %vm3168_vm14, %vm3169_vm13  ;;  %v1910_v30 = vmul.f32 %v1909_v9, %v6046_v27 }
 0x29f   : > { %3550 = vst [vmem:[%s4577_s8 + $0x150] sm:$0xff] %v3486_v5  ;;  %v3167_v20 = vadd.f32 %v4118_v47, %v3166_v61  ;;  %v1292_v37 = vand.u32 2147483647, %v6094_v33  ;;  %v1921_v41 = vmul.f32 %v1920_v43, %v6046_v27  ;;  %v6114_v50 = vmul.f32 0.70710677, %v6089_v10  ;;  %v602_v5 = vpop.f32.mrf.mxu1 }
 0x2a0   : > { %v2546_v17 = vmul.f32 %v2545_v3, %v6078_v29  ;;  %v2557_v45 = vmul.f32 %v2556_v38, %v6078_v29  ;;  %v6121_v42 = vmul.f32 0.70710677, %v6106_v55  ;;  %v1294_v23 = vand.u32 2147483648, %v6094_v33 }
 0x2a1   : > { %v3171_v24 = vsel %vm3170_vm15, %v4118_v47, %v3167_v20  ;;  %v6124_v25 = vadd.f32 1.0, %v1921_v41  ;;  %v3180_v44 = vmul.f32 %v6114_v50, %v6114_v50  ;;  %v1272_v0 = vmul.f32 %v1271_v15, %v5997_v19  ;;  %v642_v20 = vpop.f32.mrf.mxu2  ;;  %v6177_v41 = vld [vmem:[%s4344_s19] ss:$0 sm:$0xff] }
 0x2a2   : > { %v4120_v21 = vpop.eup %4119  ;;  %v3176_v40 = vsel %vm6099_vm12, %v3175_v4, %v3171_v24  ;;  %v2547_v27 = vadd.f32 0.05243302, %v2546_v17  ;;  %v2558_v53 = vadd.f32 0.112945676, %v2557_v45  ;;  %v1300_v11 = vmul.f32 %v6121_v42, %v6121_v42 }
 0x2a3   : > { %v3177_v57 = vmul.f32 %v3176_v40, %v3152_v59  ;;  %v1284_v63 = vmul.f32 %v4120_v21, %v6094_v33  ;;  %v6135_v58 = vmul.f32 0.5, %v6006_v1  ;;  %vm1288_vm0 = vweird.f32 %v6094_v33 }
 0x2a4   : > { %vm6138_vm1 = vcmp.eq.f32.partialorder %v1292_v37, 8.507059e+37  ;;  %v1911_v54 = vadd.f32 1.1283791, %v1910_v30  ;;  %4121 = vrcp.f32 %v6124_v25  ;;  %v2548_v39 = vmul.f32 %v2547_v27, %v6078_v29 }
 0x2a5   : > { %v3896_v46 = vclamps-f32 %v3177_v57, 1.0  ;;  %v1285_v2 = vsub.f32 1.0, %v1284_v63  ;;  %v2559_v19 = vmul.f32 %v2558_v53, %v6078_v29  ;;  %vm1289_vm2 = vweird.f32 %v4120_v21 }
 0x2a6   : > { %v1295_v26 = vor.u32 1.1754944e-38, %v1294_v23  ;;  %v6145_v48 = vmin.f32 %v3180_v44, 16.0  ;;  %v6147_v1 = vmin.f32 %v1300_v11, 16.0  ;;  %v2549_v14 = vadd.f32 0.18741608, %v2548_v39  ;;  %vm1290_vm3 = vmor %vm1288_vm0, %vm1289_vm2 }
 0x2a7   : > { %v3438_v12 = vadd.f32 1.0, %v3896_v46  ;;  %v1286_v47 = vmul.f32 %v4120_v21, %v1285_v2  ;;  %v2560_v31 = vadd.f32 0.4994258, %v2559_v19  ;;  %v1912_v36 = vmul.f32 %v1911_v54, %v6030_v8 }
 0x2a8   : > { %v3182_v16 = vmul.f32 2.1237322e-06, %v6145_v48  ;;  %v3193_v59 = vmul.f32 3.8918573e-05, %v6145_v48  ;;  %v1302_v49 = vmul.f32 2.1237322e-06, %v6147_v1  ;;  %v2550_v8 = vmul.f32 %v2549_v14, %v6078_v29 }
 0x2a9   : > { %v3502_v60 = vmul.f32 %v3438_v12, %v5995_v35  ;;  %v1287_v34 = vadd.f32 %v4120_v21, %v1286_v47  ;;  %v1932_v52 = vand.u32 2147483647, %v6124_v25  ;;  %v2561_v32 = vmul.f32 %v2560_v31, %v6078_v29 }
 0x2aa   : > { %v4122_v62 = vpop.eup %4121  ;;  %v3183_v56 = vadd.f32 0.00028619796, %v3182_v16  ;;  %v3194_v22 = vadd.f32 0.001143296, %v3193_v59  ;;  %v1303_v18 = vadd.f32 0.00028619796, %v1302_v49  ;;  %vm1928_vm4 = vweird.f32 %v6124_v25 }
 0x2ab   : > { %3566 = vst [vmem:[%s4577_s8 + $0x1d0] sm:$0xff] %v3502_v60  ;;  %v1291_v28 = vsel %vm1290_vm3, %v4120_v21, %v1287_v34  ;;  %v1924_v4 = vmul.f32 %v4122_v62, %v6124_v25  ;;  %v1934_v35 = vand.u32 2147483648, %v6124_v25  ;;  %v6166_v33 = vadd.f32 1.0, %v2561_v32 }
 0x2ac   : > { %v1296_v61 = vsel %vm6138_vm1, %v1295_v26, %v1291_v28  ;;  %v3184_v29 = vmul.f32 %v3183_v56, %v6145_v48  ;;  %v3195_v9 = vmul.f32 %v3194_v22, %v6145_v48  ;;  %vm6170_vm5 = vcmp.eq.f32.partialorder %v1932_v52, 8.507059e+37 }
 0x2ad   : > { %v1297_v43 = vmul.f32 %v1296_v61, %v1272_v0  ;;  %v1925_v15 = vsub.f32 1.0, %v1924_v4  ;;  %v1304_v38 = vmul.f32 %v1303_v18, %v6147_v1  ;;  %vm1929_vm6 = vweird.f32 %v4122_v62 }
 0x2ae   : > { %v2551_v37 = vadd.f32 1.1283791, %v2550_v8  ;;  %4123 = vrcp.f32 %v6166_v33  ;;  %v6180_v30 = vadd.f32 %v6177_v41, %v602_v5  ;;  %v3185_v24 = vadd.f32 0.0036580483, %v3184_v29  ;;  %vm1930_vm7 = vmor %vm1928_vm4, %vm1929_vm6 }
 0x2af   : > { %v3849_v17 = vclamps-f32 %v1297_v43, 1.0  ;;  %v1926_v45 = vmul.f32 %v4122_v62, %v1925_v15  ;;  %v3196_v23 = vadd.f32 0.014752088, %v3195_v9  ;;  %v1935_v44 = vor.u32 1.1754944e-38, %v1934_v35 }
 0x2b0   : > { %v1305_v21 = vadd.f32 0.0036580483, %v1304_v38  ;;  %v1313_v40 = vmul.f32 3.8918573e-05, %v6147_v1  ;;  %v6184_v27 = vadd.f32 %v6177_v41, %v642_v20  ;;  %v3186_v57 = vmul.f32 %v3185_v24, %v6145_v48 }
 0x2b1   : > { %v3391_v53 = vadd.f32 1.0, %v3849_v17  ;;  %v1927_v11 = vadd.f32 %v4122_v62, %v1926_v45  ;;  %v3197_v0 = vmul.f32 %v3196_v23, %v6145_v48  ;;  %v2552_v63 = vmul.f32 %v2551_v37, %v6057_v51 }
 0x2b2   : > { %v1306_v13 = vmul.f32 %v1305_v21, %v6147_v1  ;;  %v1314_v54 = vadd.f32 0.001143296, %v1313_v40  ;;  %v6194_v46 = vmul.f32 0.70710677, %v6180_v30  ;;  %vm2568_vm8 = vweird.f32 %v6166_v33 }
 0x2b3   : > { %v3455_v2 = vmul.f32 %v3391_v53, %v6003_v7  ;;  %v1931_v39 = vsel %vm1930_vm7, %v4122_v62, %v1927_v11  ;;  %v3187_v19 = vadd.f32 0.05243302, %v3186_v57  ;;  %v3198_v26 = vadd.f32 0.112945676, %v3197_v0  ;;  %v682_v53 = vpop.f32.mrf.mxu3 }
 0x2b4   : > { %v4124_v12 = vpop.eup %4123  ;;  %v1936_v25 = vsel %vm6170_vm5, %v1935_v44, %v1931_v39  ;;  %v1307_v47 = vadd.f32 0.05243302, %v1306_v13  ;;  %v1315_v51 = vmul.f32 %v1314_v54, %v6147_v1  ;;  %v1940_v14 = vmul.f32 %v6194_v46, %v6194_v46 }
 0x2b5   : > { %3519 = vst [vmem:[%s4577_s8 + $0x58] sm:$0xff] %v3455_v2  ;;  %v1937_v31 = vmul.f32 %v1936_v25, %v1912_v36  ;;  %v2564_v16 = vmul.f32 %v4124_v12, %v6166_v33  ;;  %v2572_v7 = vand.u32 2147483647, %v6166_v33  ;;  %v3188_v59 = vmul.f32 %v3187_v19, %v6145_v48 }
 0x2b6   : > { %v3199_v49 = vmul.f32 %v3198_v26, %v6145_v48  ;;  %v1308_v60 = vmul.f32 %v1307_v47, %v6147_v1  ;;  %v1316_v34 = vadd.f32 0.014752088, %v1315_v51  ;;  %v6209_v52 = vmin.f32 %v1940_v14, 16.0 }
 0x2b7   : > { %v3865_v32 = vclamps-f32 %v1937_v31, 1.0  ;;  %v2565_v62 = vsub.f32 1.0, %v2564_v16  ;;  %vm2569_vm9 = vweird.f32 %v4124_v12  ;;  %v2574_v8 = vand.u32 2147483648, %v6166_v33 }
 0x2b8   : > { %v3189_v56 = vadd.f32 0.18741608, %v3188_v59  ;;  %v3200_v36 = vadd.f32 0.4994258, %v3199_v49  ;;  %v1317_v22 = vmul.f32 %v1316_v34, %v6147_v1  ;;  %v1942_v18 = vmul.f32 2.1237322e-06, %v6209_v52  ;;  %vm2570_vm11 = vmor %vm2568_vm8, %vm2569_vm9 }
 0x2b9   : > { %v3407_v28 = vadd.f32 1.0, %v3865_v32  ;;  %v2566_v4 = vmul.f32 %v4124_v12, %v2565_v62  ;;  %v1309_v35 = vadd.f32 0.18741608, %v1308_v60  ;;  %v1953_v5 = vmul.f32 3.8918573e-05, %v6209_v52 }
 0x2ba   : > { %vm6215_vm10 = vcmp.eq.f32.partialorder %v2572_v7, 8.507059e+37  ;;  %v3201_v29 = vmul.f32 %v3200_v36, %v6145_v48  ;;  %v1318_v9 = vadd.f32 0.112945676, %v1317_v22  ;;  %v1943_v43 = vadd.f32 0.00028619796, %v1942_v18 }
 0x2bb   : > { %v3471_v15 = vmul.f32 %v3407_v28, %v6135_v58  ;;  %v2567_v3 = vadd.f32 %v4124_v12, %v2566_v4  ;;  %v2575_v38 = vor.u32 1.1754944e-38, %v2574_v8  ;;  %v1954_v20 = vadd.f32 0.001143296, %v1953_v5  ;;  %v564_v28 = vpop.f32.mrf.mxu0  ;;  %v604_v4 = vpop.f32.mrf.mxu1 }
 0x2bc   : > { %v3190_v37 = vmul.f32 %v3189_v56, %v6145_v48  ;;  %v6225_v17 = vadd.f32 1.0, %v3201_v29  ;;  %v1319_v45 = vmul.f32 %v1318_v9, %v6147_v1  ;;  %v1944_v24 = vmul.f32 %v1943_v43, %v6209_v52 }
 0x2bd   : > { %3535 = vst [vmem:[%s4577_s8 + $0xd8] sm:$0xff] %v3471_v15  ;;  %v2571_v23 = vsel %vm2570_vm11, %v4124_v12, %v2567_v3  ;;  %v1310_v44 = vmul.f32 %v1309_v35, %v6147_v1  ;;  %v1955_v58 = vmul.f32 %v1954_v20, %v6209_v52  ;;  %v6233_v21 = vmul.f32 0.70710677, %v6184_v27 }
 0x2be   : > { %v735_v33 = vmul.f32 0.5, %v6041_v6  ;;  %v2576_v48 = vsel %vm6215_vm10, %v2575_v38, %v2571_v23  ;;  %v6239_v40 = vmul.f32 0.5, %v6089_v10  ;;  %4125 = vrcp.f32 %v6225_v17 }
 0x2bf   : > { %v2577_v11 = vmul.f32 %v2576_v48, %v2552_v63  ;;  %v6243_v57 = vmul.f32 0.5, %v6106_v55  ;;  %v1320_v0 = vadd.f32 0.4994258, %v1319_v45  ;;  %v6246_v13 = vmul.f32 0.5, %v6180_v30 }
 0x2c0   : > { %v3191_v54 = vadd.f32 1.1283791, %v3190_v37  ;;  %v1945_v2 = vadd.f32 0.0036580483, %v1944_v24  ;;  %v1956_v6 = vadd.f32 0.014752088, %v1955_v58  ;;  %v2580_v39 = vmul.f32 %v6233_v21, %v6233_v21 }
 0x2c1   : > { %v3881_v19 = vclamps-f32 %v2577_v11, 1.0  ;;  %v1311_v10 = vadd.f32 1.1283791, %v1310_v44  ;;  %v1321_v26 = vmul.f32 %v1320_v0, %v6147_v1  ;;  %v6252_v12 = vadd.f32 %v6177_v41, %v682_v53 }
 0x2c2   : > { %v3212_v55 = vand.u32 2147483647, %v6225_v17  ;;  %v1946_v63 = vmul.f32 %v1945_v2, %v6209_v52  ;;  %v1957_v30 = vmul.f32 %v1956_v6, %v6209_v52  ;;  %v6257_v25 = vmin.f32 %v2580_v39, 16.0 }
 0x2c3   : > { %v3423_v47 = vadd.f32 1.0, %v3881_v19  ;;  %v3214_v51 = vand.u32 2147483648, %v6225_v17  ;;  %v6260_v14 = vadd.f32 1.0, %v1321_v26  ;;  %v6263_v31 = vmul.f32 0.70710677, %v6252_v12 }
 0x2c4   : > { %v4126_v1 = vpop.eup %4125  ;;  %v1947_v16 = vadd.f32 0.05243302, %v1946_v63  ;;  %v1958_v7 = vadd.f32 0.112945676, %v1957_v30  ;;  %v2582_v59 = vmul.f32 2.1237322e-06, %v6257_v25  ;;  %v3192_v32 = vmul.f32 %v3191_v54, %v6114_v50 }
 0x2c5   : > { %v3487_v49 = vmul.f32 %v3423_v47, %v735_v33  ;;  %v3204_v60 = vmul.f32 %v4126_v1, %v6225_v17  ;;  %4127 = vrcp.f32 %v6260_v14  ;;  %v6269_v34 = vmul.f32 0.5, %v6184_v27 }
 0x2c6   : > { %vm3208_vm12 = vweird.f32 %v6225_v17  ;;  %v6274_v62 = vmul.f32 %v1311_v10, %v6121_v42  ;;  %v1948_v8 = vmul.f32 %v1947_v16, %v6209_v52  ;;  %v1959_v36 = vmul.f32 %v1958_v7, %v6209_v52 }
 0x2c7   : > { %3551 = vst [vmem:[%s4577_s8 + $0x158] sm:$0xff] %v3487_v49  ;;  %v3205_v56 = vsub.f32 1.0, %v3204_v60  ;;  %v2583_v22 = vadd.f32 0.00028619796, %v2582_v59  ;;  %v2593_v18 = vmul.f32 3.8918573e-05, %v6257_v25  ;;  %vm3209_vm13 = vweird.f32 %v4126_v1 }
 0x2c8   : > { %vm6280_vm14 = vcmp.eq.f32.partialorder %v3212_v55, 8.507059e+37  ;;  %v3215_v50 = vor.u32 1.1754944e-38, %v3214_v51  ;;  %v3220_v42 = vmul.f32 %v6263_v31, %v6263_v31  ;;  %v1960_v5 = vadd.f32 0.4994258, %v1959_v36  ;;  %vm3210_vm15 = vmor %vm3208_vm12, %vm3209_vm13 }
 0x2c9   : > { %v3206_v35 = vmul.f32 %v4126_v1, %v3205_v56  ;;  %v2584_v61 = vmul.f32 %v2583_v22, %v6257_v25  ;;  %v2594_v29 = vadd.f32 0.001143296, %v2593_v18  ;;  %v1949_v9 = vadd.f32 0.18741608, %v1948_v8 }
 0x2ca   : > { %v6287_v43 = vmin.f32 %v3220_v42, 16.0  ;;  %v6290_v15 = vadd.f32 %v6177_v41, %v564_v28  ;;  %v6293_v3 = vadd.f32 %v6177_v41, %v604_v4  ;;  %v1961_v37 = vmul.f32 %v1960_v5, %v6209_v52 }
 0x2cb   : > { %v4128_v38 = vpop.eup %4127  ;;  %v3207_v20 = vadd.f32 %v4126_v1, %v3206_v35  ;;  %v2585_v45 = vadd.f32 0.0036580483, %v2584_v61  ;;  %v2595_v24 = vmul.f32 %v2594_v29, %v6257_v25  ;;  %vm1328_vm0 = vweird.f32 %v6260_v14 }
 0x2cc   : > { %v1324_v23 = vmul.f32 %v4128_v38, %v6260_v14  ;;  %v1334_v44 = vand.u32 2147483648, %v6260_v14  ;;  %v3222_v58 = vmul.f32 2.1237322e-06, %v6287_v43  ;;  %v6304_v48 = vadd.f32 1.0, %v1961_v37 }
 0x2cd   : > { %v3211_v33 = vsel %vm3210_vm15, %v4126_v1, %v3207_v20  ;;  %v2586_v53 = vmul.f32 %v2585_v45, %v6257_v25  ;;  %v2596_v11 = vadd.f32 0.014752088, %v2595_v24  ;;  %v1950_v17 = vmul.f32 %v1949_v9, %v6209_v52 }
 0x2ce   : > { %v3216_v0 = vsel %vm6280_vm14, %v3215_v50, %v3211_v33  ;;  %v1325_v54 = vsub.f32 1.0, %v1324_v23  ;;  %v3223_v2 = vadd.f32 0.00028619796, %v3222_v58  ;;  %v1332_v39 = vand.u32 2147483647, %v6260_v14  ;;  %v644_v33 = vpop.f32.mrf.mxu2 }
 0x2cf   : > { %v3217_v6 = vmul.f32 %v3216_v0, %v3192_v32  ;;  %4129 = vrcp.f32 %v6304_v48  ;;  %v6313_v19 = vmul.f32 0.70710677, %v6290_v15  ;;  %vm1329_vm1 = vweird.f32 %v4128_v38 }
 0x2d0   : > { %v1326_v10 = vmul.f32 %v4128_v38, %v1325_v54  ;;  %v2587_v26 = vadd.f32 0.05243302, %v2586_v53  ;;  %v2597_v55 = vmul.f32 %v2596_v11, %v6257_v25  ;;  %v1335_v30 = vor.u32 1.1754944e-38, %v1334_v44  ;;  %vm1330_vm2 = vmor %vm1328_vm0, %vm1329_vm1 }
 0x2d1   : > { %v3897_v63 = vclamps-f32 %v3217_v6, 1.0  ;;  %v3224_v47 = vmul.f32 %v3223_v2, %v6287_v43  ;;  %v3233_v52 = vmul.f32 3.8918573e-05, %v6287_v43  ;;  %v1951_v1 = vadd.f32 1.1283791, %v1950_v17 }
 0x2d2   : > { %v1327_v51 = vadd.f32 %v4128_v38, %v1326_v10  ;;  %v2588_v16 = vmul.f32 %v2587_v26, %v6257_v25  ;;  %v2598_v7 = vadd.f32 0.112945676, %v2597_v55  ;;  %v1340_v32 = vmul.f32 %v6313_v19, %v6313_v19 }
 0x2d3   : > { %v3439_v59 = vadd.f32 1.0, %v3897_v63  ;;  %v3225_v49 = vadd.f32 0.0036580483, %v3224_v47  ;;  %v3234_v60 = vadd.f32 0.001143296, %v3233_v52  ;;  %vm1333_vm3 = vcmp.eq.f32.partialorder %v1332_v39, 8.507059e+37 }
 0x2d4   : > { %v1331_v8 = vsel %vm1330_vm2, %v4128_v38, %v1327_v51  ;;  %v1972_v56 = vand.u32 2147483647, %v6304_v48  ;;  %v2599_v36 = vmul.f32 %v2598_v7, %v6257_v25  ;;  %v1974_v42 = vand.u32 2147483648, %v6304_v48 }
 0x2d5   : > { %v4130_v22 = vpop.eup %4129  ;;  %v3503_v18 = vmul.f32 %v3439_v59, %v6239_v40  ;;  %v1336_v28 = vsel %vm1333_vm3, %v1335_v30, %v1331_v8  ;;  %v3226_v4 = vmul.f32 %v3225_v49, %v6287_v43  ;;  %v3235_v14 = vmul.f32 %v3234_v60, %v6287_v43 }
 0x2d6   : > { %v1337_v27 = vmul.f32 %v1336_v28, %v6274_v62  ;;  %v1964_v50 = vmul.f32 %v4130_v22, %v6304_v48  ;;  %v2589_v35 = vadd.f32 0.18741608, %v2588_v16  ;;  %v1952_v5 = vmul.f32 %v1951_v1, %v6194_v46 }
 0x2d7   : > { %3567 = vst [vmem:[%s4577_s8 + $0x1d8] sm:$0xff] %v3503_v18  ;;  %v2600_v61 = vadd.f32 0.4994258, %v2599_v36  ;;  %v3227_v29 = vadd.f32 0.05243302, %v3226_v4  ;;  %v6333_v9 = vmin.f32 %v1340_v32, 16.0  ;;  %vm1969_vm4 = vweird.f32 %v4130_v22 }
 0x2d8   : > { %v3850_v40 = vclamps-f32 %v1337_v27, 1.0  ;;  %v1965_v38 = vsub.f32 1.0, %v1964_v50  ;;  %v3236_v20 = vadd.f32 0.014752088, %v3235_v14  ;;  %v2590_v46 = vmul.f32 %v2589_v35, %v6257_v25 }
 0x2d9   : > { %v2601_v37 = vmul.f32 %v2600_v61, %v6257_v25  ;;  %v3228_v62 = vmul.f32 %v3227_v29, %v6287_v43  ;;  %v1342_v45 = vmul.f32 2.1237322e-06, %v6333_v9  ;;  %v1353_v24 = vmul.f32 3.8918573e-05, %v6333_v9  ;;  %v684_v29 = vpop.f32.mrf.mxu3 }
 0x2da   : > { %v3392_v23 = vadd.f32 1.0, %v3850_v40  ;;  %v1966_v44 = vmul.f32 %v4130_v22, %v1965_v38  ;;  %v3237_v58 = vmul.f32 %v3236_v20, %v6287_v43  ;;  %vm1968_vm5 = vweird.f32 %v6304_v48 }
 0x2db   : > { %v6342_v53 = vadd.f32 1.0, %v2601_v37  ;;  %v3229_v11 = vadd.f32 0.18741608, %v3228_v62  ;;  %v1343_v0 = vadd.f32 0.00028619796, %v1342_v45  ;;  %vm1970_vm6 = vmor %vm1968_vm5, %vm1969_vm4  ;;  %vm1973_vm7 = vcmp.eq.f32.partialorder %v1972_v56, 8.507059e+37 }
 0x2dc   : > { %v3456_v54 = vmul.f32 %v3392_v23, %v6243_v57  ;;  %v1967_v17 = vadd.f32 %v4130_v22, %v1966_v44  ;;  %v3238_v2 = vadd.f32 0.112945676, %v3237_v58  ;;  %v1354_v6 = vadd.f32 0.001143296, %v1353_v24 }
 0x2dd   : > { %v1975_v39 = vor.u32 1.1754944e-38, %v1974_v42  ;;  %4131 = vrcp.f32 %v6342_v53  ;;  %v6348_v25 = vadd.f32 %v6177_v41, %v644_v33  ;;  %v2591_v10 = vadd.f32 1.1283791, %v2590_v46 }
 0x2de   : > { %3520 = vst [vmem:[%s4577_s8 + $0x60] sm:$0xff] %v3456_v54  ;;  %v1971_v48 = vsel %vm1970_vm6, %v4130_v22, %v1967_v17  ;;  %v3239_v26 = vmul.f32 %v3238_v2, %v6287_v43  ;;  %v1344_v55 = vmul.f32 %v1343_v0, %v6333_v9  ;;  %v6354_v63 = vmul.f32 0.5, %v6252_v12 }
 0x2df   : > { %v1976_v57 = vsel %vm1973_vm7, %v1975_v39, %v1971_v48  ;;  %v6357_v30 = vmul.f32 0.5, %v6290_v15  ;;  %v1355_v47 = vmul.f32 %v1354_v6, %v6333_v9  ;;  %v3230_v51 = vmul.f32 %v3229_v11, %v6287_v43 }
 0x2e0   : > { %v1977_v52 = vmul.f32 %v1976_v57, %v1952_v5  ;;  %v3240_v1 = vadd.f32 0.4994258, %v3239_v26  ;;  %v1345_v16 = vadd.f32 0.0036580483, %v1344_v55  ;;  %v6362_v59 = vmul.f32 0.70710677, %v6293_v3 }
 0x2e1   : > { %v1356_v7 = vadd.f32 0.014752088, %v1355_v47  ;;  %v6365_v49 = vmul.f32 0.70710677, %v6348_v25  ;;  %v2592_v12 = vmul.f32 %v2591_v10, %v6233_v21  ;;  %v2612_v56 = vand.u32 2147483647, %v6342_v53  ;;  %v567_v10 = vpop.f32.mrf.mxu0 }
 0x2e2   : > { %v3866_v60 = vclamps-f32 %v1977_v52, 1.0  ;;  %v3241_v15 = vmul.f32 %v3240_v1, %v6287_v43  ;;  %v1346_v32 = vmul.f32 %v1345_v16, %v6333_v9  ;;  %v1980_v22 = vmul.f32 %v6362_v59, %v6362_v59 }
 0x2e3   : > { %v4132_v8 = vpop.eup %4131  ;;  %v1357_v36 = vmul.f32 %v1356_v7, %v6333_v9  ;;  %v2620_v18 = vmul.f32 %v6365_v49, %v6365_v49  ;;  %v3231_v21 = vadd.f32 1.1283791, %v3230_v51  ;;  %v2614_v43 = vand.u32 2147483648, %v6342_v53 }
 0x2e4   : > { %v3408_v28 = vadd.f32 1.0, %v3866_v60  ;;  %v2604_v4 = vmul.f32 %v4132_v8, %v6342_v53  ;;  %v6377_v14 = vadd.f32 1.0, %v3241_v15  ;;  %v1347_v27 = vadd.f32 0.05243302, %v1346_v32 }
 0x2e5   : > { %v1358_v50 = vadd.f32 0.112945676, %v1357_v36  ;;  %v6380_v42 = vmin.f32 %v1980_v22, 16.0  ;;  %v6384_v61 = vmin.f32 %v2620_v18, 16.0  ;;  %vm2608_vm8 = vweird.f32 %v6342_v53 }
 0x2e6   : > { %v3472_v35 = vmul.f32 %v3408_v28, %v6246_v13  ;;  %v2605_v5 = vsub.f32 1.0, %v2604_v4  ;;  %4133 = vrcp.f32 %v6377_v14  ;;  %vm6387_vm9 = vcmp.eq.f32.partialorder %v2612_v56, 8.507059e+37 }
 0x2e7   : > { %v1348_v38 = vmul.f32 %v1347_v27, %v6333_v9  ;;  %v1359_v20 = vmul.f32 %v1358_v50, %v6333_v9  ;;  %vm2609_vm10 = vweird.f32 %v4132_v8  ;;  %v1982_v13 = vmul.f32 2.1237322e-06, %v6380_v42 }
 0x2e8   : > { %3536 = vst [vmem:[%s4577_s8 + $0xe0] sm:$0xff] %v3472_v35  ;;  %v2606_v37 = vmul.f32 %v4132_v8, %v2605_v5  ;;  %v1993_v62 = vmul.f32 3.8918573e-05, %v6380_v42  ;;  %v2615_v45 = vor.u32 1.1754944e-38, %v2614_v43  ;;  %v3232_v24 = vmul.f32 %v3231_v21, %v6263_v31  ;;  %vm2610_vm11 = vmor %vm2608_vm8, %vm2609_vm10 }
 0x2e9   : > { %v1360_v23 = vadd.f32 0.4994258, %v1359_v20  ;;  %v6398_v44 = vadd.f32 %v6177_v41, %v684_v29  ;;  %v1983_v58 = vadd.f32 0.00028619796, %v1982_v13  ;;  %v2622_v11 = vmul.f32 2.1237322e-06, %v6384_v61 }
 0x2ea   : > { %v2607_v46 = vadd.f32 %v4132_v8, %v2606_v37  ;;  %v1994_v33 = vadd.f32 0.001143296, %v1993_v62  ;;  %vm3248_vm12 = vweird.f32 %v6377_v14  ;;  %v1349_v0 = vadd.f32 0.18741608, %v1348_v38 }
 0x2eb   : > { %v1361_v54 = vmul.f32 %v1360_v23, %v6333_v9  ;;  %v2633_v17 = vmul.f32 3.8918573e-05, %v6384_v61  ;;  %v1984_v6 = vmul.f32 %v1983_v58, %v6380_v42  ;;  %v2623_v48 = vadd.f32 0.00028619796, %v2622_v11 }
 0x2ec   : > { %v4134_v31 = vpop.eup %4133  ;;  %v2611_v2 = vsel %vm2610_vm11, %v4132_v8, %v2607_v46  ;;  %v1995_v39 = vmul.f32 %v1994_v33, %v6380_v42  ;;  %v3252_v55 = vand.u32 2147483647, %v6377_v14  ;;  %v3254_v57 = vand.u32 2147483648, %v6377_v14 }
 0x2ed   : > { %v2616_v26 = vsel %vm6387_vm9, %v2615_v45, %v2611_v2  ;;  %v3244_v53 = vmul.f32 %v4134_v31, %v6377_v14  ;;  %v6413_v52 = vadd.f32 1.0, %v1361_v54  ;;  %v1985_v51 = vadd.f32 0.0036580483, %v1984_v6 }
 0x2ee   : > { %v2617_v47 = vmul.f32 %v2616_v26, %v2592_v12  ;;  %v1996_v1 = vadd.f32 0.014752088, %v1995_v39  ;;  %v2624_v7 = vmul.f32 %v2623_v48, %v6384_v61  ;;  %v2634_v60 = vadd.f32 0.001143296, %v2633_v17 }
 0x2ef   : > { %v3245_v16 = vsub.f32 1.0, %v3244_v53  ;;  %v6417_v15 = vadd.f32 %v6177_v41, %v567_v10  ;;  %v1350_v8 = vmul.f32 %v1349_v0, %v6333_v9  ;;  %4135 = vrcp.f32 %v6413_v52 }
 0x2f0   : > { %v3882_v32 = vclamps-f32 %v2617_v47, 1.0  ;;  %v6422_v56 = vmul.f32 0.70710677, %v6398_v44  ;;  %vm3249_vm13 = vweird.f32 %v4134_v31  ;;  %v1986_v36 = vmul.f32 %v1985_v51, %v6380_v42 }
 0x2f1   : > { %v3246_v12 = vmul.f32 %v4134_v31, %v3245_v16  ;;  %v1997_v22 = vmul.f32 %v1996_v1, %v6380_v42  ;;  %vm6426_vm14 = vcmp.eq.f32.partialorder %v3252_v55, 8.507059e+37  ;;  %v2625_v4 = vadd.f32 0.0036580483, %v2624_v7  ;;  %vm3250_vm15 = vmor %vm3248_vm12, %vm3249_vm13 }
 0x2f2   : > { %v3424_v18 = vadd.f32 1.0, %v3882_v32  ;;  %v2635_v9 = vmul.f32 %v2634_v60, %v6384_v61  ;;  %v3255_v43 = vor.u32 1.1754944e-38, %v3254_v57  ;;  %v1987_v27 = vadd.f32 0.05243302, %v1986_v36 }
 0x2f3   : > { %v3247_v21 = vadd.f32 %v4134_v31, %v3246_v12  ;;  %v1998_v50 = vadd.f32 0.112945676, %v1997_v22  ;;  %v2626_v5 = vmul.f32 %v2625_v4, %v6384_v61  ;;  %v3260_v40 = vmul.f32 %v6422_v56, %v6422_v56 }
 0x2f4   : > { %v3488_v35 = vmul.f32 %v3424_v18, %v6269_v34  ;;  %v2636_v29 = vadd.f32 0.014752088, %v2635_v9  ;;  %v1351_v20 = vadd.f32 1.1283791, %v1350_v8  ;;  %v1988_v37 = vmul.f32 %v1987_v27, %v6380_v42 }
 0x2f5   : > { %v3251_v38 = vsel %vm3250_vm15, %v4134_v31, %v3247_v21  ;;  %v1999_v13 = vmul.f32 %v1998_v50, %v6380_v42  ;;  %v4136_v62 = vpop.eup %4135  ;;  %v2627_v45 = vadd.f32 0.05243302, %v2626_v5  ;;  %v6443_v23 = vmin.f32 %v3260_v40, 16.0 }
 0x2f6   : > { %3552 = vst [vmem:[%s4577_s8 + $0x160] sm:$0xff] %v3488_v35  ;;  %v3256_v34 = vsel %vm6426_vm14, %v3255_v43, %v3251_v38  ;;  %v2637_v14 = vmul.f32 %v2636_v29, %v6384_v61  ;;  %v1364_v58 = vmul.f32 %v4136_v62, %v6413_v52  ;;  %v1372_v33 = vand.u32 2147483647, %v6413_v52 }
 0x2f7   : > { %v3257_v46 = vmul.f32 %v3256_v34, %v3232_v24  ;;  %v1989_v11 = vadd.f32 0.18741608, %v1988_v37  ;;  %v2000_v0 = vadd.f32 0.4994258, %v1999_v13  ;;  %v2628_v54 = vmul.f32 %v2627_v45, %v6384_v61 }
 0x2f8   : > { %v2638_v17 = vadd.f32 0.112945676, %v2637_v14  ;;  %v3262_v31 = vmul.f32 2.1237322e-06, %v6443_v23  ;;  %v1365_v6 = vsub.f32 1.0, %v1364_v58  ;;  %v1374_v39 = vand.u32 2147483648, %v6413_v52 }
 0x2f9   : > { %v3898_v2 = vclamps-f32 %v3257_v46, 1.0  ;;  %v3273_v48 = vmul.f32 3.8918573e-05, %v6443_v23  ;;  %vm1369_vm0 = vweird.f32 %v4136_v62  ;;  %v2001_v24 = vmul.f32 %v2000_v0, %v6380_v42  ;;  %v647_v46 = vpop.f32.mrf.mxu2 }
 0x2fa   : > { %v2639_v10 = vmul.f32 %v2638_v17, %v6384_v61  ;;  %v3263_v26 = vadd.f32 0.00028619796, %v3262_v31  ;;  %v1366_v55 = vmul.f32 %v4136_v62, %v1365_v6  ;;  %v2629_v57 = vadd.f32 0.18741608, %v2628_v54 }
 0x2fb   : > { %v3440_v53 = vadd.f32 1.0, %v3898_v2  ;;  %v3274_v47 = vadd.f32 0.001143296, %v3273_v48  ;;  %v1990_v51 = vmul.f32 %v1989_v11, %v6380_v42  ;;  %v6454_v1 = vadd.f32 1.0, %v2001_v24 }
 0x2fc   : > { %v2640_v16 = vadd.f32 0.4994258, %v2639_v10  ;;  %v3264_v7 = vmul.f32 %v3263_v26, %v6443_v23  ;;  %v1367_v32 = vadd.f32 %v4136_v62, %v1366_v55  ;;  %vm1368_vm1 = vweird.f32 %v6413_v52 }
 0x2fd   : > { %v3504_v60 = vmul.f32 %v3440_v53, %v6354_v63  ;;  %v3275_v8 = vmul.f32 %v3274_v47, %v6443_v23  ;;  %v1352_v12 = vmul.f32 %v1351_v20, %v6313_v19  ;;  %vm1370_vm2 = vmor %vm1368_vm1, %vm1369_vm0  ;;  %vm1373_vm3 = vcmp.eq.f32.partialorder %v1372_v33, 8.507059e+37  ;;  %v607_v19 = vpop.f32.mrf.mxu1 }
 0x2fe   : > { %v1375_v36 = vor.u32 1.1754944e-38, %v1374_v39  ;;  %4137 = vrcp.f32 %v6454_v1  ;;  %v1371_v42 = vsel %vm1370_vm2, %v4136_v62, %v1367_v32  ;;  %v2630_v22 = vmul.f32 %v2629_v57, %v6384_v61 }
 0x2ff   : > { %3568 = vst [vmem:[%s4577_s8 + $0x1e0] sm:$0xff] %v3504_v60  ;;  %v2641_v18 = vmul.f32 %v2640_v16, %v6384_v61  ;;  %v3265_v63 = vadd.f32 0.0036580483, %v3264_v7  ;;  %v6467_v52 = vmul.f32 0.5, %v6293_v3  ;;  %v1991_v4 = vadd.f32 1.1283791, %v1990_v51 }
 0x300   : > { %v1376_v28 = vsel %vm1373_vm3, %v1375_v36, %v1371_v42  ;;  %v3276_v9 = vadd.f32 0.014752088, %v3275_v8  ;;  %v2012_v43 = vand.u32 2147483647, %v6454_v1  ;;  %v2014_v35 = vand.u32 2147483648, %v6454_v1 }
 0x301   : > { %v1377_v21 = vmul.f32 %v1376_v28, %v1352_v12  ;;  %v6470_v27 = vadd.f32 1.0, %v2641_v18  ;;  %v3266_v50 = vmul.f32 %v3265_v63, %v6443_v23  ;;  %v6475_v5 = vmul.f32 0.5, %v6348_v25 }
 0x302   : > { %v3277_v61 = vmul.f32 %v3276_v9, %v6443_v23  ;;  %v6479_v3 = vmul.f32 0.70710677, %v6417_v15  ;;  %v2631_v40 = vadd.f32 1.1283791, %v2630_v22  ;;  %v6483_v38 = vadd.f32 %v6177_v41, %v607_v19 }
 0x303   : > { %v3851_v29 = vclamps-f32 %v1377_v21, 1.0  ;;  %4139 = vrcp.f32 %v6470_v27  ;;  %v1992_v37 = vmul.f32 %v1991_v4, %v6362_v59  ;;  %v3267_v13 = vadd.f32 0.05243302, %v3266_v50 }
 0x304   : > { %v4138_v20 = vpop.eup %4137  ;;  %v3278_v62 = vadd.f32 0.112945676, %v3277_v61  ;;  %v1380_v25 = vmul.f32 %v6479_v3, %v6479_v3  ;;  %vm2008_vm4 = vweird.f32 %v6454_v1  ;;  %vm6490_vm5 = vcmp.eq.f32.partialorder %v2012_v43, 8.507059e+37 }
 0x305   : > { %v3393_v34 = vadd.f32 1.0, %v3851_v29  ;;  %v2004_v45 = vmul.f32 %v4138_v20, %v6454_v1  ;;  %v2015_v58 = vor.u32 1.1754944e-38, %v2014_v35  ;;  %v3268_v33 = vmul.f32 %v3267_v13, %v6443_v23  ;;  %v687_v1 = vpop.f32.mrf.mxu3 }
 0x306   : > { %v3279_v59 = vmul.f32 %v3278_v62, %v6443_v23  ;;  %v6496_v11 = vmin.f32 %v1380_v25, 16.0  ;;  %v2632_v17 = vmul.f32 %v2631_v40, %v6365_v49  ;;  %v6501_v31 = vmul.f32 0.70710677, %v6483_v38 }
 0x307   : > { %v3457_v0 = vmul.f32 %v3393_v34, %v6357_v30  ;;  %v2005_v54 = vsub.f32 1.0, %v2004_v45  ;;  %v3269_v2 = vadd.f32 0.18741608, %v3268_v33  ;;  %v6505_v48 = vadd.f32 %v6177_v41, %v647_v46 }
 0x308   : > { %v3280_v6 = vadd.f32 0.4994258, %v3279_v59  ;;  %v1382_v39 = vmul.f32 2.1237322e-06, %v6496_v11  ;;  %vm2009_vm6 = vweird.f32 %v4138_v20  ;;  %v1393_v26 = vmul.f32 3.8918573e-05, %v6496_v11 }
 0x309   : > { %v4140_v24 = vpop.eup %4139  ;;  %3521 = vst [vmem:[%s4577_s8 + $0x68] sm:$0xff] %v3457_v0  ;;  %v2006_v10 = vmul.f32 %v4138_v20, %v2005_v54  ;;  %v2020_v30 = vmul.f32 %v6501_v31, %v6501_v31  ;;  %v2652_v53 = vand.u32 2147483647, %v6470_v27  ;;  %v2654_v55 = vand.u32 2147483648, %v6470_v27  ;;  %vm2010_vm7 = vmor %vm2008_vm4, %vm2009_vm6 }
 0x30a   : > { %v2644_v49 = vmul.f32 %v4140_v24, %v6470_v27  ;;  %v3281_v57 = vmul.f32 %v3280_v6, %v6443_v23  ;;  %v1383_v51 = vadd.f32 0.00028619796, %v1382_v39  ;;  %v1394_v16 = vadd.f32 0.001143296, %v1393_v26 }
 0x30b   : > { %v2007_v47 = vadd.f32 %v4138_v20, %v2006_v10  ;;  %v6515_v7 = vmin.f32 %v2020_v30, 16.0  ;;  %vm2648_vm8 = vweird.f32 %v6470_v27  ;;  %v3270_v32 = vmul.f32 %v3269_v2, %v6443_v23 }
 0x30c   : > { %v2645_v60 = vsub.f32 1.0, %v2644_v49  ;;  %v6521_v8 = vadd.f32 1.0, %v3281_v57  ;;  %v1384_v36 = vmul.f32 %v1383_v51, %v6496_v11  ;;  %v1395_v42 = vmul.f32 %v1394_v16, %v6496_v11 }
 0x30d   : > { %v2011_v12 = vsel %vm2010_vm7, %v4138_v20, %v2007_v47  ;;  %v2022_v22 = vmul.f32 2.1237322e-06, %v6515_v7  ;;  %vm2649_vm9 = vweird.f32 %v4140_v24  ;;  %vm6529_vm10 = vcmp.eq.f32.partialorder %v2652_v53, 8.507059e+37 }
 0x30e   : > { %v2016_v18 = vsel %vm6490_vm5, %v2015_v58, %v2011_v12  ;;  %v2646_v63 = vmul.f32 %v4140_v24, %v2645_v60  ;;  %4141 = vrcp.f32 %v6521_v8  ;;  %v2655_v4 = vor.u32 1.1754944e-38, %v2654_v55  ;;  %vm2650_vm11 = vmor %vm2648_vm8, %vm2649_vm9 }
 0x30f   : > { %v2017_v28 = vmul.f32 %v2016_v18, %v1992_v37  ;;  %v6534_v9 = vmul.f32 0.70710677, %v6505_v48  ;;  %v1385_v21 = vadd.f32 0.0036580483, %v1384_v36  ;;  %v1396_v43 = vadd.f32 0.014752088, %v1395_v42 }
 0x310   : > { %v2647_v19 = vadd.f32 %v4140_v24, %v2646_v63  ;;  %v2023_v50 = vadd.f32 0.00028619796, %v2022_v22  ;;  %v3271_v61 = vadd.f32 1.1283791, %v3270_v32  ;;  %v2033_v29 = vmul.f32 3.8918573e-05, %v6515_v7 }
 0x311   : > { %v3867_v35 = vclamps-f32 %v2017_v28, 1.0  ;;  %v6540_v40 = vadd.f32 %v6177_v41, %v687_v1  ;;  %v1386_v37 = vmul.f32 %v1385_v21, %v6496_v11  ;;  %v1397_v13 = vmul.f32 %v1396_v43, %v6496_v11 }
 0x312   : > { %v2651_v20 = vsel %vm2650_vm11, %v4140_v24, %v2647_v19  ;;  %v2024_v62 = vmul.f32 %v2023_v50, %v6515_v7  ;;  %v2034_v27 = vadd.f32 0.001143296, %v2033_v29  ;;  %v2660_v45 = vmul.f32 %v6534_v9, %v6534_v9 }
 0x313   : > { %v3409_v25 = vadd.f32 1.0, %v3867_v35  ;;  %v2656_v34 = vsel %vm6529_vm10, %v2655_v4, %v2651_v20  ;;  %v1387_v58 = vadd.f32 0.05243302, %v1386_v37  ;;  %v1398_v33 = vadd.f32 0.112945676, %v1397_v13  ;;  %v569_v4 = vpop.f32.mrf.mxu0 }
 0x314   : > { %v4142_v14 = vpop.eup %4141  ;;  %v2657_v46 = vmul.f32 %v2656_v34, %v2632_v17  ;;  %v2025_v59 = vadd.f32 0.0036580483, %v2024_v62  ;;  %v3292_v2 = vand.u32 2147483647, %v6521_v8  ;;  %v2035_v6 = vmul.f32 %v2034_v27, %v6515_v7 }
 0x315   : > { %v3473_v0 = vmul.f32 %v3409_v25, %v6467_v52  ;;  %v3284_v54 = vmul.f32 %v4142_v14, %v6521_v8  ;;  %v1388_v24 = vmul.f32 %v1387_v58, %v6496_v11  ;;  %v1399_v10 = vmul.f32 %v1398_v33, %v6496_v11 }
 0x316   : > { %v3883_v39 = vclamps-f32 %v2657_v46, 1.0  ;;  %v2026_v26 = vmul.f32 %v2025_v59, %v6515_v7  ;;  %vm3288_vm12 = vweird.f32 %v6521_v8  ;;  %v2036_v30 = vadd.f32 0.014752088, %v2035_v6 }
 0x317   : > { %3537 = vst [vmem:[%s4577_s8 + $0xe8] sm:$0xff] %v3473_v0  ;;  %v3285_v17 = vsub.f32 1.0, %v3284_v54  ;;  %v6558_v49 = vmin.f32 %v2660_v45, 16.0  ;;  %vm3289_vm13 = vweird.f32 %v4142_v14  ;;  %v3294_v53 = vand.u32 2147483648, %v6521_v8 }
 0x318   : > { %v3425_v52 = vadd.f32 1.0, %v3883_v39  ;;  %v1400_v55 = vadd.f32 0.4994258, %v1399_v10  ;;  %v2027_v47 = vadd.f32 0.05243302, %v2026_v26  ;;  %v2037_v51 = vmul.f32 %v2036_v30, %v6515_v7  ;;  %vm3290_vm14 = vmor %vm3288_vm12, %vm3289_vm13 }
 0x319   : > { %v3286_v57 = vmul.f32 %v4142_v14, %v3285_v17  ;;  %v2662_v16 = vmul.f32 2.1237322e-06, %v6558_v49  ;;  %v1389_v32 = vadd.f32 0.18741608, %v1388_v24  ;;  %v2673_v36 = vmul.f32 3.8918573e-05, %v6558_v49 }
 0x31a   : > { %v3489_v60 = vmul.f32 %v3425_v52, %v6475_v5  ;;  %v1401_v12 = vmul.f32 %v1400_v55, %v6496_v11  ;;  %v2028_v22 = vmul.f32 %v2027_v47, %v6515_v7  ;;  %v2038_v18 = vadd.f32 0.112945676, %v2037_v51 }
 0x31b   : > { %v3287_v42 = vadd.f32 %v4142_v14, %v3286_v57  ;;  %v2663_v63 = vadd.f32 0.00028619796, %v2662_v16  ;;  %v3272_v1 = vmul.f32 %v3271_v61, %v6422_v56  ;;  %v3295_v28 = vor.u32 1.1754944e-38, %v3294_v53 }
 0x31c   : > { %3553 = vst [vmem:[%s4577_s8 + $0x168] sm:$0xff] %v3489_v60  ;;  %v6572_v23 = vadd.f32 1.0, %v1401_v12  ;;  %v2674_v5 = vadd.f32 0.001143296, %v2673_v36  ;;  %vm3293_vm15 = vcmp.eq.f32.partialorder %v3292_v2, 8.507059e+37  ;;  %v2039_v21 = vmul.f32 %v2038_v18, %v6515_v7 }
 0x31d   : > { %v3291_v19 = vsel %vm3290_vm14, %v4142_v14, %v3287_v42  ;;  %v2664_v43 = vmul.f32 %v2663_v63, %v6558_v49  ;;  %v1390_v56 = vmul.f32 %v1389_v32, %v6496_v11  ;;  %v2029_v61 = vadd.f32 0.18741608, %v2028_v22 }
 0x31e   : > { %v3296_v50 = vsel %vm3293_vm15, %v3295_v28, %v3291_v19  ;;  %4143 = vrcp.f32 %v6572_v23  ;;  %v6579_v8 = vadd.f32 %v6177_v41, %v569_v4  ;;  %v2040_v29 = vadd.f32 0.4994258, %v2039_v21 }
 0x31f   : > { %v3297_v35 = vmul.f32 %v3296_v50, %v3272_v1  ;;  %v2665_v20 = vadd.f32 0.0036580483, %v2664_v43  ;;  %v2675_v37 = vmul.f32 %v2674_v5, %v6558_v49  ;;  %v6583_v13 = vmul.f32 0.70710677, %v6540_v40 }
 0x320   : > { %v753_v62 = vmul.f32 0.5, %v6398_v44  ;;  %v1412_v34 = vand.u32 2147483647, %v6572_v23  ;;  %v2041_v27 = vmul.f32 %v2040_v29, %v6515_v7  ;;  %v6592_v46 = vmul.f32 0.5, %v6417_v15  ;;  %v609_v44 = vpop.f32.mrf.mxu1 }
 0x321   : > { %v3899_v25 = vclamps-f32 %v3297_v35, 1.0  ;;  %v2666_v11 = vmul.f32 %v2665_v20, %v6558_v49  ;;  %v2676_v45 = vadd.f32 0.014752088, %v2675_v37  ;;  %v3300_v41 = vmul.f32 %v6583_v13, %v6583_v13 }
 0x322   : > { %v1391_v58 = vadd.f32 1.1283791, %v1390_v56  ;;  %v6595_v33 = vmul.f32 0.70710677, %v6579_v8  ;;  %v2030_v0 = vmul.f32 %v2029_v61, %v6515_v7  ;;  %v6598_v54 = vadd.f32 1.0, %v2041_v27 }
 0x323   : > { %v3441_v14 = vadd.f32 1.0, %v3899_v25  ;;  %v2677_v2 = vmul.f32 %v2676_v45, %v6558_v49  ;;  %v6601_v6 = vmin.f32 %v3300_v41, 16.0  ;;  %v2667_v24 = vadd.f32 0.05243302, %v2666_v11  ;;  %v6613_v7 = vld [vmem:[%s4344_s19] ss:$0 sm:$0xff] }
 0x324   : > { %v4144_v59 = vpop.eup %4143  ;;  %v1420_v10 = vmul.f32 %v6595_v33, %v6595_v33  ;;  %vm6606_vm0 = vcmp.eq.f32.partialorder %v1412_v34, 8.507059e+37  ;;  %v1414_v17 = vand.u32 2147483648, %v6572_v23  ;;  %4145 = vrcp.f32 %v6598_v54  ;;  %s3587_s19 = sshll.u32 %s4577_s8, 4  ;;  %s3588_s19 = int_to_ptr.vmem [resolvable:$true] %s3587_s19 }
 0x325   : > { %v3505_v39 = vmul.f32 %v3441_v14, %v753_v62  ;;  %v1404_v15 = vmul.f32 %v4144_v59, %v6572_v23  ;;  %v6616_v30 = vadd.f32 %v6613_v7, %v609_v44  ;;  %v1392_v52 = vmul.f32 %v1391_v58, %v6479_v3 }
 0x326   : > { %v2678_v55 = vadd.f32 0.112945676, %v2677_v2  ;;  %v3302_v57 = vmul.f32 2.1237322e-06, %v6601_v6  ;;  %vm1409_vm1 = vweird.f32 %v4144_v59  ;;  %v2031_v47 = vadd.f32 1.1283791, %v2030_v0 }
 0x327   : > { %3569 = vst [vmem:[%s4577_s8 + $0x1e8] sm:$0xff] %v3505_v39  ;;  %v1405_v53 = vsub.f32 1.0, %v1404_v15  ;;  %v3313_v51 = vmul.f32 3.8918573e-05, %v6601_v6  ;;  %v6622_v16 = vmin.f32 %v1420_v10, 16.0  ;;  %v2668_v32 = vmul.f32 %v2667_v24, %v6558_v49 }
 0x328   : > { %v2679_v12 = vmul.f32 %v2678_v55, %v6558_v49  ;;  %v3303_v36 = vadd.f32 0.00028619796, %v3302_v57  ;;  %vm1408_vm2 = vweird.f32 %v6572_v23  ;;  %v1415_v63 = vor.u32 1.1754944e-38, %v1414_v17 }
 0x329   : > { %v1406_v60 = vmul.f32 %v4144_v59, %v1405_v53  ;;  %v3314_v42 = vadd.f32 0.001143296, %v3313_v51  ;;  %v1422_v3 = vmul.f32 2.1237322e-06, %v6622_v16  ;;  %v1433_v22 = vmul.f32 3.8918573e-05, %v6622_v16  ;;  %vm1410_vm3 = vmor %vm1408_vm2, %vm1409_vm1 }
 0x32a   : > { %v2680_v1 = vadd.f32 0.4994258, %v2679_v12  ;;  %v3304_v28 = vmul.f32 %v3303_v36, %v6601_v6  ;;  %v4146_v5 = vpop.eup %4145  ;;  %v2032_v4 = vmul.f32 %v2031_v47, %v6501_v31  ;;  %v2052_v35 = vand.u32 2147483647, %v6598_v54 }
 0x32b   : > { %v1407_v18 = vadd.f32 %v4144_v59, %v1406_v60  ;;  %v3315_v19 = vmul.f32 %v3314_v42, %v6601_v6  ;;  %v1423_v21 = vadd.f32 0.00028619796, %v1422_v3  ;;  %v1434_v43 = vadd.f32 0.001143296, %v1433_v22 }
 0x32c   : > { %v2044_v50 = vmul.f32 %v4146_v5, %v6598_v54  ;;  %v2669_v56 = vadd.f32 0.18741608, %v2668_v32  ;;  %v2681_v29 = vmul.f32 %v2680_v1, %v6558_v49  ;;  %v3305_v20 = vadd.f32 0.0036580483, %v3304_v28 }
 0x32d   : > { %v1411_v23 = vsel %vm1410_vm3, %v4144_v59, %v1407_v18  ;;  %v3316_v37 = vadd.f32 0.014752088, %v3315_v19  ;;  %v2054_v31 = vand.u32 2147483648, %v6598_v54  ;;  %v1424_v34 = vmul.f32 %v1423_v21, %v6622_v16 }
 0x32e   : > { %v1416_v61 = vsel %vm6606_vm0, %v1415_v63, %v1411_v23  ;;  %v2045_v25 = vsub.f32 1.0, %v2044_v50  ;;  %v6640_v27 = vadd.f32 1.0, %v2681_v29  ;;  %v3306_v11 = vmul.f32 %v3305_v20, %v6601_v6 }
 0x32f   : > { %v1417_v62 = vmul.f32 %v1416_v61, %v1392_v52  ;;  %v3317_v45 = vmul.f32 %v3316_v37, %v6601_v6  ;;  %v1435_v41 = vmul.f32 %v1434_v43, %v6622_v16  ;;  %vm2049_vm4 = vweird.f32 %v4146_v5  ;;  %v649_v52 = vpop.f32.mrf.mxu2 }
 0x330   : > { %v2046_v58 = vmul.f32 %v4146_v5, %v2045_v25  ;;  %v1425_v44 = vadd.f32 0.0036580483, %v1424_v34  ;;  %vm2048_vm5 = vweird.f32 %v6598_v54  ;;  %v2670_v59 = vmul.f32 %v2669_v56, %v6558_v49 }
 0x331   : > { %v3852_v14 = vclamps-f32 %v1417_v62, 1.0  ;;  %4147 = vrcp.f32 %v6640_v27  ;;  %v6649_v0 = vmul.f32 0.70710677, %v6616_v30  ;;  %v3307_v15 = vadd.f32 0.05243302, %v3306_v11  ;;  %vm2050_vm6 = vmor %vm2048_vm5, %vm2049_vm4 }
 0x332   : > { %v2047_v39 = vadd.f32 %v4146_v5, %v2046_v58  ;;  %v3318_v24 = vadd.f32 0.112945676, %v3317_v45  ;;  %vm2053_vm7 = vcmp.eq.f32.partialorder %v2052_v35, 8.507059e+37  ;;  %v2055_v10 = vor.u32 1.1754944e-38, %v2054_v31 }
 0x333   : > { %v3394_v2 = vadd.f32 1.0, %v3852_v14  ;;  %v1426_v26 = vmul.f32 %v1425_v44, %v6622_v16  ;;  %v1436_v17 = vadd.f32 0.014752088, %v1435_v41  ;;  %v3308_v53 = vmul.f32 %v3307_v15, %v6601_v6  ;;  %v689_v15 = vpop.f32.mrf.mxu3 }
 0x334   : > { %v2051_v49 = vsel %vm2050_vm6, %v4146_v5, %v2047_v39  ;;  %v3319_v55 = vmul.f32 %v3318_v24, %v6601_v6  ;;  %v2060_v60 = vmul.f32 %v6649_v0, %v6649_v0  ;;  %v2671_v12 = vadd.f32 1.1283791, %v2670_v59 }
 0x335   : > { %v3458_v54 = vmul.f32 %v3394_v2, %v6592_v46  ;;  %v2056_v57 = vsel %vm2053_vm7, %v2055_v10, %v2051_v49  ;;  %v1427_v47 = vadd.f32 0.05243302, %v1426_v26  ;;  %v1437_v51 = vmul.f32 %v1436_v17, %v6622_v16 }
 0x336   : > { %v2057_v32 = vmul.f32 %v2056_v57, %v2032_v4  ;;  %v3320_v36 = vadd.f32 0.4994258, %v3319_v55  ;;  %v6660_v42 = vadd.f32 %v6613_v7, %v649_v52  ;;  %v722_v3 = vmul.f32 0.5, %v6483_v38 }
 0x337   : > { %3522 = vst [vmem:[%s4577_s8 + $0x70] sm:$0xff] %v3458_v54  ;;  %v4148_v46 = vpop.eup %4147  ;;  %v2692_v22 = vand.u32 2147483647, %v6640_v27  ;;  %v1438_v18 = vadd.f32 0.112945676, %v1437_v51  ;;  %v6664_v63 = vmin.f32 %v2060_v60, 16.0  ;;  %v1428_v21 = vmul.f32 %v1427_v47, %v6622_v16 }
 0x338   : > { %v3868_v1 = vclamps-f32 %v2057_v32, 1.0  ;;  %v2684_v28 = vmul.f32 %v4148_v46, %v6640_v27  ;;  %v2694_v5 = vand.u32 2147483648, %v6640_v27  ;;  %v3309_v19 = vadd.f32 0.18741608, %v3308_v53 }
 0x339   : > { %v3321_v4 = vmul.f32 %v3320_v36, %v6601_v6  ;;  %v1439_v43 = vmul.f32 %v1438_v18, %v6622_v16  ;;  %v2062_v23 = vmul.f32 2.1237322e-06, %v6664_v63  ;;  %v2073_v35 = vmul.f32 3.8918573e-05, %v6664_v63 }
 0x33a   : > { %v3410_v38 = vadd.f32 1.0, %v3868_v1  ;;  %v2685_v50 = vsub.f32 1.0, %v2684_v28  ;;  %v6674_v56 = vmul.f32 0.70710677, %v6660_v42  ;;  %vm2689_vm8 = vweird.f32 %v4148_v46 }
 0x33b   : > { %v6676_v61 = vadd.f32 1.0, %v3321_v4  ;;  %v1440_v29 = vadd.f32 0.4994258, %v1439_v43  ;;  %v2063_v20 = vadd.f32 0.00028619796, %v2062_v23  ;;  %v3310_v25 = vmul.f32 %v3309_v19, %v6601_v6 }
 0x33c   : > { %v3474_v37 = vmul.f32 %v3410_v38, %v722_v3  ;;  %v2686_v62 = vmul.f32 %v4148_v46, %v2685_v50  ;;  %v2074_v31 = vadd.f32 0.001143296, %v2073_v35  ;;  %v2672_v34 = vmul.f32 %v2671_v12, %v6534_v9 }
 0x33d   : > { %4149 = vrcp.f32 %v6676_v61  ;;  %v1429_v11 = vadd.f32 0.18741608, %v1428_v21  ;;  %vm2688_vm9 = vweird.f32 %v6640_v27  ;;  %v1441_v41 = vmul.f32 %v1440_v29, %v6622_v16 }
 0x33e   : > { %3538 = vst [vmem:[%s4577_s8 + $0xf0] sm:$0xff] %v3474_v37  ;;  %v2687_v45 = vadd.f32 %v4148_v46, %v2686_v62  ;;  %v2064_v14 = vmul.f32 %v2063_v20, %v6664_v63  ;;  %vm2690_vm10 = vmor %vm2688_vm9, %vm2689_vm8  ;;  %vm2693_vm11 = vcmp.eq.f32.partialorder %v2692_v22, 8.507059e+37  ;;  %v2695_v58 = vor.u32 1.1754944e-38, %v2694_v5 }
 0x33f   : > { %v2075_v6 = vmul.f32 %v2074_v31, %v6664_v63  ;;  %v2700_v9 = vmul.f32 %v6674_v56, %v6674_v56  ;;  %v3311_v59 = vadd.f32 1.1283791, %v3310_v25  ;;  %v6689_v2 = vadd.f32 1.0, %v1441_v41 }
 0x340   : > { %v2691_v44 = vsel %vm2690_vm10, %v4148_v46, %v2687_v45  ;;  %v2065_v39 = vadd.f32 0.0036580483, %v2064_v14  ;;  %v1430_v24 = vmul.f32 %v1429_v11, %v6622_v16  ;;  %v738_v17 = vmul.f32 0.5, %v6505_v48 }
 0x341   : > { %v2696_v27 = vsel %vm2693_vm11, %v2695_v58, %v2691_v44  ;;  %v2076_v10 = vadd.f32 0.014752088, %v2075_v6  ;;  %v6692_v26 = vmin.f32 %v2700_v9, 16.0  ;;  %4151 = vrcp.f32 %v6689_v2 }
 0x342   : > { %v2697_v52 = vmul.f32 %v2696_v27, %v2672_v34  ;;  %v2066_v49 = vmul.f32 %v2065_v39, %v6664_v63  ;;  %v6700_v57 = vadd.f32 %v6613_v7, %v689_v15  ;;  %v3312_v16 = vmul.f32 %v3311_v59, %v6583_v13 }
 0x343   : > { %v4150_v54 = vpop.eup %4149  ;;  %v2077_v53 = vmul.f32 %v2076_v10, %v6664_v63  ;;  %v2702_v55 = vmul.f32 2.1237322e-06, %v6692_v26  ;;  %v3332_v48 = vand.u32 2147483647, %v6676_v61  ;;  %vm3328_vm12 = vweird.f32 %v6676_v61 }
 0x344   : > { %v3884_v47 = vclamps-f32 %v2697_v52, 1.0  ;;  %v3324_v51 = vmul.f32 %v4150_v54, %v6676_v61  ;;  %v3334_v60 = vand.u32 2147483648, %v6676_v61  ;;  %v1431_v32 = vadd.f32 1.1283791, %v1430_v24 }
 0x345   : > { %v2078_v12 = vadd.f32 0.112945676, %v2077_v53  ;;  %v2703_v3 = vadd.f32 0.00028619796, %v2702_v55  ;;  %v2713_v7 = vmul.f32 3.8918573e-05, %v6692_v26  ;;  %vm3329_vm13 = vweird.f32 %v4150_v54 }
 0x346   : > { %v3426_v36 = vadd.f32 1.0, %v3884_v47  ;;  %v3325_v46 = vsub.f32 1.0, %v3324_v51  ;;  %v2067_v22 = vadd.f32 0.05243302, %v2066_v49  ;;  %v6710_v18 = vmul.f32 0.70710677, %v6700_v57  ;;  %vm3330_vm15 = vmor %vm3328_vm12, %vm3329_vm13 }
 0x347   : > { %v2079_v13 = vmul.f32 %v2078_v12, %v6664_v63  ;;  %v4152_v1 = vpop.eup %4151  ;;  %v2704_v19 = vmul.f32 %v2703_v3, %v6692_v26  ;;  %v2714_v4 = vadd.f32 0.001143296, %v2713_v7  ;;  %vm6713_vm14 = vcmp.eq.f32.partialorder %v3332_v48, 8.507059e+37 }
 0x348   : > { %v3490_v28 = vmul.f32 %v3426_v36, %v738_v17  ;;  %v3326_v5 = vmul.f32 %v4150_v54, %v3325_v46  ;;  %v3335_v43 = vor.u32 1.1754944e-38, %v3334_v60  ;;  %v1444_v23 = vmul.f32 %v4152_v1, %v6689_v2 }
 0x349   : > { %v2080_v38 = vadd.f32 0.4994258, %v2079_v13  ;;  %v1452_v35 = vand.u32 2147483647, %v6689_v2  ;;  %v2715_v29 = vmul.f32 %v2714_v4, %v6692_v26  ;;  %v3340_v20 = vmul.f32 %v6710_v18, %v6710_v18 }
 0x34a   : > { %3554 = vst [vmem:[%s4577_s8 + $0x170] sm:$0xff] %v3490_v28  ;;  %v3327_v50 = vadd.f32 %v4150_v54, %v3326_v5  ;;  %v1445_v37 = vsub.f32 1.0, %v1444_v23  ;;  %v1454_v62 = vand.u32 2147483648, %v6689_v2  ;;  %v2068_v25 = vmul.f32 %v2067_v22, %v6664_v63 }
 0x34b   : > { %v2081_v31 = vmul.f32 %v2080_v38, %v6664_v63  ;;  %v2705_v11 = vadd.f32 0.0036580483, %v2704_v19  ;;  %v2716_v45 = vadd.f32 0.014752088, %v2715_v29  ;;  %v6729_v41 = vmin.f32 %v3340_v20, 16.0 }
 0x34c   : > { %v3331_v34 = vsel %vm3330_vm15, %v4150_v54, %v3327_v50  ;;  %v1446_v58 = vmul.f32 %v4152_v1, %v1445_v37  ;;  %vm1449_vm0 = vweird.f32 %v4152_v1  ;;  %v1432_v9 = vmul.f32 %v1431_v32, %v6595_v33 }
 0x34d   : > { %v3336_v14 = vsel %vm6713_vm14, %v3335_v43, %v3331_v34  ;;  %v2082_v6 = vadd.f32 1.0, %v2081_v31  ;;  %v2717_v44 = vmul.f32 %v2716_v45, %v6692_v26  ;;  %v3342_v59 = vmul.f32 2.1237322e-06, %v6729_v41 }
 0x34e   : > { %v3337_v61 = vmul.f32 %v3336_v14, %v3312_v16  ;;  %v1447_v39 = vadd.f32 %v4152_v1, %v1446_v58  ;;  %vm1448_vm1 = vweird.f32 %v6689_v2  ;;  %vm1453_vm2 = vcmp.eq.f32.partialorder %v1452_v35, 8.507059e+37 }
 0x34f   : > { %4153 = vrcp.f32 %v2082_v6  ;;  %vm1450_vm3 = vmor %vm1448_vm1, %vm1449_vm0  ;;  %v1455_v27 = vor.u32 1.1754944e-38, %v1454_v62  ;;  %v2069_v24 = vadd.f32 0.18741608, %v2068_v25  ;;  %v2706_v10 = vmul.f32 %v2705_v11, %v6692_v26 }
 0x350   : > { %v3900_v15 = vclamps-f32 %v3337_v61, 1.0  ;;  %v1451_v17 = vsel %vm1450_vm3, %v4152_v1, %v1447_v39  ;;  %v2718_v52 = vadd.f32 0.112945676, %v2717_v44  ;;  %v3343_v54 = vadd.f32 0.00028619796, %v3342_v59 }
 0x351   : > { %v3353_v33 = vmul.f32 3.8918573e-05, %v6729_v41  ;;  %v754_v49 = vmul.f32 0.5, %v6540_v40  ;;  %v1456_v55 = vsel %vm1453_vm2, %v1455_v27, %v1451_v17  ;;  %v2070_v51 = vmul.f32 %v2069_v24, %v6664_v63 }
 0x352   : > { %v3442_v53 = vadd.f32 1.0, %v3900_v15  ;;  %v1457_v47 = vmul.f32 %v1456_v55, %v1432_v9  ;;  %v2719_v2 = vmul.f32 %v2718_v52, %v6692_v26  ;;  %v2707_v12 = vadd.f32 0.05243302, %v2706_v10 }
 0x353   : > { %v3354_v48 = vadd.f32 0.001143296, %v3353_v33  ;;  %v3344_v46 = vmul.f32 %v3343_v54, %v6729_v41  ;;  %v707_v40 = vmul.f32 0.5, %v6579_v8  ;;  %v2071_v1 = vadd.f32 1.1283791, %v2070_v51 }
 0x354   : > { %v3506_v16 = vmul.f32 %v3442_v53, %v754_v49  ;;  %v3853_v32 = vclamps-f32 %v1457_v47, 1.0  ;;  %v2720_v36 = vadd.f32 0.4994258, %v2719_v2  ;;  %v2094_v63 = vand.u32 2147483648, %v2082_v6 }
 0x355   : > { %v4154_v60 = vpop.eup %4153  ;;  %v3355_v7 = vmul.f32 %v3354_v48, %v6729_v41  ;;  %v2708_v4 = vmul.f32 %v2707_v12, %v6692_v26  ;;  %v3345_v43 = vadd.f32 0.0036580483, %v3344_v46  ;;  %v2092_v38 = vand.u32 2147483647, %v2082_v6 }
 0x356   : > { %3570 = vst [vmem:[%s4577_s8 + $0x1f0] sm:$0xff] %v3506_v16  ;;  %v2084_v3 = vmul.f32 %v4154_v60, %v2082_v6  ;;  %v3395_v22 = vadd.f32 1.0, %v3853_v32  ;;  %v2721_v13 = vmul.f32 %v2720_v36, %v6692_v26  ;;  %vm2089_vm4 = vweird.f32 %v4154_v60 }
 0x357   : > { %v3356_v5 = vadd.f32 0.014752088, %v3355_v7  ;;  %vm2088_vm5 = vweird.f32 %v2082_v6  ;;  %v2095_v29 = vor.u32 1.1754944e-38, %v2094_v63  ;;  %v2709_v20 = vadd.f32 0.18741608, %v2708_v4 }
 0x358   : > { %v2085_v28 = vsub.f32 1.0, %v2084_v3  ;;  %v3459_v19 = vmul.f32 %v3395_v22, %v707_v40  ;;  %v2722_v21 = vadd.f32 1.0, %v2721_v13  ;;  %vm2090_vm6 = vmor %vm2088_vm5, %vm2089_vm4  ;;  %v3346_v37 = vmul.f32 %v3345_v43, %v6729_v41 }
 0x359   : > { %v3357_v50 = vmul.f32 %v3356_v5, %v6729_v41  ;;  %v2072_v62 = vmul.f32 %v2071_v1, %v6649_v0  ;;  %vm2093_vm7 = vcmp.eq.f32.partialorder %v2092_v38, 8.507059e+37  ;;  %v2710_v58 = vmul.f32 %v2709_v20, %v6692_v26 }
 0x35a   : > { %v2086_v23 = vmul.f32 %v4154_v60, %v2085_v28  ;;  %3523 = vst [vmem:[%s4577_s8 + $0x78] sm:$0xff] %v3459_v19  ;;  %4155 = vrcp.f32 %v2722_v21  ;;  %v3347_v61 = vadd.f32 0.05243302, %v3346_v37  ;;  %v723_v59 = vmul.f32 0.5, %v6616_v30 }
 0x35b   : > { %v3358_v35 = vadd.f32 0.112945676, %v3357_v50  ;;  %v2711_v15 = vadd.f32 1.1283791, %v2710_v58  ;;  %v2734_v27 = vand.u32 2147483648, %v2722_v21  ;;  %vm2728_vm9 = vweird.f32 %v2722_v21 }
 0x35c   : > { %v2087_v8 = vadd.f32 %v4154_v60, %v2086_v23  ;;  %v3348_v24 = vmul.f32 %v3347_v61, %v6729_v41  ;;  %v2732_v54 = vand.u32 2147483647, %v2722_v21  ;;  %v755_v63 = vmul.f32 0.5, %v6700_v57 }
 0x35d   : > { %v3359_v31 = vmul.f32 %v3358_v35, %v6729_v41  ;;  %v2735_v33 = vor.u32 1.1754944e-38, %v2734_v27  ;;  %v2712_v30 = vmul.f32 %v2711_v15, %v6674_v56 }
 0x35e   : > { %v2091_v25 = vsel %vm2090_vm6, %v4154_v60, %v2087_v8  ;;  %v3349_v49 = vadd.f32 0.18741608, %v3348_v24  ;;  %vm2733_vm11 = vcmp.eq.f32.partialorder %v2732_v54, 8.507059e+37  ;;  %v739_v60 = vmul.f32 0.5, %v6660_v42 }
 0x35f   : > { %v2096_v34 = vsel %vm2093_vm7, %v2095_v29, %v2091_v25  ;;  %v3360_v45 = vadd.f32 0.4994258, %v3359_v31 }
 0x360   : > { %v2097_v11 = vmul.f32 %v2096_v34, %v2072_v62  ;;  %v4156_v14 = vpop.eup %4155  ;;  %v3350_v16 = vmul.f32 %v3349_v49, %v6729_v41 }
 0x361   : > { %v2724_v9 = vmul.f32 %v4156_v14, %v2722_v21  ;;  %v3361_v44 = vmul.f32 %v3360_v45, %v6729_v41  ;;  %vm2729_vm8 = vweird.f32 %v4156_v14 }
 0x362   : > { %v3869_v6 = vclamps-f32 %v2097_v11, 1.0  ;;  %vm2730_vm10 = vmor %vm2728_vm9, %vm2729_vm8  ;;  %v3351_v36 = vadd.f32 1.1283791, %v3350_v16 }
 0x363   : > { %v2725_v0 = vsub.f32 1.0, %v2724_v9  ;;  %v3362_v10 = vadd.f32 1.0, %v3361_v44 }
 0x364   : > { %v3411_v39 = vadd.f32 1.0, %v3869_v6  ;;  %v3352_v22 = vmul.f32 %v3351_v36, %v6710_v18 }
 0x365   : > { %v2726_v52 = vmul.f32 %v4156_v14, %v2725_v0  ;;  %4157 = vrcp.f32 %v3362_v10  ;;  %v3374_v46 = vand.u32 2147483648, %v3362_v10  ;;  %v3372_v56 = vand.u32 2147483647, %v3362_v10 }
 0x366   : > { %v3475_v17 = vmul.f32 %v3411_v39, %v723_v59  ;;  %vm3368_vm13 = vweird.f32 %v3362_v10 }
 0x367   : > { %v2727_v26 = vadd.f32 %v4156_v14, %v2726_v52  ;;  %v3375_v41 = vor.u32 1.1754944e-38, %v3374_v46  ;;  %vm3373_vm15 = vcmp.eq.f32.partialorder %v3372_v56, 8.507059e+37 }
 0x368   : > { %3539 = vst [vmem:[%s4577_s8 + $0xf8] sm:$0xff] %v3475_v17 }
 0x369   : > { %v2731_v53 = vsel %vm2730_vm10, %v4156_v14, %v2727_v26 }
 0x36a   : > { %v2736_v55 = vsel %vm2733_vm11, %v2735_v33, %v2731_v53 }
 0x36b   : > { %v2737_v47 = vmul.f32 %v2736_v55, %v2712_v30  ;;  %v4158_v2 = vpop.eup %4157 }
 0x36c   : > { %v3364_v48 = vmul.f32 %v4158_v2, %v3362_v10  ;;  %vm3369_vm12 = vweird.f32 %v4158_v2 }
 0x36d   : > { %v3885_v51 = vclamps-f32 %v2737_v47, 1.0  ;;  %vm3370_vm14 = vmor %vm3368_vm13, %vm3369_vm12 }
 0x36e   : > { %v3365_v12 = vsub.f32 1.0, %v3364_v48 }
 0x36f   : > { %v3427_v32 = vadd.f32 1.0, %v3885_v51 }
 0x370   : > { %v3366_v7 = vmul.f32 %v4158_v2, %v3365_v12 }
 0x371   : > { %v3491_v3 = vmul.f32 %v3427_v32, %v739_v60 }
 0x372   : > { %v3367_v40 = vadd.f32 %v4158_v2, %v3366_v7 }
 0x373   : > { %3555 = vst [vmem:[%s4577_s8 + $0x178] sm:$0xff] %v3491_v3 }
 0x374   : > { %v3371_v42 = vsel %vm3370_vm14, %v4158_v2, %v3367_v40 }
 0x375   : > { %v3376_v13 = vsel %vm3373_vm15, %v3375_v41, %v3371_v42 }
 0x376   : > { %v3377_v1 = vmul.f32 %v3376_v13, %v3352_v22 }
 0x378   : > { %v3901_v28 = vclamps-f32 %v3377_v1, 1.0 }
 0x37a   : > { %v3443_v5 = vadd.f32 1.0, %v3901_v28 }
 0x37c   : > { %v3507_v19 = vmul.f32 %v3443_v5, %v755_v63 }
 0x37e   : > { %3571 = vst [vmem:[%s4577_s8 + $0x1f8] sm:$0xff] %v3507_v19 }
 0x37f   : > { %4191 = shalt.err (!%p4188_p5)
}
 0x380   : > { %s4244_s5 = smov 128   ;;  %s4245_s6 = smov 8  }
 0x381   : > { %3973 = dma.vmem_to_hbm [thread:$0]  (%p4306_p4), %s3588_s19, 8192, %s3590_s21, %s3573_s15, %s4244_s5, %s4244_s5, %s4245_s6  }
 0x382 PF: > { %p3979_p6 = scmp.ge.s32.totalorder %s4242_s17, 2  ;;  %s3604_s7 = sand.u32 1, %s4222_s12  }
 0x383   : > { %s3605_s8 = scalar_lea.sflag [#allocation3], %s3604_s7 }
 0x384   : > { %p3976_p7 = pnand %p3979_p6, %p4313_p8 }
 0x386   : > { %p3977_p9 = pneg %p3976_p7 }
 0x388   : > { %4217 = dma.done.wait (%p3977_p9), %s3605_s8, 8192  }
 0x389   : > { %4219 = vsyncadd (%p3977_p9), %s3605_s8, 4294959104  ;;  %s16_s17 = sadd.s32 1, %s4242_s17   ;;  %s6892_s12 = smov %s4226_s13 }
 0x38a   : > { %p13_p10 = scmp.ge.s32.totalorder %s16_s17, 4   ;;  %s6893_s13 = smov %s4230_s14 }
 0x38b   : > { %s6894_s14 = smov %s4319_s25  ;;  %s6895_s15 = smov %s4238_s16 }
 0x38c   : > { %s6896_s16 = smov %s6898_s20  ;;  %15 = sbr.rel (!%p13_p10) target bundleno = 4 (0x4), region = 68 }
 0x391   :  { %3611 = vsyncpa [#allocation3], 1 }
 0x392   :  { %3613 = vsyncpa [#allocation3 + $0x1], 1 }

</bundles_post_ra>
